<compile_context>
chip_gen: v6e
topology: v6e:2x2x1
jax: 0.10.0
libtpu: 0.0.40
codegen_flags: <defaults>
</compile_context>

<pallas_src>
import functools

import jax
import jax.numpy as jnp
from jax import lax
from jax.experimental import pallas as pl
from jax.experimental.pallas import tpu as pltpu


_BN_EPS = 1e-5
_BN_SCALE = 1.0 / (1.0 + _BN_EPS) ** 0.5
_VMEM_LIMIT_BYTES = 32 * 1024 * 1024


# ----------------------------------------------------------------------------
# small helpers
# ----------------------------------------------------------------------------

def _cparams(n_grid_axes):
    return pltpu.CompilerParams(
        dimension_semantics=("parallel",) * n_grid_axes,
        vmem_limit_bytes=_VMEM_LIMIT_BYTES)


def _row_tile(m, target, batch=1):
    """Row tile: full dim if it fits, else `target`; additionally split so a
    'parallel' grid has >=2 program instances (v7x: 2 TensorCores/chip)."""
    t = m if m <= target else target
    if batch * ((m + t - 1) // t) < 2 and m > 8:
        half = (m + 1) // 2
        t = min(((half + 7) // 8) * 8, m)
    return t


def _mm(a, w):
    """MXU matmul: bf16 operands (weights are pre-cast bf16), f32 accumulation."""
    return jnp.dot(a.astype(jnp.bfloat16), w, preferred_element_type=jnp.float32)


def _up_dims(up):
    dim = up["pos_w2"].shape[1]
    u = up["deconv_w"].shape[1] // dim
    out_ch = up["end_w_bd"].shape[1] // u
    return dim, out_ch, u


# ----------------------------------------------------------------------------
# Pallas kernels
# ----------------------------------------------------------------------------

def _uptrans_front_kernel(x_ref, wx_ref, bx_ref, w2_ref, b2_ref, wvi_ref, bvi_ref,
                          kv_ref, q_ref, id_ref, *, c_in, c_dim, c_out):
    """Fused: mlp_v (cat folded) + conv_key/conv_query + conv_value + residual.
    Emits [key || value] packed lane-dense (for a single neighbour gather),
    query, and the 128-wide residual (lane-tile aligned)."""
    x = x_ref[0]                                          # (TM, 256) f32
    t = _mm(x, wx_ref[...]) + bx_ref[...]                 # (TM, 2*c_in + 2*dim)
    h = jnp.maximum(t[:, :c_in], 0.0)                     # mlp_v hidden
    sc = t[:, c_in:2 * c_in]                              # mlp_v shortcut
    key = t[:, 2 * c_in:2 * c_in + c_dim]                 # conv_key
    query = t[:, 2 * c_in + c_dim:]                       # conv_query
    v = _mm(h, w2_ref[...]) + b2_ref[...] + sc            # mlp_v output
    vi = _mm(v, wvi_ref[...]) + bvi_ref[...]              # [residual || value]
    ident = vi[:, :c_out]
    value = vi[:, c_out:]
    kv_ref[0] = jnp.concatenate([key, value], axis=-1).astype(kv_ref.dtype)
    q_ref[0] = query.astype(q_ref.dtype)
    id_ref[0] = ident.astype(id_ref.dtype)


def _knn_kernel(p_ref, pt_ref, o_ref, *, k):
    """Fused pairwise sq-distance + iterative k-min index extraction.
    The (tq, N) distance tile never leaves VMEM; only (tq, k) int32 is stored."""
    p = p_ref[0]                                          # (TQ, 3)
    pt = pt_ref[0]                                        # (3, N)
    n = pt.shape[1]
    # 3-wide contraction as broadcast FMAs (no K=3 MXU matmul).
    dot = (p[:, 0:1] * pt[0:1, :] + p[:, 1:2] * pt[1:2, :] + p[:, 2:3] * pt[2:3, :])
    d = (jnp.sum(p * p, axis=1, keepdims=True)
         + jnp.sum(pt * pt, axis=0, keepdims=True) - 2.0 * dot)     # (TQ, N)
    iota = lax.broadcasted_iota(jnp.int32, d.shape, 1).astype(jnp.float32)
    cols = []
    for _ in range(k):
        mn = jnp.min(d, axis=-1, keepdims=True)
        sel = jnp.where(d <= mn, iota, jnp.float32(n))
        ik = jnp.min(sel, axis=-1, keepdims=True)         # smallest index at the min
        cols.append(ik)
        d = jnp.where(iota == ik, jnp.inf, d)             # knock out the chosen entry
    o_ref[0] = jnp.concatenate(cols, axis=-1).astype(jnp.int32)


def _nbr_kernel(q_ref, kvg_ref, pr_ref, id_ref,
                pw1_ref, pb1_ref, pw2_ref, pb2_ref,
                aw1_ref, ab1_ref, dw_ref, db_ref,
                ew_ref, eb_ref, o_ref, *, n_knn, dim, up_factor):
    """Fused neighbour pipeline: qk_rel/pos_rel + pos_mlp + attn_mlp (all deconv
    heads) + (value + pos_embedding) + K-aggregation + conv_end (block-diag
    matmul) + residual.  a01 / vpe never touch HBM."""
    q = q_ref[0].astype(jnp.float32)                      # (TN, dim)
    ident = id_ref[0]                                     # (TN, out_ch) f32
    pw1 = pw1_ref[...]                                    # (3, 64) f32
    w0, w1, w2 = pw1[0:1, :], pw1[1:2, :], pw1[2:3, :]
    pb1 = pb1_ref[...]
    acc = jnp.zeros((q.shape[0], up_factor * dim), jnp.float32)
    for k in range(n_knn):
        kv = kvg_ref[0, k]                                # (TN, 2*dim) bf16
        key = kv[:, :dim].astype(jnp.float32)
        val = kv[:, dim:].astype(jnp.float32)
        pr = pr_ref[0, k]                                 # (TN, 3) f32
        # pos_mlp layer-1 (3->64, BN folded) as 3 VPU broadcast FMAs.
        p1 = pr[:, 0:1] * w0 + pr[:, 1:2] * w1 + pr[:, 2:3] * w2 + pb1
        pe = _mm(jnp.maximum(p1, 0.0), pw2_ref[...]) + pb2_ref[...]      # (TN, dim)
        # attn_mlp: Conv(64->256) (BN folded) -> ReLU -> both deconv heads.
        h = jnp.maximum(_mm((q - key) + pe, aw1_ref[...]) + ab1_ref[...], 0.0)
        a = _mm(h, dw_ref[...]) + db_ref[...]                            # (TN, U*dim)
        vpe = val + pe
        acc = acc + a * jnp.concatenate([vpe] * up_factor, axis=-1)
    id_u = jnp.concatenate([ident] * up_factor, axis=-1)
    # conv_end for all heads as one block-diagonal matmul, + residual.
    y = _mm(acc, ew_ref[...]) + eb_ref[...] + id_u                        # (TN, U*out_ch)
    o_ref[0] = y.astype(o_ref.dtype)


def _seed_tail_kernel(x_ref,
                      w1hs_ref, fb1_ref, w1o_ref, b1o_ref,
                      w2hs_ref, b2hs_ref, w2o_ref, b2o_ref,
                      w3hs_ref, fb3_ref, w3o_ref, b3o_ref,
                      w4a_ref, b4a_ref, w4b_ref, b4b_ref,
                      x3_ref, comp_ref, *, o1, o2, o3):
    """Fused mlp_1 -> mlp_2 -> mlp_3 -> mlp_4 (global feat folded into per-batch
    biases).  Packed MLP_Res weights are ordered [shortcut || hidden]."""
    x = x_ref[0]

    def mlp_res(xin, whs, bhs, wo, bo, odim):
        t = _mm(xin, whs) + bhs                           # [shortcut || hidden-preact]
        sc = t[:, :odim]
        h = jnp.maximum(t[:, odim:], 0.0)
        return _mm(h, wo) + bo + sc

    x1 = mlp_res(x, w1hs_ref[...], fb1_ref[0], w1o_ref[...], b1o_ref[0], o1)
    x2 = mlp_res(x1, w2hs_ref[...], b2hs_ref[0], w2o_ref[...], b2o_ref[0], o2)
    x3 = mlp_res(x2, w3hs_ref[...], fb3_ref[0], w3o_ref[...], b3o_ref[0], o3)
    h4 = jnp.maximum(_mm(x3, w4a_ref[...]) + b4a_ref[0], 0.0)
    comp = _mm(h4, w4b_ref[...]) + b4b_ref[0]
    x3_ref[0] = x3.astype(x3_ref.dtype)
    comp_ref[0] = comp.astype(comp_ref.dtype)


# ----------------------------------------------------------------------------
# Pallas wrappers
# ----------------------------------------------------------------------------

def uptrans_front(kq, up, row_tile=1024):
    """kq: (B, N, 256) -> ([key||value] (B,N,128) bf16, query (B,N,64) bf16,
    residual (B,N,128) f32)."""
    B, N, c_in = kq.shape
    dim, out_ch, _ = _up_dims(up)
    tm = _row_tile(N, row_tile, B)
    wx, bx, w2, b2, wvi, bvi = (up["wx"], up["bx"], up["w2"], up["b2"],
                                up["wvi"], up["bvi"])
    return pl.pallas_call(
        functools.partial(_uptrans_front_kernel, c_in=c_in, c_dim=dim, c_out=out_ch),
        out_shape=(jax.ShapeDtypeStruct((B, N, 2 * dim), jnp.bfloat16),
                   jax.ShapeDtypeStruct((B, N, dim), jnp.bfloat16),
                   jax.ShapeDtypeStruct((B, N, out_ch), jnp.float32)),
        grid=(B, pl.cdiv(N, tm)),
        in_specs=[pl.BlockSpec((1, tm, c_in), lambda b, i: (b, i, 0)),
                  pl.BlockSpec(wx.shape, lambda b, i: (0, 0)),
                  pl.BlockSpec(bx.shape, lambda b, i: (0, 0)),
                  pl.BlockSpec(w2.shape, lambda b, i: (0, 0)),
                  pl.BlockSpec(b2.shape, lambda b, i: (0, 0)),
                  pl.BlockSpec(wvi.shape, lambda b, i: (0, 0)),
                  pl.BlockSpec(bvi.shape, lambda b, i: (0, 0))],
        out_specs=(pl.BlockSpec((1, tm, 2 * dim), lambda b, i: (b, i, 0)),
                   pl.BlockSpec((1, tm, dim), lambda b, i: (b, i, 0)),
                   pl.BlockSpec((1, tm, out_ch), lambda b, i: (b, i, 0))),
        compiler_params=_cparams(2),
    )(kq, wx, bx, w2, b2, wvi, bvi)


def pallas_knn(pos, k, row_tile=512):
    """pos: (B, N, 3) f32 -> (B, N, k) int32 nearest-neighbour indices (self incl.)."""
    B, N, C = pos.shape
    pos_t = jnp.transpose(pos, (0, 2, 1))
    tq = _row_tile(N, row_tile, B)
    return pl.pallas_call(
        functools.partial(_knn_kernel, k=k),
        out_shape=jax.ShapeDtypeStruct((B, N, k), jnp.int32),
        grid=(B, pl.cdiv(N, tq)),
        in_specs=[pl.BlockSpec((1, tq, C), lambda b, i: (b, i, 0)),
                  pl.BlockSpec((1, C, N), lambda b, i: (b, 0, 0))],
        out_specs=pl.BlockSpec((1, tq, k), lambda b, i: (b, i, 0)),
        compiler_params=_cparams(2),
    )(pos, pos_t)


def uptrans_nbr(query, kv_g, pos_rel, ident, up, n_tile=128):
    """Fused neighbour pipeline.  Returns (B, N, up_factor*out_ch) f32."""
    B, K, N, _ = kv_g.shape
    dim, out_ch, U = _up_dims(up)
    tn = _row_tile(N, n_tile, B)
    w = [up["pos_w1"], up["pos_b1"], up["pos_w2"], up["pos_b2"],
         up["attn_w1"], up["attn_b1"], up["deconv_w"], up["deconv_b"],
         up["end_w_bd"], up["end_b"]]
    w_specs = [pl.BlockSpec(x.shape, lambda b, i: (0, 0)) for x in w]
    return pl.pallas_call(
        functools.partial(_nbr_kernel, n_knn=K, dim=dim, up_factor=U),
        out_shape=jax.ShapeDtypeStruct((B, N, U * out_ch), jnp.float32),
        grid=(B, pl.cdiv(N, tn)),
        in_specs=[pl.BlockSpec((1, tn, dim), lambda b, i: (b, i, 0)),
                  pl.BlockSpec((1, K, tn, 2 * dim), lambda b, i: (b, 0, i, 0)),
                  pl.BlockSpec((1, K, tn, 3), lambda b, i: (b, 0, i, 0)),
                  pl.BlockSpec((1, tn, out_ch), lambda b, i: (b, i, 0))] + w_specs,
        out_specs=pl.BlockSpec((1, tn, U * out_ch), lambda b, i: (b, i, 0)),
        compiler_params=_cparams(2),
    )(query, kv_g, pos_rel, ident, *w)


def seed_tail(x1, fb1, fb3, p, row_tile=1024):
    """Fused mlp_1 -> mlp_2 -> mlp_3 -> mlp_4.  Returns (x3, completion)."""
    B, M, C = x1.shape
    o1, o2, o3 = p["w1o"].shape[1], p["w2o"].shape[1], p["w3o"].shape[1]
    c_out = p["w4b"].shape[1]
    tm = _row_tile(M, row_tile, B)

    def dspec(c):
        return pl.BlockSpec((1, tm, c), lambda b, i: (b, i, 0))

    def wspec(w):
        return pl.BlockSpec(w.shape, lambda b, i: (0, 0))

    def bspec(arr, per_batch):
        if per_batch:
            return pl.BlockSpec((1, 1, arr.shape[-1]), lambda b, i: (b, 0, 0))
        return pl.BlockSpec((1, 1, arr.shape[-1]), lambda b, i: (0, 0, 0))

    args = [x1,
            p["w1hs"], fb1, p["w1o"], p["b1o"],
            p["w2hs"], p["b2hs"], p["w2o"], p["b2o"],
            p["w3hs"], fb3, p["w3o"], p["b3o"],
            p["w4a"], p["b4a"], p["w4b"], p["b4b"]]
    in_specs = [dspec(C),
                wspec(p["w1hs"]), bspec(fb1, True), wspec(p["w1o"]), bspec(p["b1o"], False),
                wspec(p["w2hs"]), bspec(p["b2hs"], False), wspec(p["w2o"]), bspec(p["b2o"], False),
                wspec(p["w3hs"]), bspec(fb3, True), wspec(p["w3o"]), bspec(p["b3o"], False),
                wspec(p["w4a"]), bspec(p["b4a"], False), wspec(p["w4b"]), bspec(p["b4b"], False)]
    x3, comp = pl.pallas_call(
        functools.partial(_seed_tail_kernel, o1=o1, o2=o2, o3=o3),
        out_shape=(jax.ShapeDtypeStruct((B, M, o3), jnp.float32),
                   jax.ShapeDtypeStruct((B, M, c_out), jnp.float32)),
        grid=(B, pl.cdiv(M, tm)),
        in_specs=in_specs,
        out_specs=(dspec(o3), dspec(c_out)),
        compiler_params=_cparams(2),
    )(*args)
    return x3, comp


# ----------------------------------------------------------------------------
# Parameter initialization (deterministic, PyTorch-like uniform fan-in bounds)
# ----------------------------------------------------------------------------

def _uniform(key, shape, fan_in):
    bound = 1.0 / float(fan_in) ** 0.5
    return jax.random.uniform(key, shape, jnp.float32, -bound, bound)


def _conv_init(key, cin, cout):
    k1, k2 = jax.random.split(key)
    return _uniform(k1, (cin, cout), cin), _uniform(k2, (cout,), cin)


def init_params(key, feat_dim=512, seed_dim=128, up_factor=2):
    in_ch, out_ch, dim = 256, 128, 64
    pos_hidden = 64
    attn_hidden = dim * 4
    keys = jax.random.split(key, 20)
    bf16 = lambda a: a.astype(jnp.bfloat16)

    # ---- UpTransformer ----
    # mlp_v: in = 2*in_ch from cat([key, query]); key == query on this path, so
    # fold the two weight halves (cat @ W == kq @ (W_top + W_bot)).
    w1, b1 = _conv_init(keys[0], in_ch * 2, in_ch)
    w2, b2 = _conv_init(keys[1], in_ch, in_ch)
    ws, bs = _conv_init(keys[2], in_ch * 2, in_ch)
    w1f = w1[:in_ch] + w1[in_ch:]
    wsf = ws[:in_ch] + ws[in_ch:]
    wk, bk = _conv_init(keys[3], in_ch, dim)
    wq, bq = _conv_init(keys[4], in_ch, dim)
    wv, bv = _conv_init(keys[5], in_ch, dim)
    wr, br = _conv_init(keys[6], in_ch, out_ch)           # residual (in != out)

    up = {}
    up["wx"] = bf16(jnp.concatenate([w1f, wsf, wk, wq], axis=1))    # (256, 640)
    up["bx"] = jnp.concatenate([b1, bs, bk, bq]).reshape(1, -1)
    up["w2"] = bf16(w2)
    up["b2"] = b2.reshape(1, -1)
    # [residual(128) || value(64)] so the 128-wide residual slice is lane-aligned.
    up["wvi"] = bf16(jnp.concatenate([wr, wv], axis=1))             # (256, 192)
    up["bvi"] = jnp.concatenate([br, bv]).reshape(1, -1)

    # pos_mlp: Conv2d(3,64,1) -> BN(eval, folded) -> ReLU -> Conv2d(64,64,1)
    w, b = _conv_init(keys[7], 3, pos_hidden)
    up["pos_w1"] = w * _BN_SCALE                                    # f32 (VPU FMA path)
    up["pos_b1"] = (b * _BN_SCALE).reshape(1, -1)
    w, b = _conv_init(keys[8], pos_hidden, dim)
    up["pos_w2"] = bf16(w)
    up["pos_b2"] = b.reshape(1, -1)

    # attn_mlp: Conv2d(64,256,1) -> BN(folded) -> ReLU
    #           -> ConvTranspose2d(256,64,(U,1),(U,1)) (heads packed lane-wise)
    w, b = _conv_init(keys[9], dim, attn_hidden)
    up["attn_w1"] = bf16(w * _BN_SCALE)
    up["attn_b1"] = (b * _BN_SCALE).reshape(1, -1)
    dkeys = jax.random.split(keys[10], up_factor + 1)
    dws = [_uniform(dkeys[u], (attn_hidden, dim), attn_hidden) for u in range(up_factor)]
    db = _uniform(dkeys[-1], (dim,), attn_hidden)
    up["deconv_w"] = bf16(jnp.concatenate(dws, axis=1))             # (256, U*64)
    up["deconv_b"] = jnp.tile(db, (up_factor,)).reshape(1, -1)

    # conv_end as one block-diagonal (U*64, U*128) matmul over all heads.
    we, be = _conv_init(keys[11], dim, out_ch)
    ewbd = jnp.zeros((up_factor * dim, up_factor * out_ch), jnp.float32)
    for u in range(up_factor):
        ewbd = ewbd.at[u * dim:(u + 1) * dim, u * out_ch:(u + 1) * out_ch].set(we)
    up["end_w_bd"] = bf16(ewbd)
    up["end_b"] = jnp.tile(be, (up_factor,)).reshape(1, -1)

    params = {"uptrans": up}

    # ---- SeedGenerator tail ----
    def mlp_res_split(k, cin_row, cin_feat, hidden, cout):
        k1, k2, k3 = jax.random.split(k, 3)
        cw1, cb1 = _conv_init(k1, cin_row + cin_feat, hidden)   # conv_1
        cw2, cb2 = _conv_init(k2, hidden, cout)                 # conv_2
        cws, cbs = _conv_init(k3, cin_row + cin_feat, cout)     # shortcut
        # [shortcut || hidden]: the cout-wide shortcut slice stays lane-aligned.
        whs = jnp.concatenate([cws[:cin_row], cw1[:cin_row]], axis=1)
        wbot = jnp.concatenate([cws[cin_row:], cw1[cin_row:]], axis=1)
        bcat = jnp.concatenate([cbs, cb1])
        return whs, wbot, bcat, cw2, cb2

    t = {}
    whs1, wbot1, bcat1, w1o, b1o = mlp_res_split(keys[12], 128, feat_dim, 128, 128)
    t["w1hs"], t["w1o"], t["b1o"] = bf16(whs1), bf16(w1o), b1o.reshape(1, 1, -1)

    k1, k2, k3 = jax.random.split(keys[13], 3)
    cw1, cb1 = _conv_init(k1, 128, 64)
    cw2, cb2 = _conv_init(k2, 64, 128)
    cws, cbs = _conv_init(k3, 128, 128)
    t["w2hs"] = bf16(jnp.concatenate([cws, cw1], axis=1))           # [shortcut || hidden]
    t["b2hs"] = jnp.concatenate([cbs, cb1]).reshape(1, 1, -1)
    t["w2o"], t["b2o"] = bf16(cw2), cb2.reshape(1, 1, -1)

    whs3, wbot3, bcat3, w3o, b3o = mlp_res_split(keys[14], 128, feat_dim, 128, seed_dim)
    t["w3hs"], t["w3o"], t["b3o"] = bf16(whs3), bf16(w3o), b3o.reshape(1, 1, -1)

    w4a, b4a = _conv_init(keys[15], seed_dim, 64)
    w4b, b4b = _conv_init(keys[16], 64, 3)
    t["w4a"], t["b4a"] = bf16(w4a), b4a.reshape(1, 1, -1)
    t["w4b"], t["b4b"] = bf16(w4b), b4b.reshape(1, 1, -1)

    # Global-feature halves of the mlp_1 / mlp_3 concats, folded into one
    # per-batch bias matmul (done in XLA; one 1-row matmul per batch element).
    t["wbot"] = jnp.concatenate([wbot1, wbot3], axis=1)             # (feat_dim, 512)
    t["bbot"] = jnp.concatenate([bcat1, bcat3])                     # (512,)

    params["tail"] = t
    return params


# ----------------------------------------------------------------------------
# Forward pass
# ----------------------------------------------------------------------------

def uptransformer_forward(up, pos_t, feat_t, n_knn):
    """pos_t: (B,3,N), feat_t: (B,256,N) torch layout -> (B, U*N, 128) channel-last."""
    B, _, N = pos_t.shape
    _, out_ch, U = _up_dims(up)
    pos = jnp.transpose(pos_t, (0, 2, 1))      # (B, N, 3)  f32
    kqin = jnp.transpose(feat_t, (0, 2, 1))    # (B, N, 256)

    # Fused front: mlp_v + conv_key/query + conv_value + residual layer.
    kv, query, ident = uptrans_front(kqin, up)             # bf16, bf16, f32

    # Fused kNN (include_self): indices only, distance matrix never hits HBM.
    idx = pallas_knn(pos, n_knn)                           # (B, N, K) int32
    idx_t = jnp.transpose(idx, (0, 2, 1))                  # (B, K, N)

    # TODO(synk): neighbour gather via XLA fancy indexing; a scalar-prefetch
    # in-kernel DMA gather would remove these (B,K,N,C) HBM intermediates too.
    kv_g = jax.vmap(lambda f, i: f[i])(kv, idx_t)          # (B, K, N, 128) bf16
    pos_g = jax.vmap(lambda f, i: f[i])(pos, idx_t)        # (B, K, N, 3)   f32
    pos_rel = pos[:, None, :, :] - pos_g                   # (B, K, N, 3)

    # Fused neighbour pipeline (pos_mlp + attn_mlp + aggregation + conv_end + res).
    out = uptrans_nbr(query, kv_g, pos_rel, ident, up)     # (B, N, U*128)
    # (B, N, U, out_ch) -> (B, U*N, out_ch) is a free HBM view (row interleave
    # matching ConvTranspose2d / nearest-upsample ordering: row = U*i + u).
    return out.reshape(B, U * N, out_ch)


def seed_generator_forward(params, feat, patch_xyz, patch_feat, *, n_knn, up_factor):
    """Inputs in PyTorch layout:
         feat:       (B, feat_dim, 1)
         patch_xyz:  (B, 3, N)
         patch_feat: (B, 256, N)
       Returns (completion (B, 3, up_factor*N), x3 (B, seed_dim, up_factor*N))."""
    up = params["uptrans"]
    tail = params["tail"]
    _, _, u_derived = _up_dims(up)
    assert u_derived == up_factor, (u_derived, up_factor)

    x1 = uptransformer_forward(up, patch_xyz, patch_feat, n_knn)   # (B, U*N, 128)

    # Fold the constant global-feature halves of mlp_1 / mlp_3 into per-batch
    # biases with one tiny XLA matmul (M=1 per batch element).
    feat_row = jnp.transpose(feat, (0, 2, 1))                      # (B, 1, feat_dim)
    fb = jnp.matmul(feat_row, tail["wbot"]) + tail["bbot"]         # (B, 1, 512)
    w1 = tail["w1hs"].shape[1]
    fb1, fb3 = fb[..., :w1], fb[..., w1:]

    x3, completion = seed_tail(x1, fb1, fb3, tail)                 # (B, M, 128), (B, M, 3)

    # back to PyTorch (B, C, M) layout
    return jnp.transpose(completion, (0, 2, 1)), jnp.transpose(x3, (0, 2, 1))


# ----------------------------------------------------------------------------
# main
# ----------------------------------------------------------------------------

if __name__ == "__main__":
    B, N = 2, 16
    feat_dim, seed_dim = 512, 128
    n_knn, factor = 8, 2   # n_knn reduced (<= N) for the small example

    root = jax.random.PRNGKey(0)
    kp, k1, k2, k3 = jax.random.split(root, 4)

    params = init_params(kp, feat_dim=feat_dim, seed_dim=seed_dim, up_factor=factor)

    feat = jax.random.normal(k1, (B, feat_dim, 1), dtype=jnp.float32)
    patch_xyz = jax.random.normal(k2, (B, 3, N), dtype=jnp.float32)
    patch_feat = jax.random.normal(k3, (B, 256, N), dtype=jnp.float32)

    fwd = jax.jit(functools.partial(seed_generator_forward, n_knn=n_knn, up_factor=factor))
    completion, x3 = fwd(params, feat, patch_xyz, patch_feat)
    completion, x3 = jax.block_until_ready((completion, x3))

    assert completion.shape == (B, 3, factor * N), completion.shape
    assert x3.shape == (B, seed_dim, factor * N), x3.shape
    assert jnp.all(jnp.isfinite(completion)) and jnp.all(jnp.isfinite(x3))
    print("KERNEL_OK")
</pallas_src>

<mosaic_0001>
module attributes {stable_mosaic.version = 11 : i64} {
  func.func @_knn_kernel(%arg0: i32, %arg1: i32, %arg2: memref<1x16x3xf32, #tpu.memory_space<vmem>>, %arg3: memref<1x3x16xf32, #tpu.memory_space<vmem>>, %arg4: memref<1x16x8xi32, #tpu.memory_space<vmem>>) attributes {dimension_semantics = [#tpu.dimension_semantics<parallel>, #tpu.dimension_semantics<parallel>], iteration_bounds = array<i64: 2, 1>, scalar_prefetch = 0 : i64, scratch_operands = 0 : i64, tpu.core_type = #tpu.core_type<tc>, window_params = [{transform_indices = @transform_0, window_bounds = array<i64: 1, 16, 3>}, {transform_indices = @transform_1, window_bounds = array<i64: 1, 3, 16>}, {transform_indices = @transform_2, window_bounds = array<i64: 1, 16, 8>}]} {
    %c0 = arith.constant 0 : index
    %c0_0 = arith.constant 0 : index
    %c0_1 = arith.constant 0 : index
    %0 = vector.load %arg2[%c0, %c0_0, %c0_1] : memref<1x16x3xf32, #tpu.memory_space<vmem>>, vector<1x16x3xf32>
    %1 = vector.shape_cast %0 : vector<1x16x3xf32> to vector<16x3xf32>
    %c0_2 = arith.constant 0 : index
    %c0_3 = arith.constant 0 : index
    %c0_4 = arith.constant 0 : index
    %2 = vector.load %arg3[%c0_2, %c0_3, %c0_4] : memref<1x3x16xf32, #tpu.memory_space<vmem>>, vector<1x3x16xf32>
    %3 = vector.shape_cast %2 : vector<1x3x16xf32> to vector<3x16xf32>
    %4 = vector.extract_strided_slice %1 {offsets = [0, 0], sizes = [16, 1], strides = [1, 1]} : vector<16x3xf32> to vector<16x1xf32>
    %5 = vector.extract_strided_slice %3 {offsets = [0, 0], sizes = [1, 16], strides = [1, 1]} : vector<3x16xf32> to vector<1x16xf32>
    %6 = vector.broadcast %4 : vector<16x1xf32> to vector<16x16xf32>
    %7 = vector.broadcast %5 : vector<1x16xf32> to vector<16x16xf32>
    %8 = arith.mulf %6, %7 : vector<16x16xf32>
    %9 = vector.extract_strided_slice %1 {offsets = [0, 1], sizes = [16, 1], strides = [1, 1]} : vector<16x3xf32> to vector<16x1xf32>
    %10 = vector.extract_strided_slice %3 {offsets = [1, 0], sizes = [1, 16], strides = [1, 1]} : vector<3x16xf32> to vector<1x16xf32>
    %11 = vector.broadcast %9 : vector<16x1xf32> to vector<16x16xf32>
    %12 = vector.broadcast %10 : vector<1x16xf32> to vector<16x16xf32>
    %13 = arith.mulf %11, %12 : vector<16x16xf32>
    %14 = arith.addf %8, %13 : vector<16x16xf32>
    %15 = vector.extract_strided_slice %1 {offsets = [0, 2], sizes = [16, 1], strides = [1, 1]} : vector<16x3xf32> to vector<16x1xf32>
    %16 = vector.extract_strided_slice %3 {offsets = [2, 0], sizes = [1, 16], strides = [1, 1]} : vector<3x16xf32> to vector<1x16xf32>
    %17 = vector.broadcast %15 : vector<16x1xf32> to vector<16x16xf32>
    %18 = vector.broadcast %16 : vector<1x16xf32> to vector<16x16xf32>
    %19 = arith.mulf %17, %18 : vector<16x16xf32>
    %20 = arith.addf %14, %19 : vector<16x16xf32>
    %21 = arith.mulf %1, %1 : vector<16x3xf32>
    %cst = arith.constant dense<0.000000e+00> : vector<16xf32>
    %22 = vector.multi_reduction <add>, %21, %cst [1] : vector<16x3xf32> to vector<16xf32>
    %23 = vector.shape_cast %22 : vector<16xf32> to vector<16x1xf32>
    %24 = arith.mulf %3, %3 : vector<3x16xf32>
    %cst_5 = arith.constant dense<0.000000e+00> : vector<16xf32>
    %25 = vector.multi_reduction <add>, %24, %cst_5 [0] : vector<3x16xf32> to vector<16xf32>
    %26 = vector.shape_cast %25 : vector<16xf32> to vector<1x16xf32>
    %27 = vector.broadcast %23 : vector<16x1xf32> to vector<16x16xf32>
    %28 = vector.broadcast %26 : vector<1x16xf32> to vector<16x16xf32>
    %29 = arith.addf %27, %28 : vector<16x16xf32>
    %cst_6 = arith.constant 2.000000e+00 : f32
    %30 = vector.broadcast %cst_6 : f32 to vector<16x16xf32>
    %31 = arith.mulf %30, %20 : vector<16x16xf32>
    %32 = arith.subf %29, %31 : vector<16x16xf32>
    %33 = tpu.iota {dimensions = array<i32: 1>} : vector<16x16xi32>
    %34 = arith.sitofp %33 : vector<16x16xi32> to vector<16x16xf32>
    %cst_7 = arith.constant dense<0x7F800000> : vector<16xf32>
    %35 = vector.multi_reduction <minimumf>, %32, %cst_7 [1] : vector<16x16xf32> to vector<16xf32>
    %36 = vector.shape_cast %35 : vector<16xf32> to vector<16x1xf32>
    %37 = vector.broadcast %36 : vector<16x1xf32> to vector<16x16xf32>
    %38 = arith.cmpf ole, %32, %37 : vector<16x16xf32>
    %cst_8 = arith.constant 1.600000e+01 : f32
    %39 = vector.broadcast %cst_8 : f32 to vector<16x16xf32>
    %40 = arith.select %38, %34, %39 : vector<16x16xi1>, vector<16x16xf32>
    %cst_9 = arith.constant dense<0x7F800000> : vector<16xf32>
    %41 = vector.multi_reduction <minimumf>, %40, %cst_9 [1] : vector<16x16xf32> to vector<16xf32>
    %42 = vector.shape_cast %41 : vector<16xf32> to vector<16x1xf32>
    %43 = vector.broadcast %42 : vector<16x1xf32> to vector<16x16xf32>
    %44 = arith.cmpf oeq, %34, %43 : vector<16x16xf32>
    %cst_10 = arith.constant 0x7F800000 : f32
    %45 = vector.broadcast %cst_10 : f32 to vector<16x16xf32>
    %46 = arith.select %44, %45, %32 : vector<16x16xi1>, vector<16x16xf32>
    %cst_11 = arith.constant dense<0x7F800000> : vector<16xf32>
    %47 = vector.multi_reduction <minimumf>, %46, %cst_11 [1] : vector<16x16xf32> to vector<16xf32>
    %48 = vector.shape_cast %47 : vector<16xf32> to vector<16x1xf32>
    %49 = vector.broadcast %48 : vector<16x1xf32> to vector<16x16xf32>
    %50 = arith.cmpf ole, %46, %49 : vector<16x16xf32>
    %cst_12 = arith.constant 1.600000e+01 : f32
    %51 = vector.broadcast %cst_12 : f32 to vector<16x16xf32>
    %52 = arith.select %50, %34, %51 : vector<16x16xi1>, vector<16x16xf32>
    %cst_13 = arith.constant dense<0x7F800000> : vector<16xf32>
    %53 = vector.multi_reduction <minimumf>, %52, %cst_13 [1] : vector<16x16xf32> to vector<16xf32>
    %54 = vector.shape_cast %53 : vector<16xf32> to vector<16x1xf32>
    %55 = vector.broadcast %54 : vector<16x1xf32> to vector<16x16xf32>
    %56 = arith.cmpf oeq, %34, %55 : vector<16x16xf32>
    %cst_14 = arith.constant 0x7F800000 : f32
    %57 = vector.broadcast %cst_14 : f32 to vector<16x16xf32>
    %58 = arith.select %56, %57, %46 : vector<16x16xi1>, vector<16x16xf32>
    %cst_15 = arith.constant dense<0x7F800000> : vector<16xf32>
    %59 = vector.multi_reduction <minimumf>, %58, %cst_15 [1] : vector<16x16xf32> to vector<16xf32>
    %60 = vector.shape_cast %59 : vector<16xf32> to vector<16x1xf32>
    %61 = vector.broadcast %60 : vector<16x1xf32> to vector<16x16xf32>
    %62 = arith.cmpf ole, %58, %61 : vector<16x16xf32>
    %cst_16 = arith.constant 1.600000e+01 : f32
    %63 = vector.broadcast %cst_16 : f32 to vector<16x16xf32>
    %64 = arith.select %62, %34, %63 : vector<16x16xi1>, vector<16x16xf32>
    %cst_17 = arith.constant dense<0x7F800000> : vector<16xf32>
    %65 = vector.multi_reduction <minimumf>, %64, %cst_17 [1] : vector<16x16xf32> to vector<16xf32>
    %66 = vector.shape_cast %65 : vector<16xf32> to vector<16x1xf32>
    %67 = vector.broadcast %66 : vector<16x1xf32> to vector<16x16xf32>
    %68 = arith.cmpf oeq, %34, %67 : vector<16x16xf32>
    %cst_18 = arith.constant 0x7F800000 : f32
    %69 = vector.broadcast %cst_18 : f32 to vector<16x16xf32>
    %70 = arith.select %68, %69, %58 : vector<16x16xi1>, vector<16x16xf32>
    %cst_19 = arith.constant dense<0x7F800000> : vector<16xf32>
    %71 = vector.multi_reduction <minimumf>, %70, %cst_19 [1] : vector<16x16xf32> to vector<16xf32>
    %72 = vector.shape_cast %71 : vector<16xf32> to vector<16x1xf32>
    %73 = vector.broadcast %72 : vector<16x1xf32> to vector<16x16xf32>
    %74 = arith.cmpf ole, %70, %73 : vector<16x16xf32>
    %cst_20 = arith.constant 1.600000e+01 : f32
    %75 = vector.broadcast %cst_20 : f32 to vector<16x16xf32>
    %76 = arith.select %74, %34, %75 : vector<16x16xi1>, vector<16x16xf32>
    %cst_21 = arith.constant dense<0x7F800000> : vector<16xf32>
    %77 = vector.multi_reduction <minimumf>, %76, %cst_21 [1] : vector<16x16xf32> to vector<16xf32>
    %78 = vector.shape_cast %77 : vector<16xf32> to vector<16x1xf32>
    %79 = vector.broadcast %78 : vector<16x1xf32> to vector<16x16xf32>
    %80 = arith.cmpf oeq, %34, %79 : vector<16x16xf32>
    %cst_22 = arith.constant 0x7F800000 : f32
    %81 = vector.broadcast %cst_22 : f32 to vector<16x16xf32>
    %82 = arith.select %80, %81, %70 : vector<16x16xi1>, vector<16x16xf32>
    %cst_23 = arith.constant dense<0x7F800000> : vector<16xf32>
    %83 = vector.multi_reduction <minimumf>, %82, %cst_23 [1] : vector<16x16xf32> to vector<16xf32>
    %84 = vector.shape_cast %83 : vector<16xf32> to vector<16x1xf32>
    %85 = vector.broadcast %84 : vector<16x1xf32> to vector<16x16xf32>
    %86 = arith.cmpf ole, %82, %85 : vector<16x16xf32>
    %cst_24 = arith.constant 1.600000e+01 : f32
    %87 = vector.broadcast %cst_24 : f32 to vector<16x16xf32>
    %88 = arith.select %86, %34, %87 : vector<16x16xi1>, vector<16x16xf32>
    %cst_25 = arith.constant dense<0x7F800000> : vector<16xf32>
    %89 = vector.multi_reduction <minimumf>, %88, %cst_25 [1] : vector<16x16xf32> to vector<16xf32>
    %90 = vector.shape_cast %89 : vector<16xf32> to vector<16x1xf32>
    %91 = vector.broadcast %90 : vector<16x1xf32> to vector<16x16xf32>
    %92 = arith.cmpf oeq, %34, %91 : vector<16x16xf32>
    %cst_26 = arith.constant 0x7F800000 : f32
    %93 = vector.broadcast %cst_26 : f32 to vector<16x16xf32>
    %94 = arith.select %92, %93, %82 : vector<16x16xi1>, vector<16x16xf32>
    %cst_27 = arith.constant dense<0x7F800000> : vector<16xf32>
    %95 = vector.multi_reduction <minimumf>, %94, %cst_27 [1] : vector<16x16xf32> to vector<16xf32>
    %96 = vector.shape_cast %95 : vector<16xf32> to vector<16x1xf32>
    %97 = vector.broadcast %96 : vector<16x1xf32> to vector<16x16xf32>
    %98 = arith.cmpf ole, %94, %97 : vector<16x16xf32>
    %cst_28 = arith.constant 1.600000e+01 : f32
    %99 = vector.broadcast %cst_28 : f32 to vector<16x16xf32>
    %100 = arith.select %98, %34, %99 : vector<16x16xi1>, vector<16x16xf32>
    %cst_29 = arith.constant dense<0x7F800000> : vector<16xf32>
    %101 = vector.multi_reduction <minimumf>, %100, %cst_29 [1] : vector<16x16xf32> to vector<16xf32>
    %102 = vector.shape_cast %101 : vector<16xf32> to vector<16x1xf32>
    %103 = vector.broadcast %102 : vector<16x1xf32> to vector<16x16xf32>
    %104 = arith.cmpf oeq, %34, %103 : vector<16x16xf32>
    %cst_30 = arith.constant 0x7F800000 : f32
    %105 = vector.broadcast %cst_30 : f32 to vector<16x16xf32>
    %106 = arith.select %104, %105, %94 : vector<16x16xi1>, vector<16x16xf32>
    %cst_31 = arith.constant dense<0x7F800000> : vector<16xf32>
    %107 = vector.multi_reduction <minimumf>, %106, %cst_31 [1] : vector<16x16xf32> to vector<16xf32>
    %108 = vector.shape_cast %107 : vector<16xf32> to vector<16x1xf32>
    %109 = vector.broadcast %108 : vector<16x1xf32> to vector<16x16xf32>
    %110 = arith.cmpf ole, %106, %109 : vector<16x16xf32>
    %cst_32 = arith.constant 1.600000e+01 : f32
    %111 = vector.broadcast %cst_32 : f32 to vector<16x16xf32>
    %112 = arith.select %110, %34, %111 : vector<16x16xi1>, vector<16x16xf32>
    %cst_33 = arith.constant dense<0x7F800000> : vector<16xf32>
    %113 = vector.multi_reduction <minimumf>, %112, %cst_33 [1] : vector<16x16xf32> to vector<16xf32>
    %114 = vector.shape_cast %113 : vector<16xf32> to vector<16x1xf32>
    %115 = vector.broadcast %114 : vector<16x1xf32> to vector<16x16xf32>
    %116 = arith.cmpf oeq, %34, %115 : vector<16x16xf32>
    %cst_34 = arith.constant 0x7F800000 : f32
    %117 = vector.broadcast %cst_34 : f32 to vector<16x16xf32>
    %118 = arith.select %116, %117, %106 : vector<16x16xi1>, vector<16x16xf32>
    %cst_35 = arith.constant dense<0x7F800000> : vector<16xf32>
    %119 = vector.multi_reduction <minimumf>, %118, %cst_35 [1] : vector<16x16xf32> to vector<16xf32>
    %120 = vector.shape_cast %119 : vector<16xf32> to vector<16x1xf32>
    %121 = vector.broadcast %120 : vector<16x1xf32> to vector<16x16xf32>
    %122 = arith.cmpf ole, %118, %121 : vector<16x16xf32>
    %cst_36 = arith.constant 1.600000e+01 : f32
    %123 = vector.broadcast %cst_36 : f32 to vector<16x16xf32>
    %124 = arith.select %122, %34, %123 : vector<16x16xi1>, vector<16x16xf32>
    %cst_37 = arith.constant dense<0x7F800000> : vector<16xf32>
    %125 = vector.multi_reduction <minimumf>, %124, %cst_37 [1] : vector<16x16xf32> to vector<16xf32>
    %126 = vector.shape_cast %125 : vector<16xf32> to vector<16x1xf32>
    %127 = tpu.concatenate %42, %54, %66, %78, %90, %102, %114, %126 in 1 : vector<16x1xf32>, vector<16x1xf32>, vector<16x1xf32>, vector<16x1xf32>, vector<16x1xf32>, vector<16x1xf32>, vector<16x1xf32>, vector<16x1xf32> -> vector<16x8xf32>
    %128 = arith.fptosi %127 : vector<16x8xf32> to vector<16x8xi32>
    %c0_38 = arith.constant 0 : index
    %c0_39 = arith.constant 0 : index
    %c0_40 = arith.constant 0 : index
    %129 = vector.load %arg4[%c0_38, %c0_39, %c0_40] : memref<1x16x8xi32, #tpu.memory_space<vmem>>, vector<1x16x8xi32>
    %130 = vector.shape_cast %129 : vector<1x16x8xi32> to vector<16x8xi32>
    %131 = vector.shape_cast %128 : vector<16x8xi32> to vector<1x16x8xi32>
    tpu.vector_store %arg4[%c0_38, %c0_39, %c0_40], %131 {strides = array<i32>} : memref<1x16x8xi32, #tpu.memory_space<vmem>>, vector<1x16x8xi32>,
    return
  }
  func.func @transform_0(%arg0: i32, %arg1: i32) -> (i32, i32, i32) {
    %c0_i32 = arith.constant 0 : i32
    %c0_i32_0 = arith.constant 0 : i32
    return %arg0, %arg1, %c0_i32 : i32, i32, i32
  }
  func.func @transform_1(%arg0: i32, %arg1: i32) -> (i32, i32, i32) {
    %c0_i32 = arith.constant 0 : i32
    %c0_i32_0 = arith.constant 0 : i32
    %c0_i32_1 = arith.constant 0 : i32
    return %arg0, %c0_i32, %c0_i32_0 : i32, i32, i32
  }
  func.func @transform_2(%arg0: i32, %arg1: i32) -> (i32, i32, i32) {
    %c0_i32 = arith.constant 0 : i32
    %c0_i32_0 = arith.constant 0 : i32
    return %arg0, %arg1, %c0_i32 : i32, i32, i32
  }
}

module attributes {stable_mosaic.version = 11 : i64} {
  func.func @_uptrans_front_kernel(%arg0: i32, %arg1: i32, %arg2: memref<1x16x256xf32, #tpu.memory_space<vmem>>, %arg3: memref<256x640xbf16, #tpu.memory_space<vmem>>, %arg4: memref<1x640xf32, #tpu.memory_space<vmem>>, %arg5: memref<256x256xbf16, #tpu.memory_space<vmem>>, %arg6: memref<1x256xf32, #tpu.memory_space<vmem>>, %arg7: memref<256x192xbf16, #tpu.memory_space<vmem>>, %arg8: memref<1x192xf32, #tpu.memory_space<vmem>>, %arg9: memref<1x16x128xbf16, #tpu.memory_space<vmem>>, %arg10: memref<1x16x64xbf16, #tpu.memory_space<vmem>>, %arg11: memref<1x16x128xf32, #tpu.memory_space<vmem>>) attributes {dimension_semantics = [#tpu.dimension_semantics<parallel>, #tpu.dimension_semantics<parallel>], iteration_bounds = array<i64: 2, 1>, scalar_prefetch = 0 : i64, scratch_operands = 0 : i64, tpu.core_type = #tpu.core_type<tc>, window_params = [{transform_indices = @transform_0, window_bounds = array<i64: 1, 16, 256>}, {pipeline_mode = #tpu.pipeline_mode<synchronous>, transform_indices = @transform_1, window_bounds = array<i64: 256, 640>}, {pipeline_mode = #tpu.pipeline_mode<synchronous>, transform_indices = @transform_2, window_bounds = array<i64: 1, 640>}, {pipeline_mode = #tpu.pipeline_mode<synchronous>, transform_indices = @transform_3, window_bounds = array<i64: 256, 256>}, {pipeline_mode = #tpu.pipeline_mode<synchronous>, transform_indices = @transform_4, window_bounds = array<i64: 1, 256>}, {pipeline_mode = #tpu.pipeline_mode<synchronous>, transform_indices = @transform_5, window_bounds = array<i64: 256, 192>}, {pipeline_mode = #tpu.pipeline_mode<synchronous>, transform_indices = @transform_6, window_bounds = array<i64: 1, 192>}, {transform_indices = @transform_7, window_bounds = array<i64: 1, 16, 128>}, {transform_indices = @transform_8, window_bounds = array<i64: 1, 16, 64>}, {transform_indices = @transform_9, window_bounds = array<i64: 1, 16, 128>}]} {
    %c0 = arith.constant 0 : index
    %c0_0 = arith.constant 0 : index
    %c0_1 = arith.constant 0 : index
    %0 = vector.load %arg2[%c0, %c0_0, %c0_1] : memref<1x16x256xf32, #tpu.memory_space<vmem>>, vector<1x16x256xf32>
    %1 = vector.shape_cast %0 : vector<1x16x256xf32> to vector<16x256xf32>
    %c0_2 = arith.constant 0 : index
    %c0_3 = arith.constant 0 : index
    %2 = vector.load %arg3[%c0_2, %c0_3] : memref<256x640xbf16, #tpu.memory_space<vmem>>, vector<256x640xbf16>
    %3 = arith.truncf %1 : vector<16x256xf32> to vector<16x256xbf16>
    %cst = arith.constant dense<0.000000e+00> : vector<16x640xf32>
    %4 = tpu.matmul %3, %2, %cst {dimension_numbers = #tpu.dot_dimension_numbers<[1], [0], [0], [1], [0, 0, 1, 1], [], []>} : vector<16x256xbf16>, vector<256x640xbf16>, vector<16x640xf32> -> vector<16x640xf32>
    %c0_4 = arith.constant 0 : index
    %c0_5 = arith.constant 0 : index
    %5 = vector.load %arg4[%c0_4, %c0_5] : memref<1x640xf32, #tpu.memory_space<vmem>>, vector<1x640xf32>
    %6 = vector.broadcast %5 : vector<1x640xf32> to vector<16x640xf32>
    %7 = arith.addf %4, %6 : vector<16x640xf32>
    %8 = vector.extract_strided_slice %7 {offsets = [0, 0], sizes = [16, 256], strides = [1, 1]} : vector<16x640xf32> to vector<16x256xf32>
    %cst_6 = arith.constant 0.000000e+00 : f32
    %9 = vector.broadcast %cst_6 : f32 to vector<16x256xf32>
    %10 = arith.maximumf %8, %9 : vector<16x256xf32>
    %11 = vector.extract_strided_slice %7 {offsets = [0, 256], sizes = [16, 256], strides = [1, 1]} : vector<16x640xf32> to vector<16x256xf32>
    %12 = vector.extract_strided_slice %7 {offsets = [0, 512], sizes = [16, 64], strides = [1, 1]} : vector<16x640xf32> to vector<16x64xf32>
    %13 = vector.extract_strided_slice %7 {offsets = [0, 576], sizes = [16, 64], strides = [1, 1]} : vector<16x640xf32> to vector<16x64xf32>
    %c0_7 = arith.constant 0 : index
    %c0_8 = arith.constant 0 : index
    %14 = vector.load %arg5[%c0_7, %c0_8] : memref<256x256xbf16, #tpu.memory_space<vmem>>, vector<256x256xbf16>
    %15 = arith.truncf %10 : vector<16x256xf32> to vector<16x256xbf16>
    %cst_9 = arith.constant dense<0.000000e+00> : vector<16x256xf32>
    %16 = tpu.matmul %15, %14, %cst_9 {dimension_numbers = #tpu.dot_dimension_numbers<[1], [0], [0], [1], [0, 0, 1, 1], [], []>} : vector<16x256xbf16>, vector<256x256xbf16>, vector<16x256xf32> -> vector<16x256xf32>
    %c0_10 = arith.constant 0 : index
    %c0_11 = arith.constant 0 : index
    %17 = vector.load %arg6[%c0_10, %c0_11] : memref<1x256xf32, #tpu.memory_space<vmem>>, vector<1x256xf32>
    %18 = vector.broadcast %17 : vector<1x256xf32> to vector<16x256xf32>
    %19 = arith.addf %16, %18 : vector<16x256xf32>
    %20 = arith.addf %19, %11 : vector<16x256xf32>
    %c0_12 = arith.constant 0 : index
    %c0_13 = arith.constant 0 : index
    %21 = vector.load %arg7[%c0_12, %c0_13] : memref<256x192xbf16, #tpu.memory_space<vmem>>, vector<256x192xbf16>
    %22 = arith.truncf %20 : vector<16x256xf32> to vector<16x256xbf16>
    %cst_14 = arith.constant dense<0.000000e+00> : vector<16x192xf32>
    %23 = tpu.matmul %22, %21, %cst_14 {dimension_numbers = #tpu.dot_dimension_numbers<[1], [0], [0], [1], [0, 0, 1, 1], [], []>} : vector<16x256xbf16>, vector<256x192xbf16>, vector<16x192xf32> -> vector<16x192xf32>
    %c0_15 = arith.constant 0 : index
    %c0_16 = arith.constant 0 : index
    %24 = vector.load %arg8[%c0_15, %c0_16] : memref<1x192xf32, #tpu.memory_space<vmem>>, vector<1x192xf32>
    %25 = vector.broadcast %24 : vector<1x192xf32> to vector<16x192xf32>
    %26 = arith.addf %23, %25 : vector<16x192xf32>
    %27 = vector.extract_strided_slice %26 {offsets = [0, 0], sizes = [16, 128], strides = [1, 1]} : vector<16x192xf32> to vector<16x128xf32>
    %28 = vector.extract_strided_slice %26 {offsets = [0, 128], sizes = [16, 64], strides = [1, 1]} : vector<16x192xf32> to vector<16x64xf32>
    %29 = tpu.concatenate %12, %28 in 1 : vector<16x64xf32>, vector<16x64xf32> -> vector<16x128xf32>
    %30 = arith.truncf %29 : vector<16x128xf32> to vector<16x128xbf16>
    %c0_17 = arith.constant 0 : index
    %c0_18 = arith.constant 0 : index
    %c0_19 = arith.constant 0 : index
    %31 = vector.load %arg9[%c0_17, %c0_18, %c0_19] : memref<1x16x128xbf16, #tpu.memory_space<vmem>>, vector<1x16x128xbf16>
    %32 = vector.shape_cast %31 : vector<1x16x128xbf16> to vector<16x128xbf16>
    %33 = vector.shape_cast %30 : vector<16x128xbf16> to vector<1x16x128xbf16>
    tpu.vector_store %arg9[%c0_17, %c0_18, %c0_19], %33 {strides = array<i32>} : memref<1x16x128xbf16, #tpu.memory_space<vmem>>, vector<1x16x128xbf16>,
    %34 = arith.truncf %13 : vector<16x64xf32> to vector<16x64xbf16>
    %c0_20 = arith.constant 0 : index
    %c0_21 = arith.constant 0 : index
    %c0_22 = arith.constant 0 : index
    %35 = vector.load %arg10[%c0_20, %c0_21, %c0_22] : memref<1x16x64xbf16, #tpu.memory_space<vmem>>, vector<1x16x64xbf16>
    %36 = vector.shape_cast %35 : vector<1x16x64xbf16> to vector<16x64xbf16>
    %37 = vector.shape_cast %34 : vector<16x64xbf16> to vector<1x16x64xbf16>
    tpu.vector_store %arg10[%c0_20, %c0_21, %c0_22], %37 {strides = array<i32>} : memref<1x16x64xbf16, #tpu.memory_space<vmem>>, vector<1x16x64xbf16>,
    %c0_23 = arith.constant 0 : index
    %c0_24 = arith.constant 0 : index
    %c0_25 = arith.constant 0 : index
    %38 = vector.load %arg11[%c0_23, %c0_24, %c0_25] : memref<1x16x128xf32, #tpu.memory_space<vmem>>, vector<1x16x128xf32>
    %39 = vector.shape_cast %38 : vector<1x16x128xf32> to vector<16x128xf32>
    %40 = vector.shape_cast %27 : vector<16x128xf32> to vector<1x16x128xf32>
    tpu.vector_store %arg11[%c0_23, %c0_24, %c0_25], %40 {strides = array<i32>} : memref<1x16x128xf32, #tpu.memory_space<vmem>>, vector<1x16x128xf32>,
    return
  }
  func.func @transform_0(%arg0: i32, %arg1: i32) -> (i32, i32, i32) {
    %c0_i32 = arith.constant 0 : i32
    %c0_i32_0 = arith.constant 0 : i32
    return %arg0, %arg1, %c0_i32 : i32, i32, i32
  }
  func.func @transform_1(%arg0: i32, %arg1: i32) -> (i32, i32) {
    %c0_i32 = arith.constant 0 : i32
    %c0_i32_0 = arith.constant 0 : i32
    %c0_i32_1 = arith.constant 0 : i32
    return %c0_i32, %c0_i32_0 : i32, i32
  }
  func.func @transform_2(%arg0: i32, %arg1: i32) -> (i32, i32) {
    %c0_i32 = arith.constant 0 : i32
    %c0_i32_0 = arith.constant 0 : i32
    %c0_i32_1 = arith.constant 0 : i32
    return %c0_i32, %c0_i32_0 : i32, i32
  }
  func.func @transform_3(%arg0: i32, %arg1: i32) -> (i32, i32) {
    %c0_i32 = arith.constant 0 : i32
    %c0_i32_0 = arith.constant 0 : i32
    %c0_i32_1 = arith.constant 0 : i32
    return %c0_i32, %c0_i32_0 : i32, i32
  }
  func.func @transform_4(%arg0: i32, %arg1: i32) -> (i32, i32) {
    %c0_i32 = arith.constant 0 : i32
    %c0_i32_0 = arith.constant 0 : i32
    %c0_i32_1 = arith.constant 0 : i32
    return %c0_i32, %c0_i32_0 : i32, i32
  }
  func.func @transform_5(%arg0: i32, %arg1: i32) -> (i32, i32) {
    %c0_i32 = arith.constant 0 : i32
    %c0_i32_0 = arith.constant 0 : i32
    %c0_i32_1 = arith.constant 0 : i32
    return %c0_i32, %c0_i32_0 : i32, i32
  }
  func.func @transform_6(%arg0: i32, %arg1: i32) -> (i32, i32) {
    %c0_i32 = arith.constant 0 : i32
    %c0_i32_0 = arith.constant 0 : i32
    %c0_i32_1 = arith.constant 0 : i32
    return %c0_i32, %c0_i32_0 : i32, i32
  }
  func.func @transform_7(%arg0: i32, %arg1: i32) -> (i32, i32, i32) {
    %c0_i32 = arith.constant 0 : i32
    %c0_i32_0 = arith.constant 0 : i32
    return %arg0, %arg1, %c0_i32 : i32, i32, i32
  }
  func.func @transform_8(%arg0: i32, %arg1: i32) -> (i32, i32, i32) {
    %c0_i32 = arith.constant 0 : i32
    %c0_i32_0 = arith.constant 0 : i32
    return %arg0, %arg1, %c0_i32 : i32, i32, i32
  }
  func.func @transform_9(%arg0: i32, %arg1: i32) -> (i32, i32, i32) {
    %c0_i32 = arith.constant 0 : i32
    %c0_i32_0 = arith.constant 0 : i32
    return %arg0, %arg1, %c0_i32 : i32, i32, i32
  }
}

module attributes {stable_mosaic.version = 11 : i64} {
  func.func @_nbr_kernel(%arg0: i32, %arg1: i32, %arg2: memref<1x16x64xbf16, #tpu.memory_space<vmem>>, %arg3: memref<1x8x16x128xbf16, #tpu.memory_space<vmem>>, %arg4: memref<1x8x16x3xf32, #tpu.memory_space<vmem>>, %arg5: memref<1x16x128xf32, #tpu.memory_space<vmem>>, %arg6: memref<3x64xf32, #tpu.memory_space<vmem>>, %arg7: memref<1x64xf32, #tpu.memory_space<vmem>>, %arg8: memref<64x64xbf16, #tpu.memory_space<vmem>>, %arg9: memref<1x64xf32, #tpu.memory_space<vmem>>, %arg10: memref<64x256xbf16, #tpu.memory_space<vmem>>, %arg11: memref<1x256xf32, #tpu.memory_space<vmem>>, %arg12: memref<256x128xbf16, #tpu.memory_space<vmem>>, %arg13: memref<1x128xf32, #tpu.memory_space<vmem>>, %arg14: memref<128x256xbf16, #tpu.memory_space<vmem>>, %arg15: memref<1x256xf32, #tpu.memory_space<vmem>>, %arg16: memref<1x16x256xf32, #tpu.memory_space<vmem>>) attributes {dimension_semantics = [#tpu.dimension_semantics<parallel>, #tpu.dimension_semantics<parallel>], iteration_bounds = array<i64: 2, 1>, scalar_prefetch = 0 : i64, scratch_operands = 0 : i64, tpu.core_type = #tpu.core_type<tc>, window_params = [{transform_indices = @transform_0, window_bounds = array<i64: 1, 16, 64>}, {transform_indices = @transform_1, window_bounds = array<i64: 1, 8, 16, 128>}, {transform_indices = @transform_2, window_bounds = array<i64: 1, 8, 16, 3>}, {transform_indices = @transform_3, window_bounds = array<i64: 1, 16, 128>}, {pipeline_mode = #tpu.pipeline_mode<synchronous>, transform_indices = @transform_4, window_bounds = array<i64: 3, 64>}, {pipeline_mode = #tpu.pipeline_mode<synchronous>, transform_indices = @transform_5, window_bounds = array<i64: 1, 64>}, {pipeline_mode = #tpu.pipeline_mode<synchronous>, transform_indices = @transform_6, window_bounds = array<i64: 64, 64>}, {pipeline_mode = #tpu.pipeline_mode<synchronous>, transform_indices = @transform_7, window_bounds = array<i64: 1, 64>}, {pipeline_mode = #tpu.pipeline_mode<synchronous>, transform_indices = @transform_8, window_bounds = array<i64: 64, 256>}, {pipeline_mode = #tpu.pipeline_mode<synchronous>, transform_indices = @transform_9, window_bounds = array<i64: 1, 256>}, {pipeline_mode = #tpu.pipeline_mode<synchronous>, transform_indices = @transform_10, window_bounds = array<i64: 256, 128>}, {pipeline_mode = #tpu.pipeline_mode<synchronous>, transform_indices = @transform_11, window_bounds = array<i64: 1, 128>}, {pipeline_mode = #tpu.pipeline_mode<synchronous>, transform_indices = @transform_12, window_bounds = array<i64: 128, 256>}, {pipeline_mode = #tpu.pipeline_mode<synchronous>, transform_indices = @transform_13, window_bounds = array<i64: 1, 256>}, {transform_indices = @transform_14, window_bounds = array<i64: 1, 16, 256>}]} {
    %c0 = arith.constant 0 : index
    %c0_0 = arith.constant 0 : index
    %c0_1 = arith.constant 0 : index
    %0 = vector.load %arg2[%c0, %c0_0, %c0_1] : memref<1x16x64xbf16, #tpu.memory_space<vmem>>, vector<1x16x64xbf16>
    %1 = vector.shape_cast %0 : vector<1x16x64xbf16> to vector<16x64xbf16>
    %2 = arith.extf %1 : vector<16x64xbf16> to vector<16x64xf32>
    %c0_2 = arith.constant 0 : index
    %c0_3 = arith.constant 0 : index
    %c0_4 = arith.constant 0 : index
    %3 = vector.load %arg5[%c0_2, %c0_3, %c0_4] : memref<1x16x128xf32, #tpu.memory_space<vmem>>, vector<1x16x128xf32>
    %4 = vector.shape_cast %3 : vector<1x16x128xf32> to vector<16x128xf32>
    %c0_5 = arith.constant 0 : index
    %c0_6 = arith.constant 0 : index
    %5 = vector.load %arg6[%c0_5, %c0_6] : memref<3x64xf32, #tpu.memory_space<vmem>>, vector<3x64xf32>
    %6 = vector.extract_strided_slice %5 {offsets = [0, 0], sizes = [1, 64], strides = [1, 1]} : vector<3x64xf32> to vector<1x64xf32>
    %7 = vector.extract_strided_slice %5 {offsets = [1, 0], sizes = [1, 64], strides = [1, 1]} : vector<3x64xf32> to vector<1x64xf32>
    %8 = vector.extract_strided_slice %5 {offsets = [2, 0], sizes = [1, 64], strides = [1, 1]} : vector<3x64xf32> to vector<1x64xf32>
    %c0_7 = arith.constant 0 : index
    %c0_8 = arith.constant 0 : index
    %9 = vector.load %arg7[%c0_7, %c0_8] : memref<1x64xf32, #tpu.memory_space<vmem>>, vector<1x64xf32>
    %cst = arith.constant 0.000000e+00 : f32
    %10 = vector.broadcast %cst : f32 to vector<16x128xf32>
    %c0_9 = arith.constant 0 : index
    %c0_10 = arith.constant 0 : index
    %c0_11 = arith.constant 0 : index
    %c0_12 = arith.constant 0 : index
    %11 = vector.load %arg3[%c0_9, %c0_10, %c0_11, %c0_12] : memref<1x8x16x128xbf16, #tpu.memory_space<vmem>>, vector<1x1x16x128xbf16>
    %12 = vector.shape_cast %11 : vector<1x1x16x128xbf16> to vector<16x128xbf16>
    %13 = vector.extract_strided_slice %12 {offsets = [0, 0], sizes = [16, 64], strides = [1, 1]} : vector<16x128xbf16> to vector<16x64xbf16>
    %14 = arith.extf %13 : vector<16x64xbf16> to vector<16x64xf32>
    %15 = vector.extract_strided_slice %12 {offsets = [0, 64], sizes = [16, 64], strides = [1, 1]} : vector<16x128xbf16> to vector<16x64xbf16>
    %16 = arith.extf %15 : vector<16x64xbf16> to vector<16x64xf32>
    %c0_13 = arith.constant 0 : index
    %c0_14 = arith.constant 0 : index
    %c0_15 = arith.constant 0 : index
    %c0_16 = arith.constant 0 : index
    %17 = vector.load %arg4[%c0_13, %c0_14, %c0_15, %c0_16] : memref<1x8x16x3xf32, #tpu.memory_space<vmem>>, vector<1x1x16x3xf32>
    %18 = vector.shape_cast %17 : vector<1x1x16x3xf32> to vector<16x3xf32>
    %19 = vector.extract_strided_slice %18 {offsets = [0, 0], sizes = [16, 1], strides = [1, 1]} : vector<16x3xf32> to vector<16x1xf32>
    %20 = vector.broadcast %19 : vector<16x1xf32> to vector<16x64xf32>
    %21 = vector.broadcast %6 : vector<1x64xf32> to vector<16x64xf32>
    %22 = arith.mulf %20, %21 : vector<16x64xf32>
    %23 = vector.extract_strided_slice %18 {offsets = [0, 1], sizes = [16, 1], strides = [1, 1]} : vector<16x3xf32> to vector<16x1xf32>
    %24 = vector.broadcast %23 : vector<16x1xf32> to vector<16x64xf32>
    %25 = vector.broadcast %7 : vector<1x64xf32> to vector<16x64xf32>
    %26 = arith.mulf %24, %25 : vector<16x64xf32>
    %27 = arith.addf %22, %26 : vector<16x64xf32>
    %28 = vector.extract_strided_slice %18 {offsets = [0, 2], sizes = [16, 1], strides = [1, 1]} : vector<16x3xf32> to vector<16x1xf32>
    %29 = vector.broadcast %28 : vector<16x1xf32> to vector<16x64xf32>
    %30 = vector.broadcast %8 : vector<1x64xf32> to vector<16x64xf32>
    %31 = arith.mulf %29, %30 : vector<16x64xf32>
    %32 = arith.addf %27, %31 : vector<16x64xf32>
    %33 = vector.broadcast %9 : vector<1x64xf32> to vector<16x64xf32>
    %34 = arith.addf %32, %33 : vector<16x64xf32>
    %cst_17 = arith.constant 0.000000e+00 : f32
    %35 = vector.broadcast %cst_17 : f32 to vector<16x64xf32>
    %36 = arith.maximumf %34, %35 : vector<16x64xf32>
    %c0_18 = arith.constant 0 : index
    %c0_19 = arith.constant 0 : index
    %37 = vector.load %arg8[%c0_18, %c0_19] : memref<64x64xbf16, #tpu.memory_space<vmem>>, vector<64x64xbf16>
    %38 = arith.truncf %36 : vector<16x64xf32> to vector<16x64xbf16>
    %cst_20 = arith.constant dense<0.000000e+00> : vector<16x64xf32>
    %39 = tpu.matmul %38, %37, %cst_20 {dimension_numbers = #tpu.dot_dimension_numbers<[1], [0], [0], [1], [0, 0, 1, 1], [], []>} : vector<16x64xbf16>, vector<64x64xbf16>, vector<16x64xf32> -> vector<16x64xf32>
    %c0_21 = arith.constant 0 : index
    %c0_22 = arith.constant 0 : index
    %40 = vector.load %arg9[%c0_21, %c0_22] : memref<1x64xf32, #tpu.memory_space<vmem>>, vector<1x64xf32>
    %41 = vector.broadcast %40 : vector<1x64xf32> to vector<16x64xf32>
    %42 = arith.addf %39, %41 : vector<16x64xf32>
    %43 = arith.subf %2, %14 : vector<16x64xf32>
    %44 = arith.addf %43, %42 : vector<16x64xf32>
    %c0_23 = arith.constant 0 : index
    %c0_24 = arith.constant 0 : index
    %45 = vector.load %arg10[%c0_23, %c0_24] : memref<64x256xbf16, #tpu.memory_space<vmem>>, vector<64x256xbf16>
    %46 = arith.truncf %44 : vector<16x64xf32> to vector<16x64xbf16>
    %cst_25 = arith.constant dense<0.000000e+00> : vector<16x256xf32>
    %47 = tpu.matmul %46, %45, %cst_25 {dimension_numbers = #tpu.dot_dimension_numbers<[1], [0], [0], [1], [0, 0, 1, 1], [], []>} : vector<16x64xbf16>, vector<64x256xbf16>, vector<16x256xf32> -> vector<16x256xf32>
    %c0_26 = arith.constant 0 : index
    %c0_27 = arith.constant 0 : index
    %48 = vector.load %arg11[%c0_26, %c0_27] : memref<1x256xf32, #tpu.memory_space<vmem>>, vector<1x256xf32>
    %49 = vector.broadcast %48 : vector<1x256xf32> to vector<16x256xf32>
    %50 = arith.addf %47, %49 : vector<16x256xf32>
    %cst_28 = arith.constant 0.000000e+00 : f32
    %51 = vector.broadcast %cst_28 : f32 to vector<16x256xf32>
    %52 = arith.maximumf %50, %51 : vector<16x256xf32>
    %c0_29 = arith.constant 0 : index
    %c0_30 = arith.constant 0 : index
    %53 = vector.load %arg12[%c0_29, %c0_30] : memref<256x128xbf16, #tpu.memory_space<vmem>>, vector<256x128xbf16>
    %54 = arith.truncf %52 : vector<16x256xf32> to vector<16x256xbf16>
    %cst_31 = arith.constant dense<0.000000e+00> : vector<16x128xf32>
    %55 = tpu.matmul %54, %53, %cst_31 {dimension_numbers = #tpu.dot_dimension_numbers<[1], [0], [0], [1], [0, 0, 1, 1], [], []>} : vector<16x256xbf16>, vector<256x128xbf16>, vector<16x128xf32> -> vector<16x128xf32>
    %c0_32 = arith.constant 0 : index
    %c0_33 = arith.constant 0 : index
    %56 = vector.load %arg13[%c0_32, %c0_33] : memref<1x128xf32, #tpu.memory_space<vmem>>, vector<1x128xf32>
    %57 = vector.broadcast %56 : vector<1x128xf32> to vector<16x128xf32>
    %58 = arith.addf %55, %57 : vector<16x128xf32>
    %59 = arith.addf %16, %42 : vector<16x64xf32>
    %60 = tpu.concatenate %59, %59 in 1 : vector<16x64xf32>, vector<16x64xf32> -> vector<16x128xf32>
    %61 = arith.mulf %58, %60 : vector<16x128xf32>
    %62 = arith.addf %10, %61 : vector<16x128xf32>
    %c0_34 = arith.constant 0 : index
    %c1 = arith.constant 1 : index
    %c0_35 = arith.constant 0 : index
    %c0_36 = arith.constant 0 : index
    %63 = vector.load %arg3[%c0_34, %c1, %c0_35, %c0_36] : memref<1x8x16x128xbf16, #tpu.memory_space<vmem>>, vector<1x1x16x128xbf16>
    %64 = vector.shape_cast %63 : vector<1x1x16x128xbf16> to vector<16x128xbf16>
    %65 = vector.extract_strided_slice %64 {offsets = [0, 0], sizes = [16, 64], strides = [1, 1]} : vector<16x128xbf16> to vector<16x64xbf16>
    %66 = arith.extf %65 : vector<16x64xbf16> to vector<16x64xf32>
    %67 = vector.extract_strided_slice %64 {offsets = [0, 64], sizes = [16, 64], strides = [1, 1]} : vector<16x128xbf16> to vector<16x64xbf16>
    %68 = arith.extf %67 : vector<16x64xbf16> to vector<16x64xf32>
    %c0_37 = arith.constant 0 : index
    %c1_38 = arith.constant 1 : index
    %c0_39 = arith.constant 0 : index
    %c0_40 = arith.constant 0 : index
    %69 = vector.load %arg4[%c0_37, %c1_38, %c0_39, %c0_40] : memref<1x8x16x3xf32, #tpu.memory_space<vmem>>, vector<1x1x16x3xf32>
    %70 = vector.shape_cast %69 : vector<1x1x16x3xf32> to vector<16x3xf32>
    %71 = vector.extract_strided_slice %70 {offsets = [0, 0], sizes = [16, 1], strides = [1, 1]} : vector<16x3xf32> to vector<16x1xf32>
    %72 = vector.broadcast %71 : vector<16x1xf32> to vector<16x64xf32>
    %73 = vector.broadcast %6 : vector<1x64xf32> to vector<16x64xf32>
    %74 = arith.mulf %72, %73 : vector<16x64xf32>
    %75 = vector.extract_strided_slice %70 {offsets = [0, 1], sizes = [16, 1], strides = [1, 1]} : vector<16x3xf32> to vector<16x1xf32>
    %76 = vector.broadcast %75 : vector<16x1xf32> to vector<16x64xf32>
    %77 = vector.broadcast %7 : vector<1x64xf32> to vector<16x64xf32>
    %78 = arith.mulf %76, %77 : vector<16x64xf32>
    %79 = arith.addf %74, %78 : vector<16x64xf32>
    %80 = vector.extract_strided_slice %70 {offsets = [0, 2], sizes = [16, 1], strides = [1, 1]} : vector<16x3xf32> to vector<16x1xf32>
    %81 = vector.broadcast %80 : vector<16x1xf32> to vector<16x64xf32>
    %82 = vector.broadcast %8 : vector<1x64xf32> to vector<16x64xf32>
    %83 = arith.mulf %81, %82 : vector<16x64xf32>
    %84 = arith.addf %79, %83 : vector<16x64xf32>
    %85 = vector.broadcast %9 : vector<1x64xf32> to vector<16x64xf32>
    %86 = arith.addf %84, %85 : vector<16x64xf32>
    %cst_41 = arith.constant 0.000000e+00 : f32
    %87 = vector.broadcast %cst_41 : f32 to vector<16x64xf32>
    %88 = arith.maximumf %86, %87 : vector<16x64xf32>
    %c0_42 = arith.constant 0 : index
    %c0_43 = arith.constant 0 : index
    %89 = vector.load %arg8[%c0_42, %c0_43] : memref<64x64xbf16, #tpu.memory_space<vmem>>, vector<64x64xbf16>
    %90 = arith.truncf %88 : vector<16x64xf32> to vector<16x64xbf16>
    %cst_44 = arith.constant dense<0.000000e+00> : vector<16x64xf32>
    %91 = tpu.matmul %90, %89, %cst_44 {dimension_numbers = #tpu.dot_dimension_numbers<[1], [0], [0], [1], [0, 0, 1, 1], [], []>} : vector<16x64xbf16>, vector<64x64xbf16>, vector<16x64xf32> -> vector<16x64xf32>
    %c0_45 = arith.constant 0 : index
    %c0_46 = arith.constant 0 : index
    %92 = vector.load %arg9[%c0_45, %c0_46] : memref<1x64xf32, #tpu.memory_space<vmem>>, vector<1x64xf32>
    %93 = vector.broadcast %92 : vector<1x64xf32> to vector<16x64xf32>
    %94 = arith.addf %91, %93 : vector<16x64xf32>
    %95 = arith.subf %2, %66 : vector<16x64xf32>
    %96 = arith.addf %95, %94 : vector<16x64xf32>
    %c0_47 = arith.constant 0 : index
    %c0_48 = arith.constant 0 : index
    %97 = vector.load %arg10[%c0_47, %c0_48] : memref<64x256xbf16, #tpu.memory_space<vmem>>, vector<64x256xbf16>
    %98 = arith.truncf %96 : vector<16x64xf32> to vector<16x64xbf16>
    %cst_49 = arith.constant dense<0.000000e+00> : vector<16x256xf32>
    %99 = tpu.matmul %98, %97, %cst_49 {dimension_numbers = #tpu.dot_dimension_numbers<[1], [0], [0], [1], [0, 0, 1, 1], [], []>} : vector<16x64xbf16>, vector<64x256xbf16>, vector<16x256xf32> -> vector<16x256xf32>
    %c0_50 = arith.constant 0 : index
    %c0_51 = arith.constant 0 : index
    %100 = vector.load %arg11[%c0_50, %c0_51] : memref<1x256xf32, #tpu.memory_space<vmem>>, vector<1x256xf32>
    %101 = vector.broadcast %100 : vector<1x256xf32> to vector<16x256xf32>
    %102 = arith.addf %99, %101 : vector<16x256xf32>
    %cst_52 = arith.constant 0.000000e+00 : f32
    %103 = vector.broadcast %cst_52 : f32 to vector<16x256xf32>
    %104 = arith.maximumf %102, %103 : vector<16x256xf32>
    %c0_53 = arith.constant 0 : index
    %c0_54 = arith.constant 0 : index
    %105 = vector.load %arg12[%c0_53, %c0_54] : memref<256x128xbf16, #tpu.memory_space<vmem>>, vector<256x128xbf16>
    %106 = arith.truncf %104 : vector<16x256xf32> to vector<16x256xbf16>
    %cst_55 = arith.constant dense<0.000000e+00> : vector<16x128xf32>
    %107 = tpu.matmul %106, %105, %cst_55 {dimension_numbers = #tpu.dot_dimension_numbers<[1], [0], [0], [1], [0, 0, 1, 1], [], []>} : vector<16x256xbf16>, vector<256x128xbf16>, vector<16x128xf32> -> vector<16x128xf32>
    %c0_56 = arith.constant 0 : index
    %c0_57 = arith.constant 0 : index
    %108 = vector.load %arg13[%c0_56, %c0_57] : memref<1x128xf32, #tpu.memory_space<vmem>>, vector<1x128xf32>
    %109 = vector.broadcast %108 : vector<1x128xf32> to vector<16x128xf32>
    %110 = arith.addf %107, %109 : vector<16x128xf32>
    %111 = arith.addf %68, %94 : vector<16x64xf32>
    %112 = tpu.concatenate %111, %111 in 1 : vector<16x64xf32>, vector<16x64xf32> -> vector<16x128xf32>
    %113 = arith.mulf %110, %112 : vector<16x128xf32>
    %114 = arith.addf %62, %113 : vector<16x128xf32>
    %c0_58 = arith.constant 0 : index
    %c2 = arith.constant 2 : index
    %c0_59 = arith.constant 0 : index
    %c0_60 = arith.constant 0 : index
    %115 = vector.load %arg3[%c0_58, %c2, %c0_59, %c0_60] : memref<1x8x16x128xbf16, #tpu.memory_space<vmem>>, vector<1x1x16x128xbf16>
    %116 = vector.shape_cast %115 : vector<1x1x16x128xbf16> to vector<16x128xbf16>
    %117 = vector.extract_strided_slice %116 {offsets = [0, 0], sizes = [16, 64], strides = [1, 1]} : vector<16x128xbf16> to vector<16x64xbf16>
    %118 = arith.extf %117 : vector<16x64xbf16> to vector<16x64xf32>
    %119 = vector.extract_strided_slice %116 {offsets = [0, 64], sizes = [16, 64], strides = [1, 1]} : vector<16x128xbf16> to vector<16x64xbf16>
    %120 = arith.extf %119 : vector<16x64xbf16> to vector<16x64xf32>
    %c0_61 = arith.constant 0 : index
    %c2_62 = arith.constant 2 : index
    %c0_63 = arith.constant 0 : index
    %c0_64 = arith.constant 0 : index
    %121 = vector.load %arg4[%c0_61, %c2_62, %c0_63, %c0_64] : memref<1x8x16x3xf32, #tpu.memory_space<vmem>>, vector<1x1x16x3xf32>
    %122 = vector.shape_cast %121 : vector<1x1x16x3xf32> to vector<16x3xf32>
    %123 = vector.extract_strided_slice %122 {offsets = [0, 0], sizes = [16, 1], strides = [1, 1]} : vector<16x3xf32> to vector<16x1xf32>
    %124 = vector.broadcast %123 : vector<16x1xf32> to vector<16x64xf32>
    %125 = vector.broadcast %6 : vector<1x64xf32> to vector<16x64xf32>
    %126 = arith.mulf %124, %125 : vector<16x64xf32>
    %127 = vector.extract_strided_slice %122 {offsets = [0, 1], sizes = [16, 1], strides = [1, 1]} : vector<16x3xf32> to vector<16x1xf32>
    %128 = vector.broadcast %127 : vector<16x1xf32> to vector<16x64xf32>
    %129 = vector.broadcast %7 : vector<1x64xf32> to vector<16x64xf32>
    %130 = arith.mulf %128, %129 : vector<16x64xf32>
    %131 = arith.addf %126, %130 : vector<16x64xf32>
    %132 = vector.extract_strided_slice %122 {offsets = [0, 2], sizes = [16, 1], strides = [1, 1]} : vector<16x3xf32> to vector<16x1xf32>
    %133 = vector.broadcast %132 : vector<16x1xf32> to vector<16x64xf32>
    %134 = vector.broadcast %8 : vector<1x64xf32> to vector<16x64xf32>
    %135 = arith.mulf %133, %134 : vector<16x64xf32>
    %136 = arith.addf %131, %135 : vector<16x64xf32>
    %137 = vector.broadcast %9 : vector<1x64xf32> to vector<16x64xf32>
    %138 = arith.addf %136, %137 : vector<16x64xf32>
    %cst_65 = arith.constant 0.000000e+00 : f32
    %139 = vector.broadcast %cst_65 : f32 to vector<16x64xf32>
    %140 = arith.maximumf %138, %139 : vector<16x64xf32>
    %c0_66 = arith.constant 0 : index
    %c0_67 = arith.constant 0 : index
    %141 = vector.load %arg8[%c0_66, %c0_67] : memref<64x64xbf16, #tpu.memory_space<vmem>>, vector<64x64xbf16>
    %142 = arith.truncf %140 : vector<16x64xf32> to vector<16x64xbf16>
    %cst_68 = arith.constant dense<0.000000e+00> : vector<16x64xf32>
    %143 = tpu.matmul %142, %141, %cst_68 {dimension_numbers = #tpu.dot_dimension_numbers<[1], [0], [0], [1], [0, 0, 1, 1], [], []>} : vector<16x64xbf16>, vector<64x64xbf16>, vector<16x64xf32> -> vector<16x64xf32>
    %c0_69 = arith.constant 0 : index
    %c0_70 = arith.constant 0 : index
    %144 = vector.load %arg9[%c0_69, %c0_70] : memref<1x64xf32, #tpu.memory_space<vmem>>, vector<1x64xf32>
    %145 = vector.broadcast %144 : vector<1x64xf32> to vector<16x64xf32>
    %146 = arith.addf %143, %145 : vector<16x64xf32>
    %147 = arith.subf %2, %118 : vector<16x64xf32>
    %148 = arith.addf %147, %146 : vector<16x64xf32>
    %c0_71 = arith.constant 0 : index
    %c0_72 = arith.constant 0 : index
    %149 = vector.load %arg10[%c0_71, %c0_72] : memref<64x256xbf16, #tpu.memory_space<vmem>>, vector<64x256xbf16>
    %150 = arith.truncf %148 : vector<16x64xf32> to vector<16x64xbf16>
    %cst_73 = arith.constant dense<0.000000e+00> : vector<16x256xf32>
    %151 = tpu.matmul %150, %149, %cst_73 {dimension_numbers = #tpu.dot_dimension_numbers<[1], [0], [0], [1], [0, 0, 1, 1], [], []>} : vector<16x64xbf16>, vector<64x256xbf16>, vector<16x256xf32> -> vector<16x256xf32>
    %c0_74 = arith.constant 0 : index
    %c0_75 = arith.constant 0 : index
    %152 = vector.load %arg11[%c0_74, %c0_75] : memref<1x256xf32, #tpu.memory_space<vmem>>, vector<1x256xf32>
    %153 = vector.broadcast %152 : vector<1x256xf32> to vector<16x256xf32>
    %154 = arith.addf %151, %153 : vector<16x256xf32>
    %cst_76 = arith.constant 0.000000e+00 : f32
    %155 = vector.broadcast %cst_76 : f32 to vector<16x256xf32>
    %156 = arith.maximumf %154, %155 : vector<16x256xf32>
    %c0_77 = arith.constant 0 : index
    %c0_78 = arith.constant 0 : index
    %157 = vector.load %arg12[%c0_77, %c0_78] : memref<256x128xbf16, #tpu.memory_space<vmem>>, vector<256x128xbf16>
    %158 = arith.truncf %156 : vector<16x256xf32> to vector<16x256xbf16>
    %cst_79 = arith.constant dense<0.000000e+00> : vector<16x128xf32>
    %159 = tpu.matmul %158, %157, %cst_79 {dimension_numbers = #tpu.dot_dimension_numbers<[1], [0], [0], [1], [0, 0, 1, 1], [], []>} : vector<16x256xbf16>, vector<256x128xbf16>, vector<16x128xf32> -> vector<16x128xf32>
    %c0_80 = arith.constant 0 : index
    %c0_81 = arith.constant 0 : index
    %160 = vector.load %arg13[%c0_80, %c0_81] : memref<1x128xf32, #tpu.memory_space<vmem>>, vector<1x128xf32>
    %161 = vector.broadcast %160 : vector<1x128xf32> to vector<16x128xf32>
    %162 = arith.addf %159, %161 : vector<16x128xf32>
    %163 = arith.addf %120, %146 : vector<16x64xf32>
    %164 = tpu.concatenate %163, %163 in 1 : vector<16x64xf32>, vector<16x64xf32> -> vector<16x128xf32>
    %165 = arith.mulf %162, %164 : vector<16x128xf32>
    %166 = arith.addf %114, %165 : vector<16x128xf32>
    %c0_82 = arith.constant 0 : index
    %c3 = arith.constant 3 : index
    %c0_83 = arith.constant 0 : index
    %c0_84 = arith.constant 0 : index
    %167 = vector.load %arg3[%c0_82, %c3, %c0_83, %c0_84] : memref<1x8x16x128xbf16, #tpu.memory_space<vmem>>, vector<1x1x16x128xbf16>
    %168 = vector.shape_cast %167 : vector<1x1x16x128xbf16> to vector<16x128xbf16>
    %169 = vector.extract_strided_slice %168 {offsets = [0, 0], sizes = [16, 64], strides = [1, 1]} : vector<16x128xbf16> to vector<16x64xbf16>
    %170 = arith.extf %169 : vector<16x64xbf16> to vector<16x64xf32>
    %171 = vector.extract_strided_slice %168 {offsets = [0, 64], sizes = [16, 64], strides = [1, 1]} : vector<16x128xbf16> to vector<16x64xbf16>
    %172 = arith.extf %171 : vector<16x64xbf16> to vector<16x64xf32>
    %c0_85 = arith.constant 0 : index
    %c3_86 = arith.constant 3 : index
    %c0_87 = arith.constant 0 : index
    %c0_88 = arith.constant 0 : index
    %173 = vector.load %arg4[%c0_85, %c3_86, %c0_87, %c0_88] : memref<1x8x16x3xf32, #tpu.memory_space<vmem>>, vector<1x1x16x3xf32>
    %174 = vector.shape_cast %173 : vector<1x1x16x3xf32> to vector<16x3xf32>
    %175 = vector.extract_strided_slice %174 {offsets = [0, 0], sizes = [16, 1], strides = [1, 1]} : vector<16x3xf32> to vector<16x1xf32>
    %176 = vector.broadcast %175 : vector<16x1xf32> to vector<16x64xf32>
    %177 = vector.broadcast %6 : vector<1x64xf32> to vector<16x64xf32>
    %178 = arith.mulf %176, %177 : vector<16x64xf32>
    %179 = vector.extract_strided_slice %174 {offsets = [0, 1], sizes = [16, 1], strides = [1, 1]} : vector<16x3xf32> to vector<16x1xf32>
    %180 = vector.broadcast %179 : vector<16x1xf32> to vector<16x64xf32>
    %181 = vector.broadcast %7 : vector<1x64xf32> to vector<16x64xf32>
    %182 = arith.mulf %180, %181 : vector<16x64xf32>
    %183 = arith.addf %178, %182 : vector<16x64xf32>
    %184 = vector.extract_strided_slice %174 {offsets = [0, 2], sizes = [16, 1], strides = [1, 1]} : vector<16x3xf32> to vector<16x1xf32>
    %185 = vector.broadcast %184 : vector<16x1xf32> to vector<16x64xf32>
    %186 = vector.broadcast %8 : vector<1x64xf32> to vector<16x64xf32>
    %187 = arith.mulf %185, %186 : vector<16x64xf32>
    %188 = arith.addf %183, %187 : vector<16x64xf32>
    %189 = vector.broadcast %9 : vector<1x64xf32> to vector<16x64xf32>
    %190 = arith.addf %188, %189 : vector<16x64xf32>
    %cst_89 = arith.constant 0.000000e+00 : f32
    %191 = vector.broadcast %cst_89 : f32 to vector<16x64xf32>
    %192 = arith.maximumf %190, %191 : vector<16x64xf32>
    %c0_90 = arith.constant 0 : index
    %c0_91 = arith.constant 0 : index
    %193 = vector.load %arg8[%c0_90, %c0_91] : memref<64x64xbf16, #tpu.memory_space<vmem>>, vector<64x64xbf16>
    %194 = arith.truncf %192 : vector<16x64xf32> to vector<16x64xbf16>
    %cst_92 = arith.constant dense<0.000000e+00> : vector<16x64xf32>
    %195 = tpu.matmul %194, %193, %cst_92 {dimension_numbers = #tpu.dot_dimension_numbers<[1], [0], [0], [1], [0, 0, 1, 1], [], []>} : vector<16x64xbf16>, vector<64x64xbf16>, vector<16x64xf32> -> vector<16x64xf32>
    %c0_93 = arith.constant 0 : index
    %c0_94 = arith.constant 0 : index
    %196 = vector.load %arg9[%c0_93, %c0_94] : memref<1x64xf32, #tpu.memory_space<vmem>>, vector<1x64xf32>
    %197 = vector.broadcast %196 : vector<1x64xf32> to vector<16x64xf32>
    %198 = arith.addf %195, %197 : vector<16x64xf32>
    %199 = arith.subf %2, %170 : vector<16x64xf32>
    %200 = arith.addf %199, %198 : vector<16x64xf32>
    %c0_95 = arith.constant 0 : index
    %c0_96 = arith.constant 0 : index
    %201 = vector.load %arg10[%c0_95, %c0_96] : memref<64x256xbf16, #tpu.memory_space<vmem>>, vector<64x256xbf16>
    %202 = arith.truncf %200 : vector<16x64xf32> to vector<16x64xbf16>
    %cst_97 = arith.constant dense<0.000000e+00> : vector<16x256xf32>
    %203 = tpu.matmul %202, %201, %cst_97 {dimension_numbers = #tpu.dot_dimension_numbers<[1], [0], [0], [1], [0, 0, 1, 1], [], []>} : vector<16x64xbf16>, vector<64x256xbf16>, vector<16x256xf32> -> vector<16x256xf32>
    %c0_98 = arith.constant 0 : index
    %c0_99 = arith.constant 0 : index
    %204 = vector.load %arg11[%c0_98, %c0_99] : memref<1x256xf32, #tpu.memory_space<vmem>>, vector<1x256xf32>
    %205 = vector.broadcast %204 : vector<1x256xf32> to vector<16x256xf32>
    %206 = arith.addf %203, %205 : vector<16x256xf32>
    %cst_100 = arith.constant 0.000000e+00 : f32
    %207 = vector.broadcast %cst_100 : f32 to vector<16x256xf32>
    %208 = arith.maximumf %206, %207 : vector<16x256xf32>
    %c0_101 = arith.constant 0 : index
    %c0_102 = arith.constant 0 : index
    %209 = vector.load %arg12[%c0_101, %c0_102] : memref<256x128xbf16, #tpu.memory_space<vmem>>, vector<256x128xbf16>
    %210 = arith.truncf %208 : vector<16x256xf32> to vector<16x256xbf16>
    %cst_103 = arith.constant dense<0.000000e+00> : vector<16x128xf32>
    %211 = tpu.matmul %210, %209, %cst_103 {dimension_numbers = #tpu.dot_dimension_numbers<[1], [0], [0], [1], [0, 0, 1, 1], [], []>} : vector<16x256xbf16>, vector<256x128xbf16>, vector<16x128xf32> -> vector<16x128xf32>
    %c0_104 = arith.constant 0 : index
    %c0_105 = arith.constant 0 : index
    %212 = vector.load %arg13[%c0_104, %c0_105] : memref<1x128xf32, #tpu.memory_space<vmem>>, vector<1x128xf32>
    %213 = vector.broadcast %212 : vector<1x128xf32> to vector<16x128xf32>
    %214 = arith.addf %211, %213 : vector<16x128xf32>
    %215 = arith.addf %172, %198 : vector<16x64xf32>
    %216 = tpu.concatenate %215, %215 in 1 : vector<16x64xf32>, vector<16x64xf32> -> vector<16x128xf32>
    %217 = arith.mulf %214, %216 : vector<16x128xf32>
    %218 = arith.addf %166, %217 : vector<16x128xf32>
    %c0_106 = arith.constant 0 : index
    %c4 = arith.constant 4 : index
    %c0_107 = arith.constant 0 : index
    %c0_108 = arith.constant 0 : index
    %219 = vector.load %arg3[%c0_106, %c4, %c0_107, %c0_108] : memref<1x8x16x128xbf16, #tpu.memory_space<vmem>>, vector<1x1x16x128xbf16>
    %220 = vector.shape_cast %219 : vector<1x1x16x128xbf16> to vector<16x128xbf16>
    %221 = vector.extract_strided_slice %220 {offsets = [0, 0], sizes = [16, 64], strides = [1, 1]} : vector<16x128xbf16> to vector<16x64xbf16>
    %222 = arith.extf %221 : vector<16x64xbf16> to vector<16x64xf32>
    %223 = vector.extract_strided_slice %220 {offsets = [0, 64], sizes = [16, 64], strides = [1, 1]} : vector<16x128xbf16> to vector<16x64xbf16>
    %224 = arith.extf %223 : vector<16x64xbf16> to vector<16x64xf32>
    %c0_109 = arith.constant 0 : index
    %c4_110 = arith.constant 4 : index
    %c0_111 = arith.constant 0 : index
    %c0_112 = arith.constant 0 : index
    %225 = vector.load %arg4[%c0_109, %c4_110, %c0_111, %c0_112] : memref<1x8x16x3xf32, #tpu.memory_space<vmem>>, vector<1x1x16x3xf32>
    %226 = vector.shape_cast %225 : vector<1x1x16x3xf32> to vector<16x3xf32>
    %227 = vector.extract_strided_slice %226 {offsets = [0, 0], sizes = [16, 1], strides = [1, 1]} : vector<16x3xf32> to vector<16x1xf32>
    %228 = vector.broadcast %227 : vector<16x1xf32> to vector<16x64xf32>
    %229 = vector.broadcast %6 : vector<1x64xf32> to vector<16x64xf32>
    %230 = arith.mulf %228, %229 : vector<16x64xf32>
    %231 = vector.extract_strided_slice %226 {offsets = [0, 1], sizes = [16, 1], strides = [1, 1]} : vector<16x3xf32> to vector<16x1xf32>
    %232 = vector.broadcast %231 : vector<16x1xf32> to vector<16x64xf32>
    %233 = vector.broadcast %7 : vector<1x64xf32> to vector<16x64xf32>
    %234 = arith.mulf %232, %233 : vector<16x64xf32>
    %235 = arith.addf %230, %234 : vector<16x64xf32>
    %236 = vector.extract_strided_slice %226 {offsets = [0, 2], sizes = [16, 1], strides = [1, 1]} : vector<16x3xf32> to vector<16x1xf32>
    %237 = vector.broadcast %236 : vector<16x1xf32> to vector<16x64xf32>
    %238 = vector.broadcast %8 : vector<1x64xf32> to vector<16x64xf32>
    %239 = arith.mulf %237, %238 : vector<16x64xf32>
    %240 = arith.addf %235, %239 : vector<16x64xf32>
    %241 = vector.broadcast %9 : vector<1x64xf32> to vector<16x64xf32>
    %242 = arith.addf %240, %241 : vector<16x64xf32>
    %cst_113 = arith.constant 0.000000e+00 : f32
    %243 = vector.broadcast %cst_113 : f32 to vector<16x64xf32>
    %244 = arith.maximumf %242, %243 : vector<16x64xf32>
    %c0_114 = arith.constant 0 : index
    %c0_115 = arith.constant 0 : index
    %245 = vector.load %arg8[%c0_114, %c0_115] : memref<64x64xbf16, #tpu.memory_space<vmem>>, vector<64x64xbf16>
    %246 = arith.truncf %244 : vector<16x64xf32> to vector<16x64xbf16>
    %cst_116 = arith.constant dense<0.000000e+00> : vector<16x64xf32>
    %247 = tpu.matmul %246, %245, %cst_116 {dimension_numbers = #tpu.dot_dimension_numbers<[1], [0], [0], [1], [0, 0, 1, 1], [], []>} : vector<16x64xbf16>, vector<64x64xbf16>, vector<16x64xf32> -> vector<16x64xf32>
    %c0_117 = arith.constant 0 : index
    %c0_118 = arith.constant 0 : index
    %248 = vector.load %arg9[%c0_117, %c0_118] : memref<1x64xf32, #tpu.memory_space<vmem>>, vector<1x64xf32>
    %249 = vector.broadcast %248 : vector<1x64xf32> to vector<16x64xf32>
    %250 = arith.addf %247, %249 : vector<16x64xf32>
    %251 = arith.subf %2, %222 : vector<16x64xf32>
    %252 = arith.addf %251, %250 : vector<16x64xf32>
    %c0_119 = arith.constant 0 : index
    %c0_120 = arith.constant 0 : index
    %253 = vector.load %arg10[%c0_119, %c0_120] : memref<64x256xbf16, #tpu.memory_space<vmem>>, vector<64x256xbf16>
    %254 = arith.truncf %252 : vector<16x64xf32> to vector<16x64xbf16>
    %cst_121 = arith.constant dense<0.000000e+00> : vector<16x256xf32>
    %255 = tpu.matmul %254, %253, %cst_121 {dimension_numbers = #tpu.dot_dimension_numbers<[1], [0], [0], [1], [0, 0, 1, 1], [], []>} : vector<16x64xbf16>, vector<64x256xbf16>, vector<16x256xf32> -> vector<16x256xf32>
    %c0_122 = arith.constant 0 : index
    %c0_123 = arith.constant 0 : index
    %256 = vector.load %arg11[%c0_122, %c0_123] : memref<1x256xf32, #tpu.memory_space<vmem>>, vector<1x256xf32>
    %257 = vector.broadcast %256 : vector<1x256xf32> to vector<16x256xf32>
    %258 = arith.addf %255, %257 : vector<16x256xf32>
    %cst_124 = arith.constant 0.000000e+00 : f32
    %259 = vector.broadcast %cst_124 : f32 to vector<16x256xf32>
    %260 = arith.maximumf %258, %259 : vector<16x256xf32>
    %c0_125 = arith.constant 0 : index
    %c0_126 = arith.constant 0 : index
    %261 = vector.load %arg12[%c0_125, %c0_126] : memref<256x128xbf16, #tpu.memory_space<vmem>>, vector<256x128xbf16>
    %262 = arith.truncf %260 : vector<16x256xf32> to vector<16x256xbf16>
    %cst_127 = arith.constant dense<0.000000e+00> : vector<16x128xf32>
    %263 = tpu.matmul %262, %261, %cst_127 {dimension_numbers = #tpu.dot_dimension_numbers<[1], [0], [0], [1], [0, 0, 1, 1], [], []>} : vector<16x256xbf16>, vector<256x128xbf16>, vector<16x128xf32> -> vector<16x128xf32>
    %c0_128 = arith.constant 0 : index
    %c0_129 = arith.constant 0 : index
    %264 = vector.load %arg13[%c0_128, %c0_129] : memref<1x128xf32, #tpu.memory_space<vmem>>, vector<1x128xf32>
    %265 = vector.broadcast %264 : vector<1x128xf32> to vector<16x128xf32>
    %266 = arith.addf %263, %265 : vector<16x128xf32>
    %267 = arith.addf %224, %250 : vector<16x64xf32>
    %268 = tpu.concatenate %267, %267 in 1 : vector<16x64xf32>, vector<16x64xf32> -> vector<16x128xf32>
    %269 = arith.mulf %266, %268 : vector<16x128xf32>
    %270 = arith.addf %218, %269 : vector<16x128xf32>
    %c0_130 = arith.constant 0 : index
    %c5 = arith.constant 5 : index
    %c0_131 = arith.constant 0 : index
    %c0_132 = arith.constant 0 : index
    %271 = vector.load %arg3[%c0_130, %c5, %c0_131, %c0_132] : memref<1x8x16x128xbf16, #tpu.memory_space<vmem>>, vector<1x1x16x128xbf16>
    %272 = vector.shape_cast %271 : vector<1x1x16x128xbf16> to vector<16x128xbf16>
    %273 = vector.extract_strided_slice %272 {offsets = [0, 0], sizes = [16, 64], strides = [1, 1]} : vector<16x128xbf16> to vector<16x64xbf16>
    %274 = arith.extf %273 : vector<16x64xbf16> to vector<16x64xf32>
    %275 = vector.extract_strided_slice %272 {offsets = [0, 64], sizes = [16, 64], strides = [1, 1]} : vector<16x128xbf16> to vector<16x64xbf16>
    %276 = arith.extf %275 : vector<16x64xbf16> to vector<16x64xf32>
    %c0_133 = arith.constant 0 : index
    %c5_134 = arith.constant 5 : index
    %c0_135 = arith.constant 0 : index
    %c0_136 = arith.constant 0 : index
    %277 = vector.load %arg4[%c0_133, %c5_134, %c0_135, %c0_136] : memref<1x8x16x3xf32, #tpu.memory_space<vmem>>, vector<1x1x16x3xf32>
    %278 = vector.shape_cast %277 : vector<1x1x16x3xf32> to vector<16x3xf32>
    %279 = vector.extract_strided_slice %278 {offsets = [0, 0], sizes = [16, 1], strides = [1, 1]} : vector<16x3xf32> to vector<16x1xf32>
    %280 = vector.broadcast %279 : vector<16x1xf32> to vector<16x64xf32>
    %281 = vector.broadcast %6 : vector<1x64xf32> to vector<16x64xf32>
    %282 = arith.mulf %280, %281 : vector<16x64xf32>
    %283 = vector.extract_strided_slice %278 {offsets = [0, 1], sizes = [16, 1], strides = [1, 1]} : vector<16x3xf32> to vector<16x1xf32>
    %284 = vector.broadcast %283 : vector<16x1xf32> to vector<16x64xf32>
    %285 = vector.broadcast %7 : vector<1x64xf32> to vector<16x64xf32>
    %286 = arith.mulf %284, %285 : vector<16x64xf32>
    %287 = arith.addf %282, %286 : vector<16x64xf32>
    %288 = vector.extract_strided_slice %278 {offsets = [0, 2], sizes = [16, 1], strides = [1, 1]} : vector<16x3xf32> to vector<16x1xf32>
    %289 = vector.broadcast %288 : vector<16x1xf32> to vector<16x64xf32>
    %290 = vector.broadcast %8 : vector<1x64xf32> to vector<16x64xf32>
    %291 = arith.mulf %289, %290 : vector<16x64xf32>
    %292 = arith.addf %287, %291 : vector<16x64xf32>
    %293 = vector.broadcast %9 : vector<1x64xf32> to vector<16x64xf32>
    %294 = arith.addf %292, %293 : vector<16x64xf32>
    %cst_137 = arith.constant 0.000000e+00 : f32
    %295 = vector.broadcast %cst_137 : f32 to vector<16x64xf32>
    %296 = arith.maximumf %294, %295 : vector<16x64xf32>
    %c0_138 = arith.constant 0 : index
    %c0_139 = arith.constant 0 : index
    %297 = vector.load %arg8[%c0_138, %c0_139] : memref<64x64xbf16, #tpu.memory_space<vmem>>, vector<64x64xbf16>
    %298 = arith.truncf %296 : vector<16x64xf32> to vector<16x64xbf16>
    %cst_140 = arith.constant dense<0.000000e+00> : vector<16x64xf32>
    %299 = tpu.matmul %298, %297, %cst_140 {dimension_numbers = #tpu.dot_dimension_numbers<[1], [0], [0], [1], [0, 0, 1, 1], [], []>} : vector<16x64xbf16>, vector<64x64xbf16>, vector<16x64xf32> -> vector<16x64xf32>
    %c0_141 = arith.constant 0 : index
    %c0_142 = arith.constant 0 : index
    %300 = vector.load %arg9[%c0_141, %c0_142] : memref<1x64xf32, #tpu.memory_space<vmem>>, vector<1x64xf32>
    %301 = vector.broadcast %300 : vector<1x64xf32> to vector<16x64xf32>
    %302 = arith.addf %299, %301 : vector<16x64xf32>
    %303 = arith.subf %2, %274 : vector<16x64xf32>
    %304 = arith.addf %303, %302 : vector<16x64xf32>
    %c0_143 = arith.constant 0 : index
    %c0_144 = arith.constant 0 : index
    %305 = vector.load %arg10[%c0_143, %c0_144] : memref<64x256xbf16, #tpu.memory_space<vmem>>, vector<64x256xbf16>
    %306 = arith.truncf %304 : vector<16x64xf32> to vector<16x64xbf16>
    %cst_145 = arith.constant dense<0.000000e+00> : vector<16x256xf32>
    %307 = tpu.matmul %306, %305, %cst_145 {dimension_numbers = #tpu.dot_dimension_numbers<[1], [0], [0], [1], [0, 0, 1, 1], [], []>} : vector<16x64xbf16>, vector<64x256xbf16>, vector<16x256xf32> -> vector<16x256xf32>
    %c0_146 = arith.constant 0 : index
    %c0_147 = arith.constant 0 : index
    %308 = vector.load %arg11[%c0_146, %c0_147] : memref<1x256xf32, #tpu.memory_space<vmem>>, vector<1x256xf32>
    %309 = vector.broadcast %308 : vector<1x256xf32> to vector<16x256xf32>
    %310 = arith.addf %307, %309 : vector<16x256xf32>
    %cst_148 = arith.constant 0.000000e+00 : f32
    %311 = vector.broadcast %cst_148 : f32 to vector<16x256xf32>
    %312 = arith.maximumf %310, %311 : vector<16x256xf32>
    %c0_149 = arith.constant 0 : index
    %c0_150 = arith.constant 0 : index
    %313 = vector.load %arg12[%c0_149, %c0_150] : memref<256x128xbf16, #tpu.memory_space<vmem>>, vector<256x128xbf16>
    %314 = arith.truncf %312 : vector<16x256xf32> to vector<16x256xbf16>
    %cst_151 = arith.constant dense<0.000000e+00> : vector<16x128xf32>
    %315 = tpu.matmul %314, %313, %cst_151 {dimension_numbers = #tpu.dot_dimension_numbers<[1], [0], [0], [1], [0, 0, 1, 1], [], []>} : vector<16x256xbf16>, vector<256x128xbf16>, vector<16x128xf32> -> vector<16x128xf32>
    %c0_152 = arith.constant 0 : index
    %c0_153 = arith.constant 0 : index
    %316 = vector.load %arg13[%c0_152, %c0_153] : memref<1x128xf32, #tpu.memory_space<vmem>>, vector<1x128xf32>
    %317 = vector.broadcast %316 : vector<1x128xf32> to vector<16x128xf32>
    %318 = arith.addf %315, %317 : vector<16x128xf32>
    %319 = arith.addf %276, %302 : vector<16x64xf32>
    %320 = tpu.concatenate %319, %319 in 1 : vector<16x64xf32>, vector<16x64xf32> -> vector<16x128xf32>
    %321 = arith.mulf %318, %320 : vector<16x128xf32>
    %322 = arith.addf %270, %321 : vector<16x128xf32>
    %c0_154 = arith.constant 0 : index
    %c6 = arith.constant 6 : index
    %c0_155 = arith.constant 0 : index
    %c0_156 = arith.constant 0 : index
    %323 = vector.load %arg3[%c0_154, %c6, %c0_155, %c0_156] : memref<1x8x16x128xbf16, #tpu.memory_space<vmem>>, vector<1x1x16x128xbf16>
    %324 = vector.shape_cast %323 : vector<1x1x16x128xbf16> to vector<16x128xbf16>
    %325 = vector.extract_strided_slice %324 {offsets = [0, 0], sizes = [16, 64], strides = [1, 1]} : vector<16x128xbf16> to vector<16x64xbf16>
    %326 = arith.extf %325 : vector<16x64xbf16> to vector<16x64xf32>
    %327 = vector.extract_strided_slice %324 {offsets = [0, 64], sizes = [16, 64], strides = [1, 1]} : vector<16x128xbf16> to vector<16x64xbf16>
    %328 = arith.extf %327 : vector<16x64xbf16> to vector<16x64xf32>
    %c0_157 = arith.constant 0 : index
    %c6_158 = arith.constant 6 : index
    %c0_159 = arith.constant 0 : index
    %c0_160 = arith.constant 0 : index
    %329 = vector.load %arg4[%c0_157, %c6_158, %c0_159, %c0_160] : memref<1x8x16x3xf32, #tpu.memory_space<vmem>>, vector<1x1x16x3xf32>
    %330 = vector.shape_cast %329 : vector<1x1x16x3xf32> to vector<16x3xf32>
    %331 = vector.extract_strided_slice %330 {offsets = [0, 0], sizes = [16, 1], strides = [1, 1]} : vector<16x3xf32> to vector<16x1xf32>
    %332 = vector.broadcast %331 : vector<16x1xf32> to vector<16x64xf32>
    %333 = vector.broadcast %6 : vector<1x64xf32> to vector<16x64xf32>
    %334 = arith.mulf %332, %333 : vector<16x64xf32>
    %335 = vector.extract_strided_slice %330 {offsets = [0, 1], sizes = [16, 1], strides = [1, 1]} : vector<16x3xf32> to vector<16x1xf32>
    %336 = vector.broadcast %335 : vector<16x1xf32> to vector<16x64xf32>
    %337 = vector.broadcast %7 : vector<1x64xf32> to vector<16x64xf32>
    %338 = arith.mulf %336, %337 : vector<16x64xf32>
    %339 = arith.addf %334, %338 : vector<16x64xf32>
    %340 = vector.extract_strided_slice %330 {offsets = [0, 2], sizes = [16, 1], strides = [1, 1]} : vector<16x3xf32> to vector<16x1xf32>
    %341 = vector.broadcast %340 : vector<16x1xf32> to vector<16x64xf32>
    %342 = vector.broadcast %8 : vector<1x64xf32> to vector<16x64xf32>
    %343 = arith.mulf %341, %342 : vector<16x64xf32>
    %344 = arith.addf %339, %343 : vector<16x64xf32>
    %345 = vector.broadcast %9 : vector<1x64xf32> to vector<16x64xf32>
    %346 = arith.addf %344, %345 : vector<16x64xf32>
    %cst_161 = arith.constant 0.000000e+00 : f32
    %347 = vector.broadcast %cst_161 : f32 to vector<16x64xf32>
    %348 = arith.maximumf %346, %347 : vector<16x64xf32>
    %c0_162 = arith.constant 0 : index
    %c0_163 = arith.constant 0 : index
    %349 = vector.load %arg8[%c0_162, %c0_163] : memref<64x64xbf16, #tpu.memory_space<vmem>>, vector<64x64xbf16>
    %350 = arith.truncf %348 : vector<16x64xf32> to vector<16x64xbf16>
    %cst_164 = arith.constant dense<0.000000e+00> : vector<16x64xf32>
    %351 = tpu.matmul %350, %349, %cst_164 {dimension_numbers = #tpu.dot_dimension_numbers<[1], [0], [0], [1], [0, 0, 1, 1], [], []>} : vector<16x64xbf16>, vector<64x64xbf16>, vector<16x64xf32> -> vector<16x64xf32>
    %c0_165 = arith.constant 0 : index
    %c0_166 = arith.constant 0 : index
    %352 = vector.load %arg9[%c0_165, %c0_166] : memref<1x64xf32, #tpu.memory_space<vmem>>, vector<1x64xf32>
    %353 = vector.broadcast %352 : vector<1x64xf32> to vector<16x64xf32>
    %354 = arith.addf %351, %353 : vector<16x64xf32>
    %355 = arith.subf %2, %326 : vector<16x64xf32>
    %356 = arith.addf %355, %354 : vector<16x64xf32>
    %c0_167 = arith.constant 0 : index
    %c0_168 = arith.constant 0 : index
    %357 = vector.load %arg10[%c0_167, %c0_168] : memref<64x256xbf16, #tpu.memory_space<vmem>>, vector<64x256xbf16>
    %358 = arith.truncf %356 : vector<16x64xf32> to vector<16x64xbf16>
    %cst_169 = arith.constant dense<0.000000e+00> : vector<16x256xf32>
    %359 = tpu.matmul %358, %357, %cst_169 {dimension_numbers = #tpu.dot_dimension_numbers<[1], [0], [0], [1], [0, 0, 1, 1], [], []>} : vector<16x64xbf16>, vector<64x256xbf16>, vector<16x256xf32> -> vector<16x256xf32>
    %c0_170 = arith.constant 0 : index
    %c0_171 = arith.constant 0 : index
    %360 = vector.load %arg11[%c0_170, %c0_171] : memref<1x256xf32, #tpu.memory_space<vmem>>, vector<1x256xf32>
    %361 = vector.broadcast %360 : vector<1x256xf32> to vector<16x256xf32>
    %362 = arith.addf %359, %361 : vector<16x256xf32>
    %cst_172 = arith.constant 0.000000e+00 : f32
    %363 = vector.broadcast %cst_172 : f32 to vector<16x256xf32>
    %364 = arith.maximumf %362, %363 : vector<16x256xf32>
    %c0_173 = arith.constant 0 : index
    %c0_174 = arith.constant 0 : index
    %365 = vector.load %arg12[%c0_173, %c0_174] : memref<256x128xbf16, #tpu.memory_space<vmem>>, vector<256x128xbf16>
    %366 = arith.truncf %364 : vector<16x256xf32> to vector<16x256xbf16>
    %cst_175 = arith.constant dense<0.000000e+00> : vector<16x128xf32>
    %367 = tpu.matmul %366, %365, %cst_175 {dimension_numbers = #tpu.dot_dimension_numbers<[1], [0], [0], [1], [0, 0, 1, 1], [], []>} : vector<16x256xbf16>, vector<256x128xbf16>, vector<16x128xf32> -> vector<16x128xf32>
    %c0_176 = arith.constant 0 : index
    %c0_177 = arith.constant 0 : index
    %368 = vector.load %arg13[%c0_176, %c0_177] : memref<1x128xf32, #tpu.memory_space<vmem>>, vector<1x128xf32>
    %369 = vector.broadcast %368 : vector<1x128xf32> to vector<16x128xf32>
    %370 = arith.addf %367, %369 : vector<16x128xf32>
    %371 = arith.addf %328, %354 : vector<16x64xf32>
    %372 = tpu.concatenate %371, %371 in 1 : vector<16x64xf32>, vector<16x64xf32> -> vector<16x128xf32>
    %373 = arith.mulf %370, %372 : vector<16x128xf32>
    %374 = arith.addf %322, %373 : vector<16x128xf32>
    %c0_178 = arith.constant 0 : index
    %c7 = arith.constant 7 : index
    %c0_179 = arith.constant 0 : index
    %c0_180 = arith.constant 0 : index
    %375 = vector.load %arg3[%c0_178, %c7, %c0_179, %c0_180] : memref<1x8x16x128xbf16, #tpu.memory_space<vmem>>, vector<1x1x16x128xbf16>
    %376 = vector.shape_cast %375 : vector<1x1x16x128xbf16> to vector<16x128xbf16>
    %377 = vector.extract_strided_slice %376 {offsets = [0, 0], sizes = [16, 64], strides = [1, 1]} : vector<16x128xbf16> to vector<16x64xbf16>
    %378 = arith.extf %377 : vector<16x64xbf16> to vector<16x64xf32>
    %379 = vector.extract_strided_slice %376 {offsets = [0, 64], sizes = [16, 64], strides = [1, 1]} : vector<16x128xbf16> to vector<16x64xbf16>
    %380 = arith.extf %379 : vector<16x64xbf16> to vector<16x64xf32>
    %c0_181 = arith.constant 0 : index
    %c7_182 = arith.constant 7 : index
    %c0_183 = arith.constant 0 : index
    %c0_184 = arith.constant 0 : index
    %381 = vector.load %arg4[%c0_181, %c7_182, %c0_183, %c0_184] : memref<1x8x16x3xf32, #tpu.memory_space<vmem>>, vector<1x1x16x3xf32>
    %382 = vector.shape_cast %381 : vector<1x1x16x3xf32> to vector<16x3xf32>
    %383 = vector.extract_strided_slice %382 {offsets = [0, 0], sizes = [16, 1], strides = [1, 1]} : vector<16x3xf32> to vector<16x1xf32>
    %384 = vector.broadcast %383 : vector<16x1xf32> to vector<16x64xf32>
    %385 = vector.broadcast %6 : vector<1x64xf32> to vector<16x64xf32>
    %386 = arith.mulf %384, %385 : vector<16x64xf32>
    %387 = vector.extract_strided_slice %382 {offsets = [0, 1], sizes = [16, 1], strides = [1, 1]} : vector<16x3xf32> to vector<16x1xf32>
    %388 = vector.broadcast %387 : vector<16x1xf32> to vector<16x64xf32>
    %389 = vector.broadcast %7 : vector<1x64xf32> to vector<16x64xf32>
    %390 = arith.mulf %388, %389 : vector<16x64xf32>
    %391 = arith.addf %386, %390 : vector<16x64xf32>
    %392 = vector.extract_strided_slice %382 {offsets = [0, 2], sizes = [16, 1], strides = [1, 1]} : vector<16x3xf32> to vector<16x1xf32>
    %393 = vector.broadcast %392 : vector<16x1xf32> to vector<16x64xf32>
    %394 = vector.broadcast %8 : vector<1x64xf32> to vector<16x64xf32>
    %395 = arith.mulf %393, %394 : vector<16x64xf32>
    %396 = arith.addf %391, %395 : vector<16x64xf32>
    %397 = vector.broadcast %9 : vector<1x64xf32> to vector<16x64xf32>
    %398 = arith.addf %396, %397 : vector<16x64xf32>
    %cst_185 = arith.constant 0.000000e+00 : f32
    %399 = vector.broadcast %cst_185 : f32 to vector<16x64xf32>
    %400 = arith.maximumf %398, %399 : vector<16x64xf32>
    %c0_186 = arith.constant 0 : index
    %c0_187 = arith.constant 0 : index
    %401 = vector.load %arg8[%c0_186, %c0_187] : memref<64x64xbf16, #tpu.memory_space<vmem>>, vector<64x64xbf16>
    %402 = arith.truncf %400 : vector<16x64xf32> to vector<16x64xbf16>
    %cst_188 = arith.constant dense<0.000000e+00> : vector<16x64xf32>
    %403 = tpu.matmul %402, %401, %cst_188 {dimension_numbers = #tpu.dot_dimension_numbers<[1], [0], [0], [1], [0, 0, 1, 1], [], []>} : vector<16x64xbf16>, vector<64x64xbf16>, vector<16x64xf32> -> vector<16x64xf32>
    %c0_189 = arith.constant 0 : index
    %c0_190 = arith.constant 0 : index
    %404 = vector.load %arg9[%c0_189, %c0_190] : memref<1x64xf32, #tpu.memory_space<vmem>>, vector<1x64xf32>
    %405 = vector.broadcast %404 : vector<1x64xf32> to vector<16x64xf32>
    %406 = arith.addf %403, %405 : vector<16x64xf32>
    %407 = arith.subf %2, %378 : vector<16x64xf32>
    %408 = arith.addf %407, %406 : vector<16x64xf32>
    %c0_191 = arith.constant 0 : index
    %c0_192 = arith.constant 0 : index
    %409 = vector.load %arg10[%c0_191, %c0_192] : memref<64x256xbf16, #tpu.memory_space<vmem>>, vector<64x256xbf16>
    %410 = arith.truncf %408 : vector<16x64xf32> to vector<16x64xbf16>
    %cst_193 = arith.constant dense<0.000000e+00> : vector<16x256xf32>
    %411 = tpu.matmul %410, %409, %cst_193 {dimension_numbers = #tpu.dot_dimension_numbers<[1], [0], [0], [1], [0, 0, 1, 1], [], []>} : vector<16x64xbf16>, vector<64x256xbf16>, vector<16x256xf32> -> vector<16x256xf32>
    %c0_194 = arith.constant 0 : index
    %c0_195 = arith.constant 0 : index
    %412 = vector.load %arg11[%c0_194, %c0_195] : memref<1x256xf32, #tpu.memory_space<vmem>>, vector<1x256xf32>
    %413 = vector.broadcast %412 : vector<1x256xf32> to vector<16x256xf32>
    %414 = arith.addf %411, %413 : vector<16x256xf32>
    %cst_196 = arith.constant 0.000000e+00 : f32
    %415 = vector.broadcast %cst_196 : f32 to vector<16x256xf32>
    %416 = arith.maximumf %414, %415 : vector<16x256xf32>
    %c0_197 = arith.constant 0 : index
    %c0_198 = arith.constant 0 : index
    %417 = vector.load %arg12[%c0_197, %c0_198] : memref<256x128xbf16, #tpu.memory_space<vmem>>, vector<256x128xbf16>
    %418 = arith.truncf %416 : vector<16x256xf32> to vector<16x256xbf16>
    %cst_199 = arith.constant dense<0.000000e+00> : vector<16x128xf32>
    %419 = tpu.matmul %418, %417, %cst_199 {dimension_numbers = #tpu.dot_dimension_numbers<[1], [0], [0], [1], [0, 0, 1, 1], [], []>} : vector<16x256xbf16>, vector<256x128xbf16>, vector<16x128xf32> -> vector<16x128xf32>
    %c0_200 = arith.constant 0 : index
    %c0_201 = arith.constant 0 : index
    %420 = vector.load %arg13[%c0_200, %c0_201] : memref<1x128xf32, #tpu.memory_space<vmem>>, vector<1x128xf32>
    %421 = vector.broadcast %420 : vector<1x128xf32> to vector<16x128xf32>
    %422 = arith.addf %419, %421 : vector<16x128xf32>
    %423 = arith.addf %380, %406 : vector<16x64xf32>
    %424 = tpu.concatenate %423, %423 in 1 : vector<16x64xf32>, vector<16x64xf32> -> vector<16x128xf32>
    %425 = arith.mulf %422, %424 : vector<16x128xf32>
    %426 = arith.addf %374, %425 : vector<16x128xf32>
    %427 = tpu.concatenate %4, %4 in 1 : vector<16x128xf32>, vector<16x128xf32> -> vector<16x256xf32>
    %c0_202 = arith.constant 0 : index
    %c0_203 = arith.constant 0 : index
    %428 = vector.load %arg14[%c0_202, %c0_203] : memref<128x256xbf16, #tpu.memory_space<vmem>>, vector<128x256xbf16>
    %429 = arith.truncf %426 : vector<16x128xf32> to vector<16x128xbf16>
    %cst_204 = arith.constant dense<0.000000e+00> : vector<16x256xf32>
    %430 = tpu.matmul %429, %428, %cst_204 {dimension_numbers = #tpu.dot_dimension_numbers<[1], [0], [0], [1], [0, 0, 1, 1], [], []>} : vector<16x128xbf16>, vector<128x256xbf16>, vector<16x256xf32> -> vector<16x256xf32>
    %c0_205 = arith.constant 0 : index
    %c0_206 = arith.constant 0 : index
    %431 = vector.load %arg15[%c0_205, %c0_206] : memref<1x256xf32, #tpu.memory_space<vmem>>, vector<1x256xf32>
    %432 = vector.broadcast %431 : vector<1x256xf32> to vector<16x256xf32>
    %433 = arith.addf %430, %432 : vector<16x256xf32>
    %434 = arith.addf %433, %427 : vector<16x256xf32>
    %c0_207 = arith.constant 0 : index
    %c0_208 = arith.constant 0 : index
    %c0_209 = arith.constant 0 : index
    %435 = vector.load %arg16[%c0_207, %c0_208, %c0_209] : memref<1x16x256xf32, #tpu.memory_space<vmem>>, vector<1x16x256xf32>
    %436 = vector.shape_cast %435 : vector<1x16x256xf32> to vector<16x256xf32>
    %437 = vector.shape_cast %434 : vector<16x256xf32> to vector<1x16x256xf32>
    tpu.vector_store %arg16[%c0_207, %c0_208, %c0_209], %437 {strides = array<i32>} : memref<1x16x256xf32, #tpu.memory_space<vmem>>, vector<1x16x256xf32>,
    return
  }
  func.func @transform_0(%arg0: i32, %arg1: i32) -> (i32, i32, i32) {
    %c0_i32 = arith.constant 0 : i32
    %c0_i32_0 = arith.constant 0 : i32
    return %arg0, %arg1, %c0_i32 : i32, i32, i32
  }
  func.func @transform_1(%arg0: i32, %arg1: i32) -> (i32, i32, i32, i32) {
    %c0_i32 = arith.constant 0 : i32
    %c0_i32_0 = arith.constant 0 : i32
    %c0_i32_1 = arith.constant 0 : i32
    return %arg0, %c0_i32, %arg1, %c0_i32_0 : i32, i32, i32, i32
  }
  func.func @transform_2(%arg0: i32, %arg1: i32) -> (i32, i32, i32, i32) {
    %c0_i32 = arith.constant 0 : i32
    %c0_i32_0 = arith.constant 0 : i32
    %c0_i32_1 = arith.constant 0 : i32
    return %arg0, %c0_i32, %arg1, %c0_i32_0 : i32, i32, i32, i32
  }
  func.func @transform_3(%arg0: i32, %arg1: i32) -> (i32, i32, i32) {
    %c0_i32 = arith.constant 0 : i32
    %c0_i32_0 = arith.constant 0 : i32
    return %arg0, %arg1, %c0_i32 : i32, i32, i32
  }
  func.func @transform_4(%arg0: i32, %arg1: i32) -> (i32, i32) {
    %c0_i32 = arith.constant 0 : i32
    %c0_i32_0 = arith.constant 0 : i32
    %c0_i32_1 = arith.constant 0 : i32
    return %c0_i32, %c0_i32_0 : i32, i32
  }
  func.func @transform_5(%arg0: i32, %arg1: i32) -> (i32, i32) {
    %c0_i32 = arith.constant 0 : i32
    %c0_i32_0 = arith.constant 0 : i32
    %c0_i32_1 = arith.constant 0 : i32
    return %c0_i32, %c0_i32_0 : i32, i32
  }
  func.func @transform_6(%arg0: i32, %arg1: i32) -> (i32, i32) {
    %c0_i32 = arith.constant 0 : i32
    %c0_i32_0 = arith.constant 0 : i32
    %c0_i32_1 = arith.constant 0 : i32
    return %c0_i32, %c0_i32_0 : i32, i32
  }
  func.func @transform_7(%arg0: i32, %arg1: i32) -> (i32, i32) {
    %c0_i32 = arith.constant 0 : i32
    %c0_i32_0 = arith.constant 0 : i32
    %c0_i32_1 = arith.constant 0 : i32
    return %c0_i32, %c0_i32_0 : i32, i32
  }
  func.func @transform_8(%arg0: i32, %arg1: i32) -> (i32, i32) {
    %c0_i32 = arith.constant 0 : i32
    %c0_i32_0 = arith.constant 0 : i32
    %c0_i32_1 = arith.constant 0 : i32
    return %c0_i32, %c0_i32_0 : i32, i32
  }
  func.func @transform_9(%arg0: i32, %arg1: i32) -> (i32, i32) {
    %c0_i32 = arith.constant 0 : i32
    %c0_i32_0 = arith.constant 0 : i32
    %c0_i32_1 = arith.constant 0 : i32
    return %c0_i32, %c0_i32_0 : i32, i32
  }
  func.func @transform_10(%arg0: i32, %arg1: i32) -> (i32, i32) {
    %c0_i32 = arith.constant 0 : i32
    %c0_i32_0 = arith.constant 0 : i32
    %c0_i32_1 = arith.constant 0 : i32
    return %c0_i32, %c0_i32_0 : i32, i32
  }
  func.func @transform_11(%arg0: i32, %arg1: i32) -> (i32, i32) {
    %c0_i32 = arith.constant 0 : i32
    %c0_i32_0 = arith.constant 0 : i32
    %c0_i32_1 = arith.constant 0 : i32
    return %c0_i32, %c0_i32_0 : i32, i32
  }
  func.func @transform_12(%arg0: i32, %arg1: i32) -> (i32, i32) {
    %c0_i32 = arith.constant 0 : i32
    %c0_i32_0 = arith.constant 0 : i32
    %c0_i32_1 = arith.constant 0 : i32
    return %c0_i32, %c0_i32_0 : i32, i32
  }
  func.func @transform_13(%arg0: i32, %arg1: i32) -> (i32, i32) {
    %c0_i32 = arith.constant 0 : i32
    %c0_i32_0 = arith.constant 0 : i32
    %c0_i32_1 = arith.constant 0 : i32
    return %c0_i32, %c0_i32_0 : i32, i32
  }
  func.func @transform_14(%arg0: i32, %arg1: i32) -> (i32, i32, i32) {
    %c0_i32 = arith.constant 0 : i32
    %c0_i32_0 = arith.constant 0 : i32
    return %arg0, %arg1, %c0_i32 : i32, i32, i32
  }
}

module attributes {stable_mosaic.version = 11 : i64} {
  func.func @_seed_tail_kernel(%arg0: i32, %arg1: i32, %arg2: memref<1x32x128xf32, #tpu.memory_space<vmem>>, %arg3: memref<128x256xbf16, #tpu.memory_space<vmem>>, %arg4: memref<1x1x256xf32, #tpu.memory_space<vmem>>, %arg5: memref<128x128xbf16, #tpu.memory_space<vmem>>, %arg6: memref<1x1x128xf32, #tpu.memory_space<vmem>>, %arg7: memref<128x192xbf16, #tpu.memory_space<vmem>>, %arg8: memref<1x1x192xf32, #tpu.memory_space<vmem>>, %arg9: memref<64x128xbf16, #tpu.memory_space<vmem>>, %arg10: memref<1x1x128xf32, #tpu.memory_space<vmem>>, %arg11: memref<128x256xbf16, #tpu.memory_space<vmem>>, %arg12: memref<1x1x256xf32, #tpu.memory_space<vmem>>, %arg13: memref<128x128xbf16, #tpu.memory_space<vmem>>, %arg14: memref<1x1x128xf32, #tpu.memory_space<vmem>>, %arg15: memref<128x64xbf16, #tpu.memory_space<vmem>>, %arg16: memref<1x1x64xf32, #tpu.memory_space<vmem>>, %arg17: memref<64x3xbf16, #tpu.memory_space<vmem>>, %arg18: memref<1x1x3xf32, #tpu.memory_space<vmem>>, %arg19: memref<1x32x128xf32, #tpu.memory_space<vmem>>, %arg20: memref<1x32x3xf32, #tpu.memory_space<vmem>>) attributes {dimension_semantics = [#tpu.dimension_semantics<parallel>, #tpu.dimension_semantics<parallel>], iteration_bounds = array<i64: 2, 1>, scalar_prefetch = 0 : i64, scratch_operands = 0 : i64, tpu.core_type = #tpu.core_type<tc>, window_params = [{transform_indices = @transform_0, window_bounds = array<i64: 1, 32, 128>}, {pipeline_mode = #tpu.pipeline_mode<synchronous>, transform_indices = @transform_1, window_bounds = array<i64: 128, 256>}, {transform_indices = @transform_2, window_bounds = array<i64: 1, 1, 256>}, {pipeline_mode = #tpu.pipeline_mode<synchronous>, transform_indices = @transform_3, window_bounds = array<i64: 128, 128>}, {pipeline_mode = #tpu.pipeline_mode<synchronous>, transform_indices = @transform_4, window_bounds = array<i64: 1, 1, 128>}, {pipeline_mode = #tpu.pipeline_mode<synchronous>, transform_indices = @transform_5, window_bounds = array<i64: 128, 192>}, {pipeline_mode = #tpu.pipeline_mode<synchronous>, transform_indices = @transform_6, window_bounds = array<i64: 1, 1, 192>}, {pipeline_mode = #tpu.pipeline_mode<synchronous>, transform_indices = @transform_7, window_bounds = array<i64: 64, 128>}, {pipeline_mode = #tpu.pipeline_mode<synchronous>, transform_indices = @transform_8, window_bounds = array<i64: 1, 1, 128>}, {pipeline_mode = #tpu.pipeline_mode<synchronous>, transform_indices = @transform_9, window_bounds = array<i64: 128, 256>}, {transform_indices = @transform_10, window_bounds = array<i64: 1, 1, 256>}, {pipeline_mode = #tpu.pipeline_mode<synchronous>, transform_indices = @transform_11, window_bounds = array<i64: 128, 128>}, {pipeline_mode = #tpu.pipeline_mode<synchronous>, transform_indices = @transform_12, window_bounds = array<i64: 1, 1, 128>}, {pipeline_mode = #tpu.pipeline_mode<synchronous>, transform_indices = @transform_13, window_bounds = array<i64: 128, 64>}, {pipeline_mode = #tpu.pipeline_mode<synchronous>, transform_indices = @transform_14, window_bounds = array<i64: 1, 1, 64>}, {pipeline_mode = #tpu.pipeline_mode<synchronous>, transform_indices = @transform_15, window_bounds = array<i64: 64, 3>}, {pipeline_mode = #tpu.pipeline_mode<synchronous>, transform_indices = @transform_16, window_bounds = array<i64: 1, 1, 3>}, {transform_indices = @transform_17, window_bounds = array<i64: 1, 32, 128>}, {transform_indices = @transform_18, window_bounds = array<i64: 1, 32, 3>}]} {
    %c0 = arith.constant 0 : index
    %c0_0 = arith.constant 0 : index
    %c0_1 = arith.constant 0 : index
    %0 = vector.load %arg2[%c0, %c0_0, %c0_1] : memref<1x32x128xf32, #tpu.memory_space<vmem>>, vector<1x32x128xf32>
    %1 = vector.shape_cast %0 : vector<1x32x128xf32> to vector<32x128xf32>
    %c0_2 = arith.constant 0 : index
    %c0_3 = arith.constant 0 : index
    %2 = vector.load %arg3[%c0_2, %c0_3] : memref<128x256xbf16, #tpu.memory_space<vmem>>, vector<128x256xbf16>
    %c0_4 = arith.constant 0 : index
    %c0_5 = arith.constant 0 : index
    %c0_6 = arith.constant 0 : index
    %3 = vector.load %arg4[%c0_4, %c0_5, %c0_6] : memref<1x1x256xf32, #tpu.memory_space<vmem>>, vector<1x1x256xf32>
    %4 = vector.shape_cast %3 : vector<1x1x256xf32> to vector<1x256xf32>
    %c0_7 = arith.constant 0 : index
    %c0_8 = arith.constant 0 : index
    %5 = vector.load %arg5[%c0_7, %c0_8] : memref<128x128xbf16, #tpu.memory_space<vmem>>, vector<128x128xbf16>
    %c0_9 = arith.constant 0 : index
    %c0_10 = arith.constant 0 : index
    %c0_11 = arith.constant 0 : index
    %6 = vector.load %arg6[%c0_9, %c0_10, %c0_11] : memref<1x1x128xf32, #tpu.memory_space<vmem>>, vector<1x1x128xf32>
    %7 = vector.shape_cast %6 : vector<1x1x128xf32> to vector<1x128xf32>
    %8 = arith.truncf %1 : vector<32x128xf32> to vector<32x128xbf16>
    %cst = arith.constant dense<0.000000e+00> : vector<32x256xf32>
    %9 = tpu.matmul %8, %2, %cst {dimension_numbers = #tpu.dot_dimension_numbers<[1], [0], [0], [1], [0, 0, 1, 1], [], []>} : vector<32x128xbf16>, vector<128x256xbf16>, vector<32x256xf32> -> vector<32x256xf32>
    %10 = vector.broadcast %4 : vector<1x256xf32> to vector<32x256xf32>
    %11 = arith.addf %9, %10 : vector<32x256xf32>
    %12 = vector.extract_strided_slice %11 {offsets = [0, 0], sizes = [32, 128], strides = [1, 1]} : vector<32x256xf32> to vector<32x128xf32>
    %13 = vector.extract_strided_slice %11 {offsets = [0, 128], sizes = [32, 128], strides = [1, 1]} : vector<32x256xf32> to vector<32x128xf32>
    %cst_12 = arith.constant 0.000000e+00 : f32
    %14 = vector.broadcast %cst_12 : f32 to vector<32x128xf32>
    %15 = arith.maximumf %13, %14 : vector<32x128xf32>
    %16 = arith.truncf %15 : vector<32x128xf32> to vector<32x128xbf16>
    %cst_13 = arith.constant dense<0.000000e+00> : vector<32x128xf32>
    %17 = tpu.matmul %16, %5, %cst_13 {dimension_numbers = #tpu.dot_dimension_numbers<[1], [0], [0], [1], [0, 0, 1, 1], [], []>} : vector<32x128xbf16>, vector<128x128xbf16>, vector<32x128xf32> -> vector<32x128xf32>
    %18 = vector.broadcast %7 : vector<1x128xf32> to vector<32x128xf32>
    %19 = arith.addf %17, %18 : vector<32x128xf32>
    %20 = arith.addf %19, %12 : vector<32x128xf32>
    %c0_14 = arith.constant 0 : index
    %c0_15 = arith.constant 0 : index
    %21 = vector.load %arg7[%c0_14, %c0_15] : memref<128x192xbf16, #tpu.memory_space<vmem>>, vector<128x192xbf16>
    %c0_16 = arith.constant 0 : index
    %c0_17 = arith.constant 0 : index
    %c0_18 = arith.constant 0 : index
    %22 = vector.load %arg8[%c0_16, %c0_17, %c0_18] : memref<1x1x192xf32, #tpu.memory_space<vmem>>, vector<1x1x192xf32>
    %23 = vector.shape_cast %22 : vector<1x1x192xf32> to vector<1x192xf32>
    %c0_19 = arith.constant 0 : index
    %c0_20 = arith.constant 0 : index
    %24 = vector.load %arg9[%c0_19, %c0_20] : memref<64x128xbf16, #tpu.memory_space<vmem>>, vector<64x128xbf16>
    %c0_21 = arith.constant 0 : index
    %c0_22 = arith.constant 0 : index
    %c0_23 = arith.constant 0 : index
    %25 = vector.load %arg10[%c0_21, %c0_22, %c0_23] : memref<1x1x128xf32, #tpu.memory_space<vmem>>, vector<1x1x128xf32>
    %26 = vector.shape_cast %25 : vector<1x1x128xf32> to vector<1x128xf32>
    %27 = arith.truncf %20 : vector<32x128xf32> to vector<32x128xbf16>
    %cst_24 = arith.constant dense<0.000000e+00> : vector<32x192xf32>
    %28 = tpu.matmul %27, %21, %cst_24 {dimension_numbers = #tpu.dot_dimension_numbers<[1], [0], [0], [1], [0, 0, 1, 1], [], []>} : vector<32x128xbf16>, vector<128x192xbf16>, vector<32x192xf32> -> vector<32x192xf32>
    %29 = vector.broadcast %23 : vector<1x192xf32> to vector<32x192xf32>
    %30 = arith.addf %28, %29 : vector<32x192xf32>
    %31 = vector.extract_strided_slice %30 {offsets = [0, 0], sizes = [32, 128], strides = [1, 1]} : vector<32x192xf32> to vector<32x128xf32>
    %32 = vector.extract_strided_slice %30 {offsets = [0, 128], sizes = [32, 64], strides = [1, 1]} : vector<32x192xf32> to vector<32x64xf32>
    %cst_25 = arith.constant 0.000000e+00 : f32
    %33 = vector.broadcast %cst_25 : f32 to vector<32x64xf32>
    %34 = arith.maximumf %32, %33 : vector<32x64xf32>
    %35 = arith.truncf %34 : vector<32x64xf32> to vector<32x64xbf16>
    %cst_26 = arith.constant dense<0.000000e+00> : vector<32x128xf32>
    %36 = tpu.matmul %35, %24, %cst_26 {dimension_numbers = #tpu.dot_dimension_numbers<[1], [0], [0], [1], [0, 0, 1, 1], [], []>} : vector<32x64xbf16>, vector<64x128xbf16>, vector<32x128xf32> -> vector<32x128xf32>
    %37 = vector.broadcast %26 : vector<1x128xf32> to vector<32x128xf32>
    %38 = arith.addf %36, %37 : vector<32x128xf32>
    %39 = arith.addf %38, %31 : vector<32x128xf32>
    %c0_27 = arith.constant 0 : index
    %c0_28 = arith.constant 0 : index
    %40 = vector.load %arg11[%c0_27, %c0_28] : memref<128x256xbf16, #tpu.memory_space<vmem>>, vector<128x256xbf16>
    %c0_29 = arith.constant 0 : index
    %c0_30 = arith.constant 0 : index
    %c0_31 = arith.constant 0 : index
    %41 = vector.load %arg12[%c0_29, %c0_30, %c0_31] : memref<1x1x256xf32, #tpu.memory_space<vmem>>, vector<1x1x256xf32>
    %42 = vector.shape_cast %41 : vector<1x1x256xf32> to vector<1x256xf32>
    %c0_32 = arith.constant 0 : index
    %c0_33 = arith.constant 0 : index
    %43 = vector.load %arg13[%c0_32, %c0_33] : memref<128x128xbf16, #tpu.memory_space<vmem>>, vector<128x128xbf16>
    %c0_34 = arith.constant 0 : index
    %c0_35 = arith.constant 0 : index
    %c0_36 = arith.constant 0 : index
    %44 = vector.load %arg14[%c0_34, %c0_35, %c0_36] : memref<1x1x128xf32, #tpu.memory_space<vmem>>, vector<1x1x128xf32>
    %45 = vector.shape_cast %44 : vector<1x1x128xf32> to vector<1x128xf32>
    %46 = arith.truncf %39 : vector<32x128xf32> to vector<32x128xbf16>
    %cst_37 = arith.constant dense<0.000000e+00> : vector<32x256xf32>
    %47 = tpu.matmul %46, %40, %cst_37 {dimension_numbers = #tpu.dot_dimension_numbers<[1], [0], [0], [1], [0, 0, 1, 1], [], []>} : vector<32x128xbf16>, vector<128x256xbf16>, vector<32x256xf32> -> vector<32x256xf32>
    %48 = vector.broadcast %42 : vector<1x256xf32> to vector<32x256xf32>
    %49 = arith.addf %47, %48 : vector<32x256xf32>
    %50 = vector.extract_strided_slice %49 {offsets = [0, 0], sizes = [32, 128], strides = [1, 1]} : vector<32x256xf32> to vector<32x128xf32>
    %51 = vector.extract_strided_slice %49 {offsets = [0, 128], sizes = [32, 128], strides = [1, 1]} : vector<32x256xf32> to vector<32x128xf32>
    %cst_38 = arith.constant 0.000000e+00 : f32
    %52 = vector.broadcast %cst_38 : f32 to vector<32x128xf32>
    %53 = arith.maximumf %51, %52 : vector<32x128xf32>
    %54 = arith.truncf %53 : vector<32x128xf32> to vector<32x128xbf16>
    %cst_39 = arith.constant dense<0.000000e+00> : vector<32x128xf32>
    %55 = tpu.matmul %54, %43, %cst_39 {dimension_numbers = #tpu.dot_dimension_numbers<[1], [0], [0], [1], [0, 0, 1, 1], [], []>} : vector<32x128xbf16>, vector<128x128xbf16>, vector<32x128xf32> -> vector<32x128xf32>
    %56 = vector.broadcast %45 : vector<1x128xf32> to vector<32x128xf32>
    %57 = arith.addf %55, %56 : vector<32x128xf32>
    %58 = arith.addf %57, %50 : vector<32x128xf32>
    %c0_40 = arith.constant 0 : index
    %c0_41 = arith.constant 0 : index
    %59 = vector.load %arg15[%c0_40, %c0_41] : memref<128x64xbf16, #tpu.memory_space<vmem>>, vector<128x64xbf16>
    %60 = arith.truncf %58 : vector<32x128xf32> to vector<32x128xbf16>
    %cst_42 = arith.constant dense<0.000000e+00> : vector<32x64xf32>
    %61 = tpu.matmul %60, %59, %cst_42 {dimension_numbers = #tpu.dot_dimension_numbers<[1], [0], [0], [1], [0, 0, 1, 1], [], []>} : vector<32x128xbf16>, vector<128x64xbf16>, vector<32x64xf32> -> vector<32x64xf32>
    %c0_43 = arith.constant 0 : index
    %c0_44 = arith.constant 0 : index
    %c0_45 = arith.constant 0 : index
    %62 = vector.load %arg16[%c0_43, %c0_44, %c0_45] : memref<1x1x64xf32, #tpu.memory_space<vmem>>, vector<1x1x64xf32>
    %63 = vector.shape_cast %62 : vector<1x1x64xf32> to vector<1x64xf32>
    %64 = vector.broadcast %63 : vector<1x64xf32> to vector<32x64xf32>
    %65 = arith.addf %61, %64 : vector<32x64xf32>
    %cst_46 = arith.constant 0.000000e+00 : f32
    %66 = vector.broadcast %cst_46 : f32 to vector<32x64xf32>
    %67 = arith.maximumf %65, %66 : vector<32x64xf32>
    %c0_47 = arith.constant 0 : index
    %c0_48 = arith.constant 0 : index
    %68 = vector.load %arg17[%c0_47, %c0_48] : memref<64x3xbf16, #tpu.memory_space<vmem>>, vector<64x3xbf16>
    %69 = arith.truncf %67 : vector<32x64xf32> to vector<32x64xbf16>
    %cst_49 = arith.constant dense<0.000000e+00> : vector<32x3xf32>
    %70 = tpu.matmul %69, %68, %cst_49 {dimension_numbers = #tpu.dot_dimension_numbers<[1], [0], [0], [1], [0, 0, 1, 1], [], []>} : vector<32x64xbf16>, vector<64x3xbf16>, vector<32x3xf32> -> vector<32x3xf32>
    %c0_50 = arith.constant 0 : index
    %c0_51 = arith.constant 0 : index
    %c0_52 = arith.constant 0 : index
    %71 = vector.load %arg18[%c0_50, %c0_51, %c0_52] : memref<1x1x3xf32, #tpu.memory_space<vmem>>, vector<1x1x3xf32>
    %72 = vector.shape_cast %71 : vector<1x1x3xf32> to vector<1x3xf32>
    %73 = vector.broadcast %72 : vector<1x3xf32> to vector<32x3xf32>
    %74 = arith.addf %70, %73 : vector<32x3xf32>
    %c0_53 = arith.constant 0 : index
    %c0_54 = arith.constant 0 : index
    %c0_55 = arith.constant 0 : index
    %75 = vector.load %arg19[%c0_53, %c0_54, %c0_55] : memref<1x32x128xf32, #tpu.memory_space<vmem>>, vector<1x32x128xf32>
    %76 = vector.shape_cast %75 : vector<1x32x128xf32> to vector<32x128xf32>
    %77 = vector.shape_cast %58 : vector<32x128xf32> to vector<1x32x128xf32>
    tpu.vector_store %arg19[%c0_53, %c0_54, %c0_55], %77 {strides = array<i32>} : memref<1x32x128xf32, #tpu.memory_space<vmem>>, vector<1x32x128xf32>,
    %c0_56 = arith.constant 0 : index
    %c0_57 = arith.constant 0 : index
    %c0_58 = arith.constant 0 : index
    %78 = vector.load %arg20[%c0_56, %c0_57, %c0_58] : memref<1x32x3xf32, #tpu.memory_space<vmem>>, vector<1x32x3xf32>
    %79 = vector.shape_cast %78 : vector<1x32x3xf32> to vector<32x3xf32>
    %80 = vector.shape_cast %74 : vector<32x3xf32> to vector<1x32x3xf32>
    tpu.vector_store %arg20[%c0_56, %c0_57, %c0_58], %80 {strides = array<i32>} : memref<1x32x3xf32, #tpu.memory_space<vmem>>, vector<1x32x3xf32>,
    return
  }
  func.func @transform_0(%arg0: i32, %arg1: i32) -> (i32, i32, i32) {
    %c0_i32 = arith.constant 0 : i32
    %c0_i32_0 = arith.constant 0 : i32
    return %arg0, %arg1, %c0_i32 : i32, i32, i32
  }
  func.func @transform_1(%arg0: i32, %arg1: i32) -> (i32, i32) {
    %c0_i32 = arith.constant 0 : i32
    %c0_i32_0 = arith.constant 0 : i32
    %c0_i32_1 = arith.constant 0 : i32
    return %c0_i32, %c0_i32_0 : i32, i32
  }
  func.func @transform_2(%arg0: i32, %arg1: i32) -> (i32, i32, i32) {
    %c0_i32 = arith.constant 0 : i32
    %c0_i32_0 = arith.constant 0 : i32
    %c0_i32_1 = arith.constant 0 : i32
    return %arg0, %c0_i32, %c0_i32_0 : i32, i32, i32
  }
  func.func @transform_3(%arg0: i32, %arg1: i32) -> (i32, i32) {
    %c0_i32 = arith.constant 0 : i32
    %c0_i32_0 = arith.constant 0 : i32
    %c0_i32_1 = arith.constant 0 : i32
    return %c0_i32, %c0_i32_0 : i32, i32
  }
  func.func @transform_4(%arg0: i32, %arg1: i32) -> (i32, i32, i32) {
    %c0_i32 = arith.constant 0 : i32
    %c0_i32_0 = arith.constant 0 : i32
    %c0_i32_1 = arith.constant 0 : i32
    %c0_i32_2 = arith.constant 0 : i32
    return %c0_i32, %c0_i32_0, %c0_i32_1 : i32, i32, i32
  }
  func.func @transform_5(%arg0: i32, %arg1: i32) -> (i32, i32) {
    %c0_i32 = arith.constant 0 : i32
    %c0_i32_0 = arith.constant 0 : i32
    %c0_i32_1 = arith.constant 0 : i32
    return %c0_i32, %c0_i32_0 : i32, i32
  }
  func.func @transform_6(%arg0: i32, %arg1: i32) -> (i32, i32, i32) {
    %c0_i32 = arith.constant 0 : i32
    %c0_i32_0 = arith.constant 0 : i32
    %c0_i32_1 = arith.constant 0 : i32
    %c0_i32_2 = arith.constant 0 : i32
    return %c0_i32, %c0_i32_0, %c0_i32_1 : i32, i32, i32
  }
  func.func @transform_7(%arg0: i32, %arg1: i32) -> (i32, i32) {
    %c0_i32 = arith.constant 0 : i32
    %c0_i32_0 = arith.constant 0 : i32
    %c0_i32_1 = arith.constant 0 : i32
    return %c0_i32, %c0_i32_0 : i32, i32
  }
  func.func @transform_8(%arg0: i32, %arg1: i32) -> (i32, i32, i32) {
    %c0_i32 = arith.constant 0 : i32
    %c0_i32_0 = arith.constant 0 : i32
    %c0_i32_1 = arith.constant 0 : i32
    %c0_i32_2 = arith.constant 0 : i32
    return %c0_i32, %c0_i32_0, %c0_i32_1 : i32, i32, i32
  }
  func.func @transform_9(%arg0: i32, %arg1: i32) -> (i32, i32) {
    %c0_i32 = arith.constant 0 : i32
    %c0_i32_0 = arith.constant 0 : i32
    %c0_i32_1 = arith.constant 0 : i32
    return %c0_i32, %c0_i32_0 : i32, i32
  }
  func.func @transform_10(%arg0: i32, %arg1: i32) -> (i32, i32, i32) {
    %c0_i32 = arith.constant 0 : i32
    %c0_i32_0 = arith.constant 0 : i32
    %c0_i32_1 = arith.constant 0 : i32
    return %arg0, %c0_i32, %c0_i32_0 : i32, i32, i32
  }
  func.func @transform_11(%arg0: i32, %arg1: i32) -> (i32, i32) {
    %c0_i32 = arith.constant 0 : i32
    %c0_i32_0 = arith.constant 0 : i32
    %c0_i32_1 = arith.constant 0 : i32
    return %c0_i32, %c0_i32_0 : i32, i32
  }
  func.func @transform_12(%arg0: i32, %arg1: i32) -> (i32, i32, i32) {
    %c0_i32 = arith.constant 0 : i32
    %c0_i32_0 = arith.constant 0 : i32
    %c0_i32_1 = arith.constant 0 : i32
    %c0_i32_2 = arith.constant 0 : i32
    return %c0_i32, %c0_i32_0, %c0_i32_1 : i32, i32, i32
  }
  func.func @transform_13(%arg0: i32, %arg1: i32) -> (i32, i32) {
    %c0_i32 = arith.constant 0 : i32
    %c0_i32_0 = arith.constant 0 : i32
    %c0_i32_1 = arith.constant 0 : i32
    return %c0_i32, %c0_i32_0 : i32, i32
  }
  func.func @transform_14(%arg0: i32, %arg1: i32) -> (i32, i32, i32) {
    %c0_i32 = arith.constant 0 : i32
    %c0_i32_0 = arith.constant 0 : i32
    %c0_i32_1 = arith.constant 0 : i32
    %c0_i32_2 = arith.constant 0 : i32
    return %c0_i32, %c0_i32_0, %c0_i32_1 : i32, i32, i32
  }
  func.func @transform_15(%arg0: i32, %arg1: i32) -> (i32, i32) {
    %c0_i32 = arith.constant 0 : i32
    %c0_i32_0 = arith.constant 0 : i32
    %c0_i32_1 = arith.constant 0 : i32
    return %c0_i32, %c0_i32_0 : i32, i32
  }
  func.func @transform_16(%arg0: i32, %arg1: i32) -> (i32, i32, i32) {
    %c0_i32 = arith.constant 0 : i32
    %c0_i32_0 = arith.constant 0 : i32
    %c0_i32_1 = arith.constant 0 : i32
    %c0_i32_2 = arith.constant 0 : i32
    return %c0_i32, %c0_i32_0, %c0_i32_1 : i32, i32, i32
  }
  func.func @transform_17(%arg0: i32, %arg1: i32) -> (i32, i32, i32) {
    %c0_i32 = arith.constant 0 : i32
    %c0_i32_0 = arith.constant 0 : i32
    return %arg0, %arg1, %c0_i32 : i32, i32, i32
  }
  func.func @transform_18(%arg0: i32, %arg1: i32) -> (i32, i32, i32) {
    %c0_i32 = arith.constant 0 : i32
    %c0_i32_0 = arith.constant 0 : i32
    return %arg0, %arg1, %c0_i32 : i32, i32, i32
  }
}

</mosaic_0001>

<bundles_post_ra>
// kernel: seed_generator_forward.5
= control target key start
LH: loop header
LB: loop body
LE: loop exit
PB: predicated region body
PF: predicated region fallthrough
CT: control target
= control target key end

     0   :  { %s651_s9 = smov 0   ;;  %s653_s10 = smov 0   ;;  %s805_s0 = inlined_call_operand.vmem [shape: f32[2,16,3], index: 0, kind: input, shape index: {}]   ;;  %s806_s1 = inlined_call_operand.vmem [shape: f32[2,3,16], index: 1, kind: input, shape index: {}]   ;;  %s807_s2 = inlined_call_operand.vmem [shape: s32[2,16,8], index: 2, kind: output, shape index: {}]  }
   0x1   :  { %s655_s11 = smov 0  }
   0x2 LB: > { %s24_s12 = sadd.s32 1, %s627_s10  ;;  %p563_p0 = scmp.ge.s32.totalorder %s631_s11, 1  ;;  %s631_s11 = sphi %s655_s11, %s12_s11   ;;  %s627_s10 = sphi %s653_s10, %s809_s10   ;;  %s623_s9 = sphi %s651_s9, %s808_s9  }
   0x3   : > { %p26_p1 = scmp.ge.s32.totalorder %s24_s12, 2  ;;  %p142_p2 = scmp.lt.s32.totalorder %s631_s11, 3 }
   0x5   : > { %s811_s12 = smov (%p26_p1, %s24_s12), 0  ;;  %p143_p3 = pnand %p563_p0, %p142_p2 }
   0x6   : > { %p177_p4 = scmp.lt.s32.totalorder (!%p143_p3), %s623_s9, 1 }
   0x7   : > { %146 = sbr.rel (%p143_p3) target bundleno = 2443 (0x98b), region = 28 }
   0xc   : > { %v633_v0 = vmov 0   ;;  %v634_v1 = vmov 1   ;;  %s813_s9 = smov (!%p177_p4, %s623_s9), 1  ;;  %vm253_vm0 = vcmask 23552   ;;  %v635_v8 = vmov 2  }
   0xd   : > { %604 = vset.pattern.permute.xlu1 %v633_v0  ;;  %605 = vset.pattern.permute.xlu0 %v634_v1  ;;  %s571_s13 = sshll.u32 %s813_s9, 4  ;;  %s566_s17 = sshll.u32 %s813_s9, 2  ;;  %vm261_vm1 = vcmask 124928   ;;  %v213_v11 = vlaneseq  ;;  %vm278_vm2 = vcmask 130048  }
   0xe   : > { %s184_s16 = scalar_lea.vmem %s805_s0, %s571_s13  ;;  %s189_s20 = scalar_lea.vmem %s806_s1, %s566_s17 }
   0xf   : > { %v200_v2 = vld [vmem:[%s184_s16] sm:$0xff]  ;;  %v201_v3 = vld [vmem:[%s184_s16 + $0x8] sm:$0xff]  ;;  %v214_v15 = vshrl.u32 %v213_v11, 7  ;;  %v276_v52 = vand.u32 127, %v213_v11  ;;  %s198_s23 = scalar_lea.vmem %s807_s2, %s571_s13 }
  0x10   : > { %205 = vperm.xlu1 %604, %v200_v2   ;;  %v251_v4 = vmul.f32 %v200_v2, %v200_v2  ;;  %v252_v5 = vmul.f32 %v201_v3, %v201_v3  ;;  %v202_v9 = vld [vmem:[%s189_s20] sm:$0x7] }
  0x11   : > { %v260_v10 = vmul.f32 %v202_v9, %v202_v9  ;;  %v215_v18 = vsub.s32 0, %v214_v15  ;;  %v229_v19 = vsub.s32 1, %v214_v15  ;;  %v245_v24 = vsub.s32 2, %v214_v15 }
  0x12   : > { %v254_v6 = vsel %vm253_vm0, %v251_v4, 0.0  ;;  %v257_v7 = vsel %vm253_vm0, %v252_v5, 0.0  ;;  %v685_v54 = vcvt.s32.f32 %v276_v52 }
  0x13   : > { %255 = vadd.xlane.f32.xlu0 %v254_v6  ;;  %v262_v12 = vsel %vm261_vm1, %v260_v10, 0.0  ;;  %v216_v21 = vrot.slane %v202_v9, %v215_v18  ;;  %v230_v22 = vrot.slane %v202_v9, %v229_v19  ;;  %v246_v29 = vrot.slane %v202_v9, %v245_v24 }
  0x14   : > { %210 = vperm.xlu1 %604, %v201_v3   ;;  %v263_v14 = vrot.slane %v262_v12, 4 }
  0x16   : > { %v264_v17 = vadd.f32 %v263_v14, %v262_v12 }
  0x17   : > { %258 = vadd.xlane.f32.xlu0 %v257_v7 }
  0x18   : > { %606 = vset.pattern.permute.xlu1 %v634_v1  ;;  %v265_v20 = vrot.slane %v264_v17, 2 }
  0x19   : > { %224 = vperm.xlu1 %606, %v201_v3  }
  0x1a   : > { %v266_v25 = vadd.f32 %v265_v20, %v264_v17 }
  0x1c   : > { %v267_v30 = vrot.slane %v266_v25, 1 }
  0x1d   : > { %607 = vset.pattern.permute.xlu1 %v635_v8 }
  0x1e   : > { %236 = vperm.xlu1 %607, %v200_v2   ;;  %v268_v35 = vadd.f32 %v267_v30, %v266_v25 }
  0x22   : > { %240 = vperm.xlu1 %607, %v201_v3  }
  0x2d   : > { %220 = vperm.xlu0 %605, %v200_v2  }
  0x31   : > { %608 = vset.pattern.permute.xlu0 %v635_v8 }
  0x8b   : > { %v206_v13 = vpop.permute.xlu1 %205 }
  0x8c   : > { %v217_v43 = vmul.f32 %v216_v21, %v206_v13 }
  0x8f   : > { %v211_v16 = vpop.permute.xlu1 %210 }
  0x90   : > { %v218_v26 = vmul.f32 %v216_v21, %v211_v16 }
  0x94   : > { %v225_v23 = vpop.permute.xlu1 %224 }
  0x95   : > { %v232_v27 = vmul.f32 %v230_v22, %v225_v23 }
  0x97   : > { %v234_v31 = vadd.f32 %v232_v27, %v218_v26 }
  0x99   : > { %v237_v28 = vpop.permute.xlu1 %236 }
  0x9a   : > { %v247_v44 = vmul.f32 %v246_v29, %v237_v28 }
  0x9c   : > { %v256_v32 = vpop.xlane.xlu0 %255 }
  0x9d   : > { %v241_v33 = vpop.permute.xlu1 %240  ;;  %v269_v48 = vadd.f32 %v268_v35, %v256_v32 }
  0x9e   : > { %v248_v34 = vmul.f32 %v246_v29, %v241_v33 }
  0xa0   : > { %v250_v36 = vadd.f32 %v248_v34, %v234_v31  ;;  %v259_v37 = vpop.xlane.xlu0 %258 }
  0xa1   : > { %v270_v38 = vadd.f32 %v268_v35, %v259_v37 }
  0xa2   : > { %v272_v39 = vmul.f32 2.0, %v250_v36 }
  0xa4   : > { %v274_v40 = vsub.f32 %v270_v38, %v272_v39 }
  0xa6   : > { %v282_v41 = vsel %vm278_vm2, %v274_v40, inf }
  0xa7   : > { %283 = vmin.xlane.f32.xlu0 %v282_v41 }
  0xa8   : > { %v221_v42 = vpop.permute.xlu0 %220 }
  0xa9   : > { %v231_v45 = vmul.f32 %v230_v22, %v221_v42 }
  0xab   : > { %v233_v46 = vadd.f32 %v231_v45, %v217_v43 }
  0xad   : > { %v249_v47 = vadd.f32 %v247_v44, %v233_v46 }
  0xaf   : > { %v271_v49 = vmul.f32 2.0, %v249_v47 }
  0xb1   : > { %v273_v50 = vsub.f32 %v269_v48, %v271_v49 }
  0xb3   : > { %v279_v51 = vsel %vm278_vm2, %v273_v50, inf }
  0xb4   : > { %280 = vmin.xlane.f32.xlu1 %v279_v51 }
 0x130   : > { %v284_v53 = vpop.xlane.xlu0 %283 }
 0x131   : > { %vm286_vm3 = vcmp.le.f32.partialorder %v274_v40, %v284_v53 }
 0x132   : > { %v288_v58 = vsel %vm286_vm3, %v685_v54, 16.0 }
 0x133   : > { %v292_v59 = vsel %vm278_vm2, %v288_v58, inf }
 0x13d   : > { %v281_v55 = vpop.xlane.xlu1 %280 }
 0x13e   : > { %vm285_vm4 = vcmp.le.f32.partialorder %v273_v50, %v281_v55 }
 0x13f   : > { %v287_v56 = vsel %vm285_vm4, %v685_v54, 16.0 }
 0x140   : > { %v289_v57 = vsel %vm278_vm2, %v287_v56, inf }
 0x141   : > { %290 = vmin.xlane.f32.xlu1 %v289_v57 }
 0x145   : > { %293 = vmin.xlane.f32.xlu1 %v292_v59 }
 0x1ca   : > { %v691_v60 = vpop.xlane.xlu1 %290 }
 0x1cb   : > { %vm295_vm5 = vcmp.eq.f32.partialorder %v685_v54, %v691_v60 }
 0x1cc   : > { %v297_v61 = vsel %vm295_vm5, inf, %v273_v50 }
 0x1cd   : > { %v299_v62 = vsel %vm278_vm2, %v297_v61, inf }
 0x1ce   : > { %300 = vmin.xlane.f32.xlu1 %v299_v62  ;;  %v696_v63 = vpop.xlane.xlu1 %293 }
 0x1cf   : > { %vm296_vm6 = vcmp.eq.f32.partialorder %v685_v54, %v696_v63 }
 0x1d0   : > { %v298_v0 = vsel %vm296_vm6, inf, %v274_v40 }
 0x1d1   : > { %v302_v1 = vsel %vm278_vm2, %v298_v0, inf }
 0x1d2   : > { %303 = vmin.xlane.f32.xlu1 %v302_v1 }
 0x257   : > { %v301_v2 = vpop.xlane.xlu1 %300 }
 0x258   : > { %vm305_vm7 = vcmp.le.f32.partialorder %v297_v61, %v301_v2 }
 0x259   : > { %v307_v3 = vsel %vm305_vm7, %v685_v54, 16.0 }
 0x25a   : > { %v309_v4 = vsel %vm278_vm2, %v307_v3, inf }
 0x25b   : > { %310 = vmin.xlane.f32.xlu1 %v309_v4  ;;  %v304_v5 = vpop.xlane.xlu1 %303 }
 0x25c   : > { %vm306_vm8 = vcmp.le.f32.partialorder %v298_v0, %v304_v5 }
 0x25d   : > { %v308_v6 = vsel %vm306_vm8, %v685_v54, 16.0 }
 0x25e   : > { %v312_v7 = vsel %vm278_vm2, %v308_v6, inf }
 0x25f   : > { %313 = vmin.xlane.f32.xlu1 %v312_v7 }
 0x2e4   : > { %v705_v8 = vpop.xlane.xlu1 %310 }
 0x2e5   : > { %vm315_vm9 = vcmp.eq.f32.partialorder %v685_v54, %v705_v8 }
 0x2e6   : > { %v317_v9 = vsel %vm315_vm9, inf, %v297_v61 }
 0x2e7   : > { %v319_v10 = vsel %vm278_vm2, %v317_v9, inf }
 0x2e8   : > { %320 = vmin.xlane.f32.xlu1 %v319_v10  ;;  %v710_v11 = vpop.xlane.xlu1 %313 }
 0x2e9   : > { %vm316_vm10 = vcmp.eq.f32.partialorder %v685_v54, %v710_v11 }
 0x2ea   : > { %v318_v12 = vsel %vm316_vm10, inf, %v298_v0 }
 0x2eb   : > { %v322_v13 = vsel %vm278_vm2, %v318_v12, inf }
 0x2ec   : > { %323 = vmin.xlane.f32.xlu0 %v322_v13 }
 0x371   : > { %v321_v14 = vpop.xlane.xlu1 %320 }
 0x372   : > { %vm325_vm11 = vcmp.le.f32.partialorder %v317_v9, %v321_v14 }
 0x373   : > { %v327_v15 = vsel %vm325_vm11, %v685_v54, 16.0 }
 0x374   : > { %v329_v16 = vsel %vm278_vm2, %v327_v15, inf }
 0x375   : > { %v324_v17 = vpop.xlane.xlu0 %323  ;;  %330 = vmin.xlane.f32.xlu1 %v329_v16 }
 0x376   : > { %vm326_vm12 = vcmp.le.f32.partialorder %v318_v12, %v324_v17 }
 0x377   : > { %v328_v18 = vsel %vm326_vm12, %v685_v54, 16.0 }
 0x378   : > { %v332_v19 = vsel %vm278_vm2, %v328_v18, inf }
 0x379   : > { %333 = vmin.xlane.f32.xlu0 %v332_v19 }
 0x3fe   : > { %v719_v20 = vpop.xlane.xlu1 %330 }
 0x3ff   : > { %vm335_vm13 = vcmp.eq.f32.partialorder %v685_v54, %v719_v20 }
 0x400   : > { %v337_v21 = vsel %vm335_vm13, inf, %v317_v9 }
 0x401   : > { %v339_v22 = vsel %vm278_vm2, %v337_v21, inf }
 0x402   : > { %v724_v23 = vpop.xlane.xlu0 %333  ;;  %340 = vmin.xlane.f32.xlu1 %v339_v22 }
 0x403   : > { %vm336_vm14 = vcmp.eq.f32.partialorder %v685_v54, %v724_v23 }
 0x404   : > { %v338_v24 = vsel %vm336_vm14, inf, %v318_v12 }
 0x405   : > { %v342_v25 = vsel %vm278_vm2, %v338_v24, inf }
 0x406   : > { %343 = vmin.xlane.f32.xlu0 %v342_v25 }
 0x48b   : > { %v341_v26 = vpop.xlane.xlu1 %340 }
 0x48c   : > { %vm345_vm15 = vcmp.le.f32.partialorder %v337_v21, %v341_v26 }
 0x48d   : > { %v347_v27 = vsel %vm345_vm15, %v685_v54, 16.0 }
 0x48e   : > { %v349_v28 = vsel %vm278_vm2, %v347_v27, inf }
 0x48f   : > { %v344_v29 = vpop.xlane.xlu0 %343  ;;  %350 = vmin.xlane.f32.xlu1 %v349_v28 }
 0x490   : > { %vm346_vm1 = vcmp.le.f32.partialorder %v338_v24, %v344_v29 }
 0x491   : > { %v348_v30 = vsel %vm346_vm1, %v685_v54, 16.0 }
 0x492   : > { %v352_v31 = vsel %vm278_vm2, %v348_v30, inf }
 0x493   : > { %353 = vmin.xlane.f32.xlu0 %v352_v31 }
 0x518   : > { %v733_v32 = vpop.xlane.xlu1 %350 }
 0x519   : > { %vm355_vm3 = vcmp.eq.f32.partialorder %v685_v54, %v733_v32 }
 0x51a   : > { %v357_v33 = vsel %vm355_vm3, inf, %v337_v21 }
 0x51b   : > { %v359_v34 = vsel %vm278_vm2, %v357_v33, inf }
 0x51c   : > { %v738_v35 = vpop.xlane.xlu0 %353  ;;  %360 = vmin.xlane.f32.xlu1 %v359_v34 }
 0x51d   : > { %vm356_vm4 = vcmp.eq.f32.partialorder %v685_v54, %v738_v35 }
 0x51e   : > { %v358_v36 = vsel %vm356_vm4, inf, %v338_v24 }
 0x51f   : > { %v362_v37 = vsel %vm278_vm2, %v358_v36, inf }
 0x520   : > { %363 = vmin.xlane.f32.xlu0 %v362_v37 }
 0x5a5   : > { %v361_v38 = vpop.xlane.xlu1 %360 }
 0x5a6   : > { %vm365_vm5 = vcmp.le.f32.partialorder %v357_v33, %v361_v38 }
 0x5a7   : > { %v367_v39 = vsel %vm365_vm5, %v685_v54, 16.0  ;;  %vm435_vm5 = vcmask 7168  }
 0x5a8   : > { %v369_v40 = vsel %vm278_vm2, %v367_v39, inf  ;;  %v436_v22 = vsel %vm435_vm5, %v691_v60, %v705_v8 }
 0x5a9   : > { %v364_v41 = vpop.xlane.xlu0 %363  ;;  %370 = vmin.xlane.f32.xlu1 %v369_v40 }
 0x5aa   : > { %vm366_vm6 = vcmp.le.f32.partialorder %v358_v36, %v364_v41 }
 0x5ab   : > { %v368_v42 = vsel %vm366_vm6, %v685_v54, 16.0  ;;  %vm438_vm6 = vcmask 15360  }
 0x5ac   : > { %v372_v43 = vsel %vm278_vm2, %v368_v42, inf  ;;  %v439_v24 = vsel %vm438_vm6, %v436_v22, %v719_v20 }
 0x5ad   : > { %373 = vmin.xlane.f32.xlu0 %v372_v43  ;;  %v441_v25 = vsel %vm253_vm0, %v439_v24, %v733_v32 }
 0x632   : > { %v747_v44 = vpop.xlane.xlu1 %370 }
 0x633   : > { %vm375_vm7 = vcmp.eq.f32.partialorder %v685_v54, %v747_v44 }
 0x634   : > { %v377_v45 = vsel %vm375_vm7, inf, %v357_v33  ;;  %vm443_vm7 = vcmask 31744  }
 0x635   : > { %v379_v46 = vsel %vm278_vm2, %v377_v45, inf  ;;  %v444_v26 = vsel %vm443_vm7, %v441_v25, %v747_v44 }
 0x636   : > { %v752_v47 = vpop.xlane.xlu0 %373  ;;  %380 = vmin.xlane.f32.xlu1 %v379_v46 }
 0x637   : > { %vm376_vm8 = vcmp.eq.f32.partialorder %v685_v54, %v752_v47 }
 0x638   : > { %v378_v48 = vsel %vm376_vm8, inf, %v358_v36  ;;  %vm446_vm8 = vcmask 39936  }
 0x639   : > { %v382_v49 = vsel %vm278_vm2, %v378_v48, inf }
 0x63a   : > { %383 = vmin.xlane.f32.xlu0 %v382_v49 }
 0x6bf   : > { %v381_v50 = vpop.xlane.xlu1 %380 }
 0x6c0   : > { %vm385_vm9 = vcmp.le.f32.partialorder %v377_v45, %v381_v50 }
 0x6c1   : > { %v387_v51 = vsel %vm385_vm9, %v685_v54, 16.0  ;;  %vm449_vm9 = vcmask 48128  }
 0x6c2   : > { %v389_v52 = vsel %vm278_vm2, %v387_v51, inf }
 0x6c3   : > { %v384_v53 = vpop.xlane.xlu0 %383  ;;  %390 = vmin.xlane.f32.xlu1 %v389_v52 }
 0x6c4   : > { %vm386_vm10 = vcmp.le.f32.partialorder %v378_v48, %v384_v53 }
 0x6c5   : > { %v388_v55 = vsel %vm386_vm10, %v685_v54, 16.0  ;;  %vm452_vm10 = vcmask 56320  }
 0x6c6   : > { %v392_v56 = vsel %vm278_vm2, %v388_v55, inf }
 0x6c7   : > { %393 = vmin.xlane.f32.xlu0 %v392_v56 }
 0x74c   : > { %v391_v57 = vpop.xlane.xlu1 %390 }
 0x74d   : > { %vm395_vm11 = vcmp.eq.f32.partialorder %v685_v54, %v391_v57  ;;  %v447_v27 = vsel %vm446_vm8, %v444_v26, %v391_v57 }
 0x74e   : > { %v397_v58 = vsel %vm395_vm11, inf, %v377_v45 }
 0x74f   : > { %v399_v59 = vsel %vm278_vm2, %v397_v58, inf }
 0x750   : > { %v394_v61 = vpop.xlane.xlu0 %393  ;;  %400 = vmin.xlane.f32.xlu1 %v399_v59 }
 0x751   : > { %vm396_vm12 = vcmp.eq.f32.partialorder %v685_v54, %v394_v61 }
 0x752   : > { %v398_v62 = vsel %vm396_vm12, inf, %v378_v48 }
 0x753   : > { %v402_v0 = vsel %vm278_vm2, %v398_v62, inf }
 0x754   : > { %403 = vmin.xlane.f32.xlu0 %v402_v0 }
 0x7d9   : > { %v401_v1 = vpop.xlane.xlu1 %400 }
 0x7da   : > { %vm405_vm13 = vcmp.le.f32.partialorder %v397_v58, %v401_v1 }
 0x7db   : > { %v407_v2 = vsel %vm405_vm13, %v685_v54, 16.0 }
 0x7dc   : > { %v409_v3 = vsel %vm278_vm2, %v407_v2, inf }
 0x7dd   : > { %v404_v4 = vpop.xlane.xlu0 %403  ;;  %410 = vmin.xlane.f32.xlu1 %v409_v3 }
 0x7de   : > { %vm406_vm14 = vcmp.le.f32.partialorder %v398_v62, %v404_v4 }
 0x7df   : > { %v408_v5 = vsel %vm406_vm14, %v685_v54, 16.0 }
 0x7e0   : > { %v412_v6 = vsel %vm278_vm2, %v408_v5, inf }
 0x7e1   : > { %413 = vmin.xlane.f32.xlu0 %v412_v6 }
 0x866   : > { %v411_v7 = vpop.xlane.xlu1 %410 }
 0x867   : > { %vm415_vm15 = vcmp.eq.f32.partialorder %v685_v54, %v411_v7  ;;  %v450_v29 = vsel %vm449_vm9, %v447_v27, %v411_v7 }
 0x868   : > { %v417_v9 = vsel %vm415_vm15, inf, %v397_v58 }
 0x869   : > { %v419_v10 = vsel %vm278_vm2, %v417_v9, inf }
 0x86a   : > { %v414_v12 = vpop.xlane.xlu0 %413  ;;  %420 = vmin.xlane.f32.xlu1 %v419_v10 }
 0x86b   : > { %vm416_vm1 = vcmp.eq.f32.partialorder %v685_v54, %v414_v12 }
 0x86c   : > { %v418_v13 = vsel %vm416_vm1, inf, %v398_v62 }
 0x86d   : > { %v422_v14 = vsel %vm278_vm2, %v418_v13, inf }
 0x86e   : > { %423 = vmin.xlane.f32.xlu0 %v422_v14 }
 0x8f3   : > { %v421_v15 = vpop.xlane.xlu1 %420 }
 0x8f4   : > { %vm425_vm3 = vcmp.le.f32.partialorder %v417_v9, %v421_v15 }
 0x8f5   : > { %v427_v16 = vsel %vm425_vm3, %v685_v54, 16.0 }
 0x8f6   : > { %v429_v17 = vsel %vm278_vm2, %v427_v16, inf }
 0x8f7   : > { %v424_v18 = vpop.xlane.xlu0 %423  ;;  %430 = vmin.xlane.f32.xlu1 %v429_v17 }
 0x8f8   : > { %vm426_vm4 = vcmp.le.f32.partialorder %v418_v13, %v424_v18 }
 0x8f9   : > { %v428_v19 = vsel %vm426_vm4, %v685_v54, 16.0  ;;  %v437_v54 = vsel %vm435_vm5, %v696_v63, %v710_v11 }
 0x8fa   : > { %v432_v21 = vsel %vm278_vm2, %v428_v19, inf  ;;  %v440_v28 = vsel %vm438_vm6, %v437_v54, %v724_v23  ;;  %vm457_vm2 = vcmask 64512  }
 0x8fb   : > { %433 = vmin.xlane.f32.xlu0 %v432_v21  ;;  %v442_v8 = vsel %vm253_vm0, %v440_v28, %v738_v35 }
 0x8fc   : > { %v445_v30 = vsel %vm443_vm7, %v442_v8, %v752_v47 }
 0x8fd   : > { %v448_v32 = vsel %vm446_vm8, %v445_v30, %v394_v61 }
 0x8fe   : > { %v451_v63 = vsel %vm449_vm9, %v448_v32, %v414_v12 }
 0x980   : > { %v431_v60 = vpop.xlane.xlu1 %430 }
 0x981   : > { %v453_v20 = vsel %vm452_vm10, %v450_v29, %v431_v60 }
 0x982   : > { %v573_v31 = vtrunc.f32 %v453_v20 }
 0x984   : > { %v574_v11 = vcvt.f32.s32 %v573_v31  ;;  %v434_v23 = vpop.xlane.xlu0 %433 }
 0x985   : > { %v454_v33 = vsel %vm452_vm10, %v451_v63, %v434_v23 }
 0x986   : > { %458 = vst.msk [vmem:[%s198_s23] sm:$0xff] %vm457_vm2, %v574_v11  ;;  %v575_v34 = vtrunc.f32 %v454_v33 }
 0x988   : > { %v576_v35 = vcvt.f32.s32 %v575_v34 }
 0x98a   : > { %459 = vst.msk [vmem:[%s198_s23 + $0x8] sm:$0xff] %vm457_vm2, %v576_v35 }
 0x98b PF: > { %s12_s11 = sadd.s32 1, %s631_s11   ;;  %s808_s9 = smov %s627_s10 }
 0x98c   : > { %p9_p5 = scmp.ge.s32.totalorder %s12_s11, 4   ;;  %s809_s10 = smov %s811_s12 }
 0x98e   :  { %11 = sbr.rel (!%p9_p5) target bundleno = 2 (0x2), region = 61 }

// kernel: seed_generator_forward.4
= control target key start
LH: loop header
LB: loop body
LE: loop exit
PB: predicated region body
PF: predicated region fallthrough
CT: control target
= control target key end

     0   :  { %s2340_s30 = smov 0   ;;  %s2342_s10 = smov 0   ;;  %s2866_s0 = inlined_call_operand.vmem [shape: f32[2,16,256], index: 0, kind: input, shape index: {}]   ;;  %s2867_s1 = inlined_call_operand.vmem [shape: bf16[256,640], index: 1, kind: input, shape index: {}]   ;;  %s2868_s2 = inlined_call_operand.vmem [shape: f32[1,640], index: 2, kind: input, shape index: {}]   ;;  %s2869_s3 = inlined_call_operand.vmem [shape: bf16[256,256], index: 3, kind: input, shape index: {}]   ;;  %s2870_s4 = inlined_call_operand.vmem [shape: f32[1,256], index: 4, kind: input, shape index: {}]   ;;  %s2871_s5 = inlined_call_operand.vmem [shape: bf16[256,192], index: 5, kind: input, shape index: {}]   ;;  %s2872_s6 = inlined_call_operand.vmem [shape: f32[1,192], index: 6, kind: input, shape index: {}]   ;;  %s2873_s7 = inlined_call_operand.vmem [shape: bf16[2,16,128], index: 7, kind: output, shape index: {0}]   ;;  %s2874_s8 = inlined_call_operand.vmem [shape: bf16[2,16,64], index: 8, kind: output, shape index: {1}]   ;;  %s2875_s9 = inlined_call_operand.vmem [shape: f32[2,16,128], index: 9, kind: output, shape index: {2}]  }
   0x1   :  { %s2344_s11 = smov 0  }
   0x2 LB: > { %s32_s12 = sadd.s32 1, %s2283_s10  ;;  %p1833_p0 = scmp.ge.s32.totalorder %s2287_s11, 1  ;;  %s2287_s11 = sphi %s2344_s11, %s20_s11   ;;  %s2283_s10 = sphi %s2342_s10, %s2877_s10   ;;  %s2279_s30 = sphi %s2340_s30, %s2876_s30  }
   0x3   : > { %p34_p1 = scmp.ge.s32.totalorder %s32_s12, 2  ;;  %p318_p2 = scmp.lt.s32.totalorder %s2287_s11, 3 }
   0x5   : > { %s2879_s12 = smov (%p34_p1, %s32_s12), 0  ;;  %p319_p3 = pnand %p1833_p0, %p318_p2 }
   0x6   : > { %p382_p4 = scmp.lt.s32.totalorder (!%p319_p3), %s2279_s30, 1  ;;  %s2289_s23 = smov (!%p319_p3), 64  }
   0x7   : > { %322 = sbr.rel (%p319_p3) target bundleno = 813 (0x32d), region = 48 }
   0xc   : > { %v2057_v0 = vld [vmem:[%s2867_s1 + $0x11c] ss:$20 sps:$4 sm:$0xff]   ;;  %v2059_v1 = vld [vmem:[%s2867_s1 + $0x118] ss:$20 sps:$4 sm:$0xff]   ;;  %v2060_v2 = vld [vmem:[%s2867_s1 + $0xf4] ss:$20 sps:$4 sm:$0xff]  }
   0xd   : > { %968 = vmatprep.subr.bf16.mxu0 %v2057_v0  ;;  %v2062_v3 = vld [vmem:[%s2867_s1 + $0xf0] ss:$20 sps:$4 sm:$0xff]   ;;  %v2063_v4 = vld [vmem:[%s2867_s1 + $0xcc] ss:$20 sps:$4 sm:$0xff]   ;;  %v2065_v5 = vld [vmem:[%s2867_s1 + $0xc8] ss:$20 sps:$4 sm:$0xff]  }
   0xe   : > { %969 = vmatpush1.bf16.msra.mxu0 %v2059_v1  ;;  %v2066_v6 = vld [vmem:[%s2867_s1 + $0xa4] ss:$20 sps:$4 sm:$0xff]   ;;  %v2068_v7 = vld [vmem:[%s2867_s1 + $0xa0] ss:$20 sps:$4 sm:$0xff]   ;;  %s2881_s30 = smov (!%p382_p4, %s2279_s30), 1  ;;  %vm1634_vm0 = vcmask 519168  }
   0xf   : > { %970 = vmatprep.subr.bf16.mxu0 %v2060_v2  ;;  %v2069_v8 = vld [vmem:[%s2867_s1 + $0x7c] ss:$20 sps:$4 sm:$0xff]   ;;  %v2071_v9 = vld [vmem:[%s2867_s1 + $0x78] ss:$20 sps:$4 sm:$0xff]   ;;  %s1992_s16 = sshll.u32 %s2881_s30, 5  ;;  %s1993_s26 = sshll.u32 %s2881_s30, 3 }
  0x10   : > { %v2072_v10 = vld [vmem:[%s2867_s1 + $0x54] ss:$20 sps:$4 sm:$0xff]   ;;  %s2397_s21 = scalar_lea.vmem %s2866_s0, %s1992_s16  ;;  %v2074_v11 = vld [vmem:[%s2867_s1 + $0x50] ss:$20 sps:$4 sm:$0xff]   ;;  %v2075_v12 = vld [vmem:[%s2867_s1 + $0x2c] ss:$20 sps:$4 sm:$0xff]   ;;  %s410_s29 = scalar_lea.vmem %s2874_s8, %s1993_s26 }
  0x11   : > { %v424_v13 = vld [vmem:[%s2397_s21 + $0x8] sm:$0xff]  ;;  %v426_v14 = vld [vmem:[%s2397_s21 + $0x18] sm:$0xff]  ;;  %v2107_v19 = vld [vmem:[%s2867_s1 + $0x120] ss:$20 sps:$4 sm:$0xff]   ;;  %s1995_s14 = sshll.u32 %s2881_s30, 4  ;;  %vm1609_vm1 = vcmask 523264   ;;  %s400_s19 = scalar_lea.vmem %s2873_s7, %s1993_s26 }
  0x12   : > { %971 = vmatpush1.bf16.msra.mxu0 %v2062_v3  ;;  %v2077_v15 = vld [vmem:[%s2867_s1 + $0x28] ss:$20 sps:$4 sm:$0xff]   ;;  %v2078_v16 = vld [vmem:[%s2867_s1 + $0x4] ss:$20 sps:$4 sm:$0xff]   ;;  %v2413_v17 = vpack.c.bf16 %v426_v14, %v424_v13  ;;  %v2080_v22 = vld [vmem:[%s2867_s1] ss:$20 sps:$4 sm:$0xff]   ;;  %s420_s17 = scalar_lea.vmem %s2875_s9, %s1995_s14 }
  0x13   : > { %972 = vmatprep.subr.bf16.mxu0 %v2063_v4  ;;  %v2105_v18 = vld [vmem:[%s2867_s1 + $0x124] ss:$20 sps:$4 sm:$0xff]   ;;  %v2108_v20 = vld [vmem:[%s2867_s1 + $0xfc] ss:$20 sps:$4 sm:$0xff]   ;;  %v2111_v23 = vld [vmem:[%s2867_s1 + $0xd4] ss:$20 sps:$4 sm:$0xff]  }
  0x14   : > { %1000 = vmatprep.mubr.bf16.mxu0 %v2413_v17  ;;  %1011 = vmatprep.subr.bf16.mxu1 %v2105_v18  ;;  %v2110_v21 = vld [vmem:[%s2867_s1 + $0xf8] ss:$20 sps:$4 sm:$0xff]   ;;  %v2081_v24 = vld [vmem:[%s2867_s1 + $0x25c] ss:$20 sps:$4 sm:$0xff]   ;;  %v2084_v28 = vld [vmem:[%s2867_s1 + $0x234] ss:$20 sps:$4 sm:$0xff]  }
  0x15   : > { %1043 = vmatprep.mubr.bf16.mxu1 %v2413_v17  ;;  %1012 = vmatpush1.bf16.msra.mxu1 %v2107_v19  ;;  %v2113_v25 = vld [vmem:[%s2867_s1 + $0xd0] ss:$20 sps:$4 sm:$0xff]   ;;  %v2083_v26 = vld [vmem:[%s2867_s1 + $0x258] ss:$20 sps:$4 sm:$0xff]   ;;  %v2116_v29 = vld [vmem:[%s2867_s1 + $0xa8] ss:$20 sps:$4 sm:$0xff]  }
  0x16   : > { %973 = vmatpush1.bf16.msra.mxu0 %v2065_v5  ;;  %1013 = vmatprep.subr.bf16.mxu1 %v2108_v20  ;;  %v2114_v27 = vld [vmem:[%s2867_s1 + $0xac] ss:$20 sps:$4 sm:$0xff]   ;;  %v2086_v30 = vld [vmem:[%s2867_s1 + $0x230] ss:$20 sps:$4 sm:$0xff]   ;;  %v2089_v34 = vld [vmem:[%s2867_s1 + $0x208] ss:$20 sps:$4 sm:$0xff]  }
  0x17   : > { %974 = vmatprep.subr.bf16.mxu0 %v2066_v6  ;;  %v2117_v31 = vld [vmem:[%s2867_s1 + $0x84] ss:$20 sps:$4 sm:$0xff]   ;;  %v2087_v32 = vld [vmem:[%s2867_s1 + $0x20c] ss:$20 sps:$4 sm:$0xff]   ;;  %v2120_v35 = vld [vmem:[%s2867_s1 + $0x5c] ss:$20 sps:$4 sm:$0xff]  }
  0x18   : > { %v2119_v33 = vld [vmem:[%s2867_s1 + $0x80] ss:$20 sps:$4 sm:$0xff]   ;;  %v2090_v36 = vld [vmem:[%s2867_s1 + $0x1e4] ss:$20 sps:$4 sm:$0xff]   ;;  %v2093_v40 = vld [vmem:[%s2867_s1 + $0x1bc] ss:$20 sps:$4 sm:$0xff]  }
  0x19   : > { %1014 = vmatpush1.bf16.msra.mxu1 %v2110_v21  ;;  %v2122_v37 = vld [vmem:[%s2867_s1 + $0x58] ss:$20 sps:$4 sm:$0xff]   ;;  %v2092_v38 = vld [vmem:[%s2867_s1 + $0x1e0] ss:$20 sps:$4 sm:$0xff]   ;;  %v2125_v41 = vld [vmem:[%s2867_s1 + $0x30] ss:$20 sps:$4 sm:$0xff]  }
  0x1a   : > { %975 = vmatpush1.bf16.msra.mxu0 %v2068_v7  ;;  %1015 = vmatprep.subr.bf16.mxu1 %v2111_v23  ;;  %v2123_v39 = vld [vmem:[%s2867_s1 + $0x34] ss:$20 sps:$4 sm:$0xff]   ;;  %v2095_v42 = vld [vmem:[%s2867_s1 + $0x1b8] ss:$20 sps:$4 sm:$0xff]   ;;  %v2098_v46 = vld [vmem:[%s2867_s1 + $0x190] ss:$20 sps:$4 sm:$0xff]  }
  0x1b   : > { %976 = vmatprep.subr.bf16.mxu0 %v2069_v8  ;;  %v2126_v43 = vld [vmem:[%s2867_s1 + $0xc] ss:$20 sps:$4 sm:$0xff]   ;;  %v2096_v44 = vld [vmem:[%s2867_s1 + $0x194] ss:$20 sps:$4 sm:$0xff]   ;;  %v2129_v47 = vld [vmem:[%s2867_s1 + $0x264] ss:$20 sps:$4 sm:$0xff]  }
  0x1c   : > { %v2128_v45 = vld [vmem:[%s2867_s1 + $0x8] ss:$20 sps:$4 sm:$0xff]   ;;  %v2099_v48 = vld [vmem:[%s2867_s1 + $0x16c] ss:$20 sps:$4 sm:$0xff]   ;;  %v2102_v52 = vld [vmem:[%s2867_s1 + $0x144] ss:$20 sps:$4 sm:$0xff]  }
  0x1d   : > { %1016 = vmatpush1.bf16.msra.mxu1 %v2113_v25  ;;  %v2131_v49 = vld [vmem:[%s2867_s1 + $0x260] ss:$20 sps:$4 sm:$0xff]   ;;  %v2101_v50 = vld [vmem:[%s2867_s1 + $0x168] ss:$20 sps:$4 sm:$0xff]   ;;  %v2134_v55 = vld [vmem:[%s2867_s1 + $0x238] ss:$20 sps:$4 sm:$0xff]  }
  0x1e   : > { %977 = vmatpush1.bf16.msra.mxu0 %v2071_v9  ;;  %1017 = vmatprep.subr.bf16.mxu1 %v2114_v27  ;;  %v2132_v51 = vld [vmem:[%s2867_s1 + $0x23c] ss:$20 sps:$4 sm:$0xff]   ;;  %v2104_v53 = vld [vmem:[%s2867_s1 + $0x140] ss:$20 sps:$4 sm:$0xff]   ;;  %v2141_v62 = vld [vmem:[%s2867_s1 + $0x1c4] ss:$20 sps:$4 sm:$0xff]  }
  0x1f   : > { %978 = vmatprep.subr.bf16.mxu0 %v2072_v10  ;;  %v423_v54 = vld [vmem:[%s2397_s21] sm:$0xff]  ;;  %v425_v56 = vld [vmem:[%s2397_s21 + $0x10] sm:$0xff]  ;;  %v2140_v61 = vld [vmem:[%s2867_s1 + $0x1e8] ss:$20 sps:$4 sm:$0xff]  }
  0x20   : > { %v2135_v57 = vld [vmem:[%s2867_s1 + $0x214] ss:$20 sps:$4 sm:$0xff]   ;;  %v2137_v58 = vld [vmem:[%s2867_s1 + $0x210] ss:$20 sps:$4 sm:$0xff]   ;;  %v2138_v59 = vld [vmem:[%s2867_s1 + $0x1ec] ss:$20 sps:$4 sm:$0xff]   ;;  %v2539_v60 = vpack.c.bf16 %v425_v56, %v423_v54 }
  0x21   : > { %1018 = vmatpush1.bf16.msra.mxu1 %v2116_v29  ;;  %v2143_v63 = vld [vmem:[%s2867_s1 + $0x1c0] ss:$20 sps:$4 sm:$0xff]   ;;  %v2144_v0 = vld [vmem:[%s2867_s1 + $0x19c] ss:$20 sps:$4 sm:$0xff]   ;;  %v2146_v1 = vld [vmem:[%s2867_s1 + $0x198] ss:$20 sps:$4 sm:$0xff]  }
  0x22   : > { %979 = vmatpush1.bf16.msra.mxu0 %v2074_v11  ;;  %1019 = vmatprep.subr.bf16.mxu1 %v2117_v31  ;;  %v2147_v2 = vld [vmem:[%s2867_s1 + $0x174] ss:$20 sps:$4 sm:$0xff]   ;;  %v2149_v3 = vld [vmem:[%s2867_s1 + $0x170] ss:$20 sps:$4 sm:$0xff]   ;;  %v2150_v4 = vld [vmem:[%s2867_s1 + $0x14c] ss:$20 sps:$4 sm:$0xff]  }
  0x23   : > { %980 = vmatprep.subr.bf16.mxu0 %v2075_v12  ;;  %v2152_v5 = vld [vmem:[%s2867_s1 + $0x148] ss:$20 sps:$4 sm:$0xff]   ;;  %v2153_v7 = vld [vmem:[%s2869_s3 + $0x70] ss:$8 sps:$4 sm:$0xff]   ;;  %v2158_v8 = vld [vmem:[%s2869_s3 + $0x64] ss:$8 sps:$4 sm:$0xff]  }
  0x24   : > { %v2155_v6 = vld [vmem:[%s2869_s3 + $0x74] ss:$8 sps:$4 sm:$0xff]   ;;  %v2156_v9 = vld [vmem:[%s2869_s3 + $0x60] ss:$8 sps:$4 sm:$0xff]   ;;  %v2159_v11 = vld [vmem:[%s2869_s3 + $0x50] ss:$8 sps:$4 sm:$0xff]  }
  0x25   : > { %1020 = vmatpush1.bf16.msra.mxu1 %v2119_v33  ;;  %v2161_v10 = vld [vmem:[%s2869_s3 + $0x54] ss:$8 sps:$4 sm:$0xff]   ;;  %v2164_v12 = vld [vmem:[%s2869_s3 + $0x44] ss:$8 sps:$4 sm:$0xff]   ;;  %v2162_v13 = vld [vmem:[%s2869_s3 + $0x40] ss:$8 sps:$4 sm:$0xff]  }
  0x26   : > { %981 = vmatpush1.bf16.msra.mxu0 %v2077_v15  ;;  %1021 = vmatprep.subr.bf16.mxu1 %v2120_v35  ;;  %v2167_v14 = vld [vmem:[%s2869_s3 + $0x34] ss:$8 sps:$4 sm:$0xff]   ;;  %v2165_v15 = vld [vmem:[%s2869_s3 + $0x30] ss:$8 sps:$4 sm:$0xff]   ;;  %v2176_v20 = vld [vmem:[%s2869_s3 + $0x4] ss:$8 sps:$4 sm:$0xff]  }
  0x27   : > { %982 = vmatprep.subr.bf16.mxu0 %v2078_v16  ;;  %v2170_v16 = vld [vmem:[%s2869_s3 + $0x24] ss:$8 sps:$4 sm:$0xff]   ;;  %v2173_v18 = vld [vmem:[%s2869_s3 + $0x14] ss:$8 sps:$4 sm:$0xff]   ;;  %v2171_v19 = vld [vmem:[%s2869_s3 + $0x10] ss:$8 sps:$4 sm:$0xff]  }
  0x28   : > { %v2174_v21 = vld [vmem:[%s2869_s3] ss:$8 sps:$4 sm:$0xff]   ;;  %v2177_v23 = vld [vmem:[%s2869_s3 + $0xf0] ss:$8 sps:$4 sm:$0xff]   ;;  %v2219_v54 = vld [vmem:[%s2871_s5 + $0x74] ss:$8 sps:$4 sm:$0xff]  }
  0x29   : > { %1022 = vmatpush1.bf16.msra.mxu1 %v2122_v37  ;;  %v2180_v25 = vld [vmem:[%s2869_s3 + $0xe0] ss:$8 sps:$4 sm:$0xff]   ;;  %v2183_v27 = vld [vmem:[%s2869_s3 + $0xd0] ss:$8 sps:$4 sm:$0xff]   ;;  %v2222_v56 = vld [vmem:[%s2871_s5 + $0x64] ss:$8 sps:$4 sm:$0xff]  }
  0x2a   : > { %983 = vmatpush1.bf16.msra.mxu0 %v2080_v22  ;;  %1023 = vmatprep.subr.bf16.mxu1 %v2123_v39  ;;  %v2179_v22 = vld [vmem:[%s2869_s3 + $0xf4] ss:$8 sps:$4 sm:$0xff]   ;;  %v2186_v29 = vld [vmem:[%s2869_s3 + $0xc0] ss:$8 sps:$4 sm:$0xff]   ;;  %v2189_v31 = vld [vmem:[%s2869_s3 + $0xb0] ss:$8 sps:$4 sm:$0xff]  }
  0x2b   : > { %984 = vmatprep.subr.bf16.mxu0 %v2081_v24  ;;  %v2182_v24 = vld [vmem:[%s2869_s3 + $0xe4] ss:$8 sps:$4 sm:$0xff]   ;;  %v2192_v33 = vld [vmem:[%s2869_s3 + $0xa0] ss:$8 sps:$4 sm:$0xff]   ;;  %v2195_v35 = vld [vmem:[%s2869_s3 + $0x90] ss:$8 sps:$4 sm:$0xff]  }
  0x2c   : > { %v2201_v37 = vld [vmem:[%s2867_s1 + $0x268] ss:$20 sps:$4 sm:$0xff]   ;;  %v2203_v39 = vld [vmem:[%s2867_s1 + $0x240] ss:$20 sps:$4 sm:$0xff]  }
  0x2d   : > { %1024 = vmatpush1.bf16.msra.mxu1 %v2125_v41  ;;  %v2204_v41 = vld [vmem:[%s2867_s1 + $0x100] ss:$20 sps:$4 sm:$0xff]  }
  0x2e   : > { %985 = vmatpush2.bf16.msra.mxu0 %v2083_v26  ;;  %1025 = vmatprep.subr.bf16.mxu1 %v2126_v43  ;;  %v2185_v26 = vld [vmem:[%s2869_s3 + $0xd4] ss:$8 sps:$4 sm:$0xff]   ;;  %v2206_v43 = vld [vmem:[%s2867_s1 + $0xd8] ss:$20 sps:$4 sm:$0xff]  }
  0x2f   : > { %986 = vmatprep.subr.bf16.mxu0 %v2084_v28  ;;  %v2188_v28 = vld [vmem:[%s2869_s3 + $0xc4] ss:$8 sps:$4 sm:$0xff]  }
  0x31   : > { %1026 = vmatpush1.bf16.msra.mxu1 %v2128_v45  ;;  %v2208_v45 = vld [vmem:[%s2867_s1 + $0xb0] ss:$20 sps:$4 sm:$0xff]  }
  0x32   : > { %987 = vmatpush2.bf16.msra.mxu0 %v2086_v30  ;;  %1027 = vmatprep.subr.bf16.mxu1 %v2129_v47  ;;  %v2191_v30 = vld [vmem:[%s2869_s3 + $0xb4] ss:$8 sps:$4 sm:$0xff]  }
  0x33   : > { %988 = vmatprep.subr.bf16.mxu0 %v2087_v32  ;;  %v2194_v32 = vld [vmem:[%s2869_s3 + $0xa4] ss:$8 sps:$4 sm:$0xff]   ;;  %v2210_v47 = vld [vmem:[%s2867_s1 + $0x88] ss:$20 sps:$4 sm:$0xff]  }
  0x35   : > { %1028 = vmatpush2.bf16.msra.mxu1 %v2131_v49  ;;  %v2212_v49 = vld [vmem:[%s2867_s1 + $0x60] ss:$20 sps:$4 sm:$0xff]  }
  0x36   : > { %989 = vmatpush2.bf16.msra.mxu0 %v2089_v34  ;;  %1029 = vmatprep.subr.bf16.mxu1 %v2132_v51  ;;  %v2197_v34 = vld [vmem:[%s2869_s3 + $0x94] ss:$8 sps:$4 sm:$0xff]   ;;  %v2214_v51 = vld [vmem:[%s2867_s1 + $0x38] ss:$20 sps:$4 sm:$0xff]  }
  0x37   : > { %990 = vmatprep.subr.bf16.mxu0 %v2090_v36  ;;  %v2200_v36 = vld [vmem:[%s2869_s3 + $0x84] ss:$8 sps:$4 sm:$0xff]  }
  0x39   : > { %1030 = vmatpush2.bf16.msra.mxu1 %v2134_v55  ;;  %v2217_v55 = vld [vmem:[%s2871_s5 + $0x70] ss:$8 sps:$4 sm:$0xff]  }
  0x3a   : > { %991 = vmatpush2.bf16.msra.mxu0 %v2092_v38  ;;  %1031 = vmatprep.subr.bf16.mxu1 %v2135_v57  ;;  %v2202_v38 = vld [vmem:[%s2867_s1 + $0x128] ss:$20 sps:$4 sm:$0xff]  }
  0x3b   : > { %992 = vmatprep.subr.bf16.mxu0 %v2093_v40  ;;  %v2198_v40 = vld [vmem:[%s2869_s3 + $0x80] ss:$8 sps:$4 sm:$0xff]  }
  0x3c   : > { %v2220_v57 = vld [vmem:[%s2871_s5 + $0x60] ss:$8 sps:$4 sm:$0xff]  }
  0x3d   : > { %1032 = vmatpush2.bf16.msra.mxu1 %v2137_v58  ;;  %v2225_v58 = vld [vmem:[%s2871_s5 + $0x54] ss:$8 sps:$4 sm:$0xff]  }
  0x3e   : > { %993 = vmatpush2.bf16.msra.mxu0 %v2095_v42  ;;  %1033 = vmatprep.subr.bf16.mxu1 %v2138_v59  ;;  %v2205_v42 = vld [vmem:[%s2867_s1 + $0x218] ss:$20 sps:$4 sm:$0xff]  }
  0x3f   : > { %994 = vmatprep.subr.bf16.mxu0 %v2096_v44  ;;  %v2207_v44 = vld [vmem:[%s2867_s1 + $0x1f0] ss:$20 sps:$4 sm:$0xff]  }
  0x40   : > { %v2223_v59 = vld [vmem:[%s2871_s5 + $0x50] ss:$8 sps:$4 sm:$0xff]  }
  0x41   : > { %1034 = vmatpush2.bf16.msra.mxu1 %v2140_v61  ;;  %v2226_v61 = vld [vmem:[%s2871_s5 + $0x40] ss:$8 sps:$4 sm:$0xff]  }
  0x42   : > { %995 = vmatpush2.bf16.msra.mxu0 %v2098_v46  ;;  %1035 = vmatprep.subr.bf16.mxu1 %v2141_v62  ;;  %v2209_v46 = vld [vmem:[%s2867_s1 + $0x1c8] ss:$20 sps:$4 sm:$0xff]  }
  0x43   : > { %996 = vmatprep.subr.bf16.mxu0 %v2099_v48  ;;  %v2211_v48 = vld [vmem:[%s2867_s1 + $0x1a0] ss:$20 sps:$4 sm:$0xff]  }
  0x44   : > { %v2231_v62 = vld [vmem:[%s2871_s5 + $0x34] ss:$8 sps:$4 sm:$0xff]  }
  0x45   : > { %1036 = vmatpush2.bf16.msra.mxu1 %v2143_v63  ;;  %v2229_v63 = vld [vmem:[%s2871_s5 + $0x30] ss:$8 sps:$4 sm:$0xff]  }
  0x46   : > { %997 = vmatpush2.bf16.msra.mxu0 %v2101_v50  ;;  %1037 = vmatprep.subr.bf16.mxu1 %v2144_v0  ;;  %v2213_v50 = vld [vmem:[%s2867_s1 + $0x178] ss:$20 sps:$4 sm:$0xff]  }
  0x47   : > { %998 = vmatprep.subr.bf16.mxu0 %v2102_v52  ;;  %v2215_v52 = vld [vmem:[%s2867_s1 + $0x150] ss:$20 sps:$4 sm:$0xff]  }
  0x48   : > { %v2234_v0 = vld [vmem:[%s2871_s5 + $0x24] ss:$8 sps:$4 sm:$0xff]  }
  0x49   : > { %1038 = vmatpush2.bf16.msra.mxu1 %v2146_v1  ;;  %v2232_v1 = vld [vmem:[%s2871_s5 + $0x20] ss:$8 sps:$4 sm:$0xff]  }
  0x4a   : > { %999 = vmatpush2.bf16.msra.mxu0 %v2104_v53  ;;  %1039 = vmatprep.subr.bf16.mxu1 %v2147_v2  ;;  %v2216_v53 = vld [vmem:[%s2867_s1 + $0x10] ss:$20 sps:$4 sm:$0xff]   ;;  %v2237_v2 = vld [vmem:[%s2871_s5 + $0x14] ss:$8 sps:$4 sm:$0xff]  }
  0x4b   : > { %2005 = vmatprep.subr.bf16.mxu0 %v2201_v37  ;;  %v2258_v37 = vld [vmem:[%s2871_s5 + $0xa4] ss:$8 sps:$4 sm:$0xff]  }
  0x4d   : > { %1001 = vmatmul.mubr.bf16.vlgmr.msra.gmra.mxu0 %v2539_v60  ;;  %1040 = vmatpush2.bf16.msra.mxu1 %v2149_v3  ;;  %v2235_v3 = vld [vmem:[%s2871_s5 + $0x10] ss:$8 sps:$4 sm:$0xff]  }
  0x4e   : > { %1086 = vmatprep.mubr.bf16.mxu0 %v2413_v17  ;;  %1041 = vmatprep.subr.bf16.mxu1 %v2150_v4  ;;  %v2168_v17 = vld [vmem:[%s2869_s3 + $0x20] ss:$8 sps:$4 sm:$0xff]   ;;  %v2240_v4 = vld [vmem:[%s2871_s5 + $0x4] ss:$8 sps:$4 sm:$0xff]  }
  0x4f   : > { %2006 = vmatpush3.bf16.msra.mxu0 %v2202_v38  ;;  %v2256_v38 = vld [vmem:[%s2871_s5 + $0xa0] ss:$8 sps:$4 sm:$0xff]  }
  0x50   : > { %2007 = vmatprep.subr.bf16.mxu0 %v2203_v39  ;;  %v2261_v39 = vld [vmem:[%s2871_s5 + $0x94] ss:$8 sps:$4 sm:$0xff]  }
  0x51   : > { %1042 = vmatpush2.bf16.msra.mxu1 %v2152_v5  ;;  %v2238_v5 = vld [vmem:[%s2871_s5] ss:$8 sps:$4 sm:$0xff]  }
  0x52   : > { %1305 = vmatprep.subr.bf16.mxu1 %v2155_v6  ;;  %v2243_v6 = vld [vmem:[%s2871_s5 + $0xf4] ss:$8 sps:$4 sm:$0xff]  }
  0x53   : > { %2008 = vmatpush3.bf16.msra.mxu0 %v2204_v41  ;;  %v2264_v41 = vld [vmem:[%s2871_s5 + $0x84] ss:$8 sps:$4 sm:$0xff]  }
  0x54   : > { %1044 = vmatmul.mubr.bf16.vlgmr.msra.gmra.mxu1 %v2539_v60  ;;  %2009 = vmatprep.subr.bf16.mxu0 %v2205_v42  ;;  %v2262_v42 = vld [vmem:[%s2871_s5 + $0x80] ss:$8 sps:$4 sm:$0xff]  }
  0x55   : > { %1306 = vmatpush1.bf16.msra.mxu1 %v2153_v7  ;;  %v2241_v7 = vld [vmem:[%s2871_s5 + $0xf0] ss:$8 sps:$4 sm:$0xff]  }
  0x56   : > { %1307 = vmatprep.subr.bf16.mxu1 %v2158_v8  ;;  %v2246_v8 = vld [vmem:[%s2871_s5 + $0xe4] ss:$8 sps:$4 sm:$0xff]  }
  0x57   : > { %2010 = vmatpush3.bf16.msra.mxu0 %v2206_v43 }
  0x58   : > { %2011 = vmatprep.subr.bf16.mxu0 %v2207_v44 }
  0x59   : > { %1308 = vmatpush1.bf16.msra.mxu1 %v2156_v9  ;;  %v2244_v9 = vld [vmem:[%s2871_s5 + $0xe0] ss:$8 sps:$4 sm:$0xff]  }
  0x5a   : > { %1309 = vmatprep.subr.bf16.mxu1 %v2161_v10  ;;  %v2249_v10 = vld [vmem:[%s2871_s5 + $0xd4] ss:$8 sps:$4 sm:$0xff]  }
  0x5b   : > { %2012 = vmatpush3.bf16.msra.mxu0 %v2208_v45 }
  0x5c   : > { %2013 = vmatprep.subr.bf16.mxu0 %v2209_v46 }
  0x5d   : > { %1310 = vmatpush1.bf16.msra.mxu1 %v2159_v11  ;;  %v2247_v11 = vld [vmem:[%s2871_s5 + $0xd0] ss:$8 sps:$4 sm:$0xff]  }
  0x5e   : > { %1311 = vmatprep.subr.bf16.mxu1 %v2164_v12  ;;  %v2252_v12 = vld [vmem:[%s2871_s5 + $0xc4] ss:$8 sps:$4 sm:$0xff]  }
  0x5f   : > { %2014 = vmatpush3.bf16.msra.mxu0 %v2210_v47 }
  0x60   : > { %2015 = vmatprep.subr.bf16.mxu0 %v2211_v48 }
  0x61   : > { %1312 = vmatpush1.bf16.msra.mxu1 %v2162_v13  ;;  %v2250_v13 = vld [vmem:[%s2871_s5 + $0xc0] ss:$8 sps:$4 sm:$0xff]  }
  0x62   : > { %1313 = vmatprep.subr.bf16.mxu1 %v2167_v14  ;;  %v2255_v14 = vld [vmem:[%s2871_s5 + $0xb4] ss:$8 sps:$4 sm:$0xff]  }
  0x63   : > { %2016 = vmatpush3.bf16.msra.mxu0 %v2212_v49 }
  0x64   : > { %2017 = vmatprep.subr.bf16.mxu0 %v2213_v50 }
  0x65   : > { %1314 = vmatpush1.bf16.msra.mxu1 %v2165_v15  ;;  %v2253_v15 = vld [vmem:[%s2871_s5 + $0xb0] ss:$8 sps:$4 sm:$0xff]  }
  0x66   : > { %1315 = vmatprep.subr.bf16.mxu1 %v2170_v16  ;;  %v527_v16 = vlaneseq }
  0x67   : > { %2018 = vmatpush3.bf16.msra.mxu0 %v2214_v51 }
  0x68   : > { %2019 = vmatprep.subr.bf16.mxu0 %v2215_v52 }
  0x69   : > { %1316 = vmatpush1.bf16.msra.mxu1 %v2168_v17  ;;  %v528_v17 = vshrl.u32 %v527_v16, 7 }
  0x6a   : > { %1317 = vmatprep.subr.bf16.mxu1 %v2173_v18 }
  0x6b   : > { %2020 = vmatpush3.bf16.msra.mxu0 %v2216_v53  ;;  %v2794_v18 = vsub.s32 1, %v528_v17  ;;  %v545_v43 = vsub.s32 4, %v528_v17 }
  0x6c   : > { %1558 = vmatprep.subr.bf16.mxu0 %v2219_v54 }
  0x6d   : > { %1318 = vmatpush1.bf16.msra.mxu1 %v2171_v19  ;;  %v2796_v19 = vsub.s32 0, %v528_v17 }
  0x6e   : > { %1319 = vmatprep.subr.bf16.mxu1 %v2176_v20  ;;  %1087 = vmatmul.mubr.bf16.vlgmr.msra.gmra.mxu0 %v2539_v60  ;;  %v2228_v60 = vld [vmem:[%s2871_s5 + $0x44] ss:$8 sps:$4 sm:$0xff]  }
  0x6f   : > { %1559 = vmatpush1.bf16.msra.mxu0 %v2217_v55  ;;  %v525_v20 = vld [vmem:[%s2868_s2] sm:$0x1f] }
  0x70   : > { %1560 = vmatprep.subr.bf16.mxu0 %v2222_v56  ;;  %v546_v45 = vrot.slane %v525_v20, %v545_v43 }
  0x71   : > { %1320 = vmatpush1.bf16.msra.mxu1 %v2174_v21 }
  0x72   : > { %1321 = vmatprep.subr.bf16.mxu1 %v2179_v22  ;;  %v534_v22 = vrot.slane %v525_v20, %v2794_v18 }
  0x73   : > { %1561 = vmatpush1.bf16.msra.mxu0 %v2220_v57  ;;  %v537_v57 = vsub.s32 2, %v528_v17 }
  0x74   : > { %1562 = vmatprep.subr.bf16.mxu0 %v2225_v58 }
  0x75   : > { %1322 = vmatpush2.bf16.msra.mxu1 %v2177_v23  ;;  %v530_v23 = vrot.slane %v525_v20, %v2796_v19 }
  0x76   : > { %1323 = vmatprep.subr.bf16.mxu1 %v2182_v24 }
  0x77   : > { %1563 = vmatpush1.bf16.msra.mxu0 %v2223_v59  ;;  %v541_v59 = vsub.s32 3, %v528_v17 }
  0x78   : > { %1564 = vmatprep.subr.bf16.mxu0 %v2228_v60  ;;  %v1133_v60 = vld [vmem:[%s2870_s4] sm:$0x3] }
  0x79   : > { %1324 = vmatpush2.bf16.msra.mxu1 %v2180_v25 }
  0x7a   : > { %1325 = vmatprep.subr.bf16.mxu1 %v2185_v26 }
  0x7b   : > { %1565 = vmatpush1.bf16.msra.mxu0 %v2226_v61 }
  0x7c   : > { %1566 = vmatprep.subr.bf16.mxu0 %v2231_v62  ;;  %v1142_v62 = vrot.slane %v1133_v60, %v2794_v18 }
  0x7d   : > { %1326 = vmatpush2.bf16.msra.mxu1 %v2183_v27 }
  0x7e   : > { %1327 = vmatprep.subr.bf16.mxu1 %v2188_v28 }
  0x7f   : > { %1567 = vmatpush1.bf16.msra.mxu0 %v2229_v63  ;;  %v538_v63 = vrot.slane %v525_v20, %v537_v57 }
  0x80   : > { %1568 = vmatprep.subr.bf16.mxu0 %v2234_v0  ;;  %v1138_v0 = vrot.slane %v1133_v60, %v2796_v19 }
  0x81   : > { %1328 = vmatpush2.bf16.msra.mxu1 %v2186_v29 }
  0x82   : > { %1329 = vmatprep.subr.bf16.mxu1 %v2191_v30 }
  0x83   : > { %1569 = vmatpush1.bf16.msra.mxu0 %v2232_v1 }
  0x84   : > { %1570 = vmatprep.subr.bf16.mxu0 %v2237_v2  ;;  %v542_v2 = vrot.slane %v525_v20, %v541_v59 }
  0x85   : > { %1330 = vmatpush2.bf16.msra.mxu1 %v2189_v31 }
  0x86   : > { %1331 = vmatprep.subr.bf16.mxu1 %v2194_v32 }
  0x87   : > { %1571 = vmatpush1.bf16.msra.mxu0 %v2235_v3 }
  0x88   : > { %1572 = vmatprep.subr.bf16.mxu0 %v2240_v4 }
  0x89   : > { %1332 = vmatpush2.bf16.msra.mxu1 %v2192_v33 }
  0x8a   : > { %1333 = vmatprep.subr.bf16.mxu1 %v2197_v34 }
  0x8b   : > { %1573 = vmatpush1.bf16.msra.mxu0 %v2238_v5 }
  0x8c   : > { %1574 = vmatprep.subr.bf16.mxu0 %v2243_v6 }
  0x8d   : > { %1334 = vmatpush2.bf16.msra.mxu1 %v2195_v35 }
  0x8e   : > { %1335 = vmatprep.subr.bf16.mxu1 %v2200_v36 }
  0x8f   : > { %1575 = vmatpush2.bf16.msra.mxu0 %v2241_v7 }
  0x90   : > { %1576 = vmatprep.subr.bf16.mxu0 %v2246_v8 }
  0x91   : > { %1336 = vmatpush2.bf16.msra.mxu1 %v2198_v40  ;;  %v2259_v40 = vld [vmem:[%s2871_s5 + $0x90] ss:$8 sps:$4 sm:$0xff]  }
  0x93   : > { %1577 = vmatpush2.bf16.msra.mxu0 %v2244_v9 }
  0x94   : > { %1578 = vmatprep.subr.bf16.mxu0 %v2249_v10 }
  0x97   : > { %1579 = vmatpush2.bf16.msra.mxu0 %v2247_v11 }
  0x98   : > { %1580 = vmatprep.subr.bf16.mxu0 %v2252_v12 }
  0x9b   : > { %1581 = vmatpush2.bf16.msra.mxu0 %v2250_v13 }
  0x9c   : > { %1582 = vmatprep.subr.bf16.mxu0 %v2255_v14 }
  0x9f   : > { %1583 = vmatpush2.bf16.msra.mxu0 %v2253_v15 }
  0xa0   : > { %1584 = vmatprep.subr.bf16.mxu0 %v2258_v37 }
  0xa3   : > { %1585 = vmatpush2.bf16.msra.mxu0 %v2256_v38 }
  0xa4   : > { %1586 = vmatprep.subr.bf16.mxu0 %v2261_v39 }
  0xa7   : > { %1587 = vmatpush2.bf16.msra.mxu0 %v2259_v40 }
  0xa8   : > { %1588 = vmatprep.subr.bf16.mxu0 %v2264_v41 }
  0xab   : > { %1589 = vmatpush2.bf16.msra.mxu0 %v2262_v42 }
 0x10d   : > { %v1002_v21 = vpop.f32.mrf.mxu0 }
 0x10e   : > { %v1003_v28 = vadd.f32 %v1002_v21, %v530_v23 }
 0x10f   : > { %v1004_v24 = vpop.f32.mrf.mxu0 }
 0x110   : > { %v1005_v26 = vadd.f32 %v1004_v24, %v534_v22  ;;  %v1095_v34 = vmax.f32 %v1003_v28, 0.0 }
 0x111   : > { %v1006_v25 = vpop.f32.mrf.mxu0 }
 0x112   : > { %v1007_v27 = vadd.f32 %v1006_v25, %v530_v23  ;;  %v1096_v32 = vmax.f32 %v1005_v26, 0.0 }
 0x113   : > { %v1008_v29 = vpop.f32.mrf.mxu0 }
 0x114   : > { %v1009_v30 = vadd.f32 %v1008_v29, %v534_v22  ;;  %v1097_v31 = vmax.f32 %v1007_v27, 0.0  ;;  %v1045_v54 = vpop.f32.mrf.mxu1  ;;  %v1386_v22 = vld [vmem:[%s2872_s6] sm:$0x3] }
 0x115   : > { %v1046_v12 = vadd.f32 %v1045_v54, %v538_v63  ;;  %v1391_v23 = vrot.slane %v1386_v22, %v2796_v19  ;;  %v1395_v27 = vrot.slane %v1386_v22, %v2794_v18 }
 0x116   : > { %v1098_v33 = vmax.f32 %v1009_v30, 0.0  ;;  %v1131_v36 = vpack.c.bf16 %v1097_v31, %v1095_v34  ;;  %v1047_v55 = vpop.f32.mrf.mxu1 }
 0x117   : > { %v1048_v9 = vadd.f32 %v1047_v55, %v542_v2 }
 0x118   : > { %v1132_v35 = vpack.c.bf16 %v1098_v33, %v1096_v32  ;;  %v1049_v56 = vpop.f32.mrf.mxu1 }
 0x119   : > { %v1050_v6 = vadd.f32 %v1049_v56, %v538_v63 }
 0x11a   : > { %1337 = vmatprep.mubr.bf16.mxu1 %v1132_v35  ;;  %v1051_v58 = vpop.f32.mrf.mxu1 }
 0x11b   : > { %1338 = vmatmul.mubr.bf16.vlgmr.msra.gmra.mxu1 %v1131_v36  ;;  %v1052_v10 = vadd.f32 %v1051_v58, %v542_v2 }
 0x12e   : > { %v2021_v44 = vpop.f32.mrf.mxu0 }
 0x130   : > { %v2022_v46 = vpop.f32.mrf.mxu0 }
 0x131   : > { %v2023_v47 = vadd.f32 %v2022_v46, %v2021_v44 }
 0x132   : > { %v2024_v48 = vpop.f32.mrf.mxu0 }
 0x133   : > { %v2821_v49 = vadd.f32 %v2023_v47, %v546_v45 }
 0x134   : > { %v2025_v50 = vpop.f32.mrf.mxu0 }
 0x135   : > { %v2026_v51 = vadd.f32 %v2025_v50, %v2024_v48  ;;  %v1998_v19 = vpack.c.bf16 %v2821_v49, %v2821_v49 }
 0x137   : > { %v2823_v52 = vadd.f32 %v2026_v51, %v546_v45 }
 0x139   : > { %v1999_v53 = vpack.c.bf16 %v2823_v52, %v2823_v52 }
 0x13b   : > { %1630 = vrot.lane.b32.xlu1 %v1999_v53, %s2289_s23 }
 0x1ad   : > { %v1631_v20 = vpop.permute.xlu1 %1630 }
 0x1ae   : > { %1636 = vst.msk [vmem:[%s410_s29 + $0x4] sm:$0xf] %vm1634_vm0, %v1631_v20 }
 0x1db   : > { %v1339_v61 = vpop.f32.mrf.mxu1 }
 0x1dc   : > { %v1340_v7 = vadd.f32 %v1339_v61, %v1138_v0 }
 0x1dd   : > { %v1341_v1 = vpop.f32.mrf.mxu1 }
 0x1de   : > { %v1342_v4 = vadd.f32 %v1341_v1, %v1142_v62  ;;  %v1348_v16 = vadd.f32 %v1340_v7, %v1046_v12 }
 0x1df   : > { %v1343_v3 = vpop.f32.mrf.mxu1 }
 0x1e0   : > { %v1344_v5 = vadd.f32 %v1343_v3, %v1138_v0  ;;  %v1349_v14 = vadd.f32 %v1342_v4, %v1048_v9 }
 0x1e1   : > { %v1345_v8 = vpop.f32.mrf.mxu1 }
 0x1e2   : > { %v1346_v11 = vadd.f32 %v1345_v8, %v1142_v62  ;;  %v1350_v13 = vadd.f32 %v1344_v5, %v1050_v6 }
 0x1e4   : > { %v1351_v15 = vadd.f32 %v1346_v11, %v1052_v10  ;;  %v1384_v21 = vpack.c.bf16 %v1350_v13, %v1348_v16 }
 0x1e6   : > { %v1385_v17 = vpack.c.bf16 %v1351_v15, %v1349_v14 }
 0x1e8   : > { %1590 = vmatprep.mubr.bf16.mxu0 %v1385_v17 }
 0x1e9   : > { %1591 = vmatmul.mubr.bf16.vlgmr.msra.gmra.mxu0 %v1384_v21 }
 0x2a9   : > { %v1592_v24 = vpop.f32.mrf.mxu0 }
 0x2aa   : > { %v1593_v25 = vadd.f32 %v1592_v24, %v1391_v23 }
 0x2ab   : > { %v1594_v26 = vpop.f32.mrf.mxu0 }
 0x2ac   : > { %1637 = vst [vmem:[%s420_s17] sm:$0xff] %v1593_v25  ;;  %v1595_v31 = vadd.f32 %v1594_v26, %v1395_v27 }
 0x2ad   : > { %v1596_v28 = vpop.f32.mrf.mxu0 }
 0x2ae   : > { %v1597_v29 = vadd.f32 %v1596_v28, %v1391_v23 }
 0x2af   : > { %v1598_v30 = vpop.f32.mrf.mxu0 }
 0x2b0   : > { %1638 = vst [vmem:[%s420_s17 + $0x8] sm:$0xff] %v1597_v29  ;;  %v1599_v32 = vadd.f32 %v1598_v30, %v1395_v27 }
 0x2b2   : > { %v2052_v33 = vpack.i.bf16 %v1599_v32, %v1595_v31 }
 0x2b4   : > { %2053 = vrot.lane.b32.xlu0 %v2052_v33, %s2289_s23 }
 0x2b8   : > { %1628 = vrot.lane.b32.xlu0 %v1998_v19, %s2289_s23 }
 0x326   : > { %v2054_v34 = vpop.permute.xlu0 %2053 }
 0x327   : > { %v2056_v35 = vunpack.i.h.bf16 %v2054_v34  ;;  %v2055_v36 = vunpack.i.l.bf16 %v2054_v34 }
 0x329   : > { %v1611_v18 = vsel %vm1609_vm1, %v2823_v52, %v2056_v35  ;;  %v1610_v37 = vsel %vm1609_vm1, %v2821_v49, %v2055_v36 }
 0x32a   : > { %v2003_v38 = vpack.c.bf16 %v1611_v18, %v1610_v37  ;;  %v1629_v39 = vpop.permute.xlu0 %1628 }
 0x32b   : > { %1635 = vst.msk [vmem:[%s410_s29] sm:$0xf] %vm1634_vm0, %v1629_v39 }
 0x32c   : > { %2004 = vst [vmem:[%s400_s19] sm:$0xff] %v2003_v38  }
 0x32d PF: > { %s20_s11 = sadd.s32 1, %s2287_s11   ;;  %s2876_s30 = smov %s2283_s10 }
 0x32e   : > { %p17_p5 = scmp.ge.s32.totalorder %s20_s11, 4   ;;  %s2877_s10 = smov %s2879_s12 }
 0x330   :  { %19 = sbr.rel (!%p17_p5) target bundleno = 2 (0x2), region = 102 }

// kernel: seed_generator_forward.6
= control target key start
LH: loop header
LB: loop body
LE: loop exit
PB: predicated region body
PF: predicated region fallthrough
CT: control target
= control target key end

     0   :  { %s3632_s29 = smov 0   ;;  %s3634_s30 = smov 0   ;;  %s4788_s0 = inlined_call_operand.vmem [shape: bf16[2,16,64], index: 0, kind: input, shape index: {}]   ;;  %s4789_s1 = inlined_call_operand.vmem [shape: bf16[2,8,16,128], index: 1, kind: input, shape index: {}]   ;;  %s4790_s2 = inlined_call_operand.vmem [shape: f32[2,8,16,3], index: 2, kind: input, shape index: {}]   ;;  %s4791_s3 = inlined_call_operand.vmem [shape: f32[2,16,128], index: 3, kind: input, shape index: {}]   ;;  %s4792_s4 = inlined_call_operand.vmem [shape: f32[3,64], index: 4, kind: input, shape index: {}]   ;;  %s4793_s5 = inlined_call_operand.vmem [shape: f32[1,64], index: 5, kind: input, shape index: {}]   ;;  %s4794_s6 = inlined_call_operand.vmem [shape: bf16[64,64], index: 6, kind: input, shape index: {}]   ;;  %s4795_s7 = inlined_call_operand.vmem [shape: f32[1,64], index: 7, kind: input, shape index: {}]   ;;  %s4796_s8 = inlined_call_operand.vmem [shape: bf16[64,256], index: 8, kind: input, shape index: {}]   ;;  %s4797_s9 = inlined_call_operand.vmem [shape: f32[1,256], index: 9, kind: input, shape index: {}]   ;;  %s4798_s10 = inlined_call_operand.vmem [shape: bf16[256,128], index: 10, kind: input, shape index: {}]   ;;  %s4799_s11 = inlined_call_operand.vmem [shape: f32[1,128], index: 11, kind: input, shape index: {}]   ;;  %s4800_s12 = inlined_call_operand.vmem [shape: bf16[128,256], index: 12, kind: input, shape index: {}]   ;;  %s4801_s13 = inlined_call_operand.vmem [shape: f32[1,256], index: 13, kind: input, shape index: {}]   ;;  %s4802_s14 = inlined_call_operand.vmem [shape: f32[2,16,256], index: 14, kind: output, shape index: {}]  }
   0x1   :  { %4811 = sst [smem:[#allocation3_spill]] %s4790_s2  ;;  %s3636_s15 = smov 0  }
   0x2   :  { %4812 = sst [smem:[#allocation4_spill]] %s4792_s4 }
   0x3 LB: > { %s36_s16 = sadd.s32 1, %s3545_s30  ;;  %p2908_p0 = scmp.ge.s32.totalorder %s3549_s15, 1  ;;  %s3549_s15 = sphi %s3636_s15, %s24_s15   ;;  %s3545_s30 = sphi %s3634_s30, %s4825_s30   ;;  %s3541_s29 = sphi %s3632_s29, %s4824_s29  }
   0x4   : > { %p38_p1 = scmp.ge.s32.totalorder %s36_s16, 2  ;;  %p484_p2 = scmp.lt.s32.totalorder %s3549_s15, 3 }
   0x6   : > { %s4827_s16 = smov (%p38_p1, %s36_s16), 0  ;;  %p485_p3 = pnand %p2908_p0, %p484_p2 }
   0x8   : > { %488 = sbr.rel (%p485_p3) target bundleno = 2520 (0x9d8), region = 76 }
   0xd   : > { %p567_p4 = scmp.lt.s32.totalorder %s3541_s29, 1  ;;  %v3551_v0 = vmov 1   ;;  %v3552_v1 = vmov 0   ;;  %s4813_s2 = sld [smem:[#allocation3_spill]]  ;;  %v3664_v2 = vld [vmem:[%s4794_s6 + $0x18] sm:$0xff]   ;;  %v3553_v5 = vmov 0.0   ;;  %v642_v28 = vlaneseq }
   0xe   : > { %3403 = vset.pattern.permute.xlu1 %v3551_v0  ;;  %3402 = vset.pattern.permute.xlu0 %v3552_v1  ;;  %v3674_v6 = vld [vmem:[%s4794_s6 + $0x10] sm:$0xff]   ;;  %v3681_v7 = vld [vmem:[%s4794_s6 + $0x8] sm:$0xff]   ;;  %v3554_v8 = vmov 2   ;;  %v3689_v9 = vld [vmem:[%s4794_s6] sm:$0xff]   ;;  %vm3555_vm0 = vmmov 0   ;;  %s4815_s4 = sld [smem:[#allocation4_spill]] }
   0xf   : > { %s4829_s29 = smov (!%p567_p4, %s3541_s29), 1  ;;  %875 = vmatprep.mubr.bf16.mxu1 %v3552_v1  ;;  %3276 = vmatprep.subr.bf16.mxu0 %v3553_v5  ;;  %v3702_v12 = vld [vmem:[%s4796_s8 + $0x34] ss:$8 sps:$4 sm:$0xff]   ;;  %v3709_v13 = vld [vmem:[%s4796_s8 + $0x30] ss:$8 sps:$4 sm:$0xff]   ;;  %v643_v29 = vshrl.u32 %v642_v28, 7 }
  0x10   : > { %s3014_s17 = sshll.u32 %s4829_s29, 7  ;;  %3277 = vmatpush3.bf16.msra.mxu0 %v3664_v2  ;;  %3284 = vmatprep.mubr.msk.bf16.mxu0 %vm3555_vm0, %v3553_v5  ;;  %v3714_v14 = vld [vmem:[%s4796_s8 + $0x24] ss:$8 sps:$4 sm:$0xff]   ;;  %v3721_v15 = vld [vmem:[%s4796_s8 + $0x20] ss:$8 sps:$4 sm:$0xff]   ;;  %vm730_vm1 = vcmask 523264  }
  0x11   : > { %3278 = vmatprep.subr.bf16.mxu0 %v3553_v5  ;;  %851 = vmatprep.subr.bf16.mxu1 %v3702_v12  ;;  %v3767_v30 = vsub.s32 1, %v643_v29  ;;  %v3769_v31 = vsub.s32 0, %v643_v29  ;;  %v674_v35 = vsub.s32 2, %v643_v29  ;;  %v3793_v51 = vld [vmem:[%s4793_s5] ss:$0 sm:$0xff]  ;;  %s3013_s26 = sshll.u32 %s4829_s29, 6 }
  0x12   : > { %852 = vmatpush1.bf16.msra.mxu1 %v3709_v13  ;;  %v3805_v59 = vld [vmem:[%s4796_s8 + $0x14] ss:$8 sps:$4 sm:$0xff]   ;;  %v3810_v60 = vld [vmem:[%s4796_s8 + $0x10] ss:$8 sps:$4 sm:$0xff]   ;;  %v3817_v61 = vld [vmem:[%s4796_s8 + $0x4] ss:$8 sps:$4 sm:$0xff]   ;;  %s3835_s21 = scalar_lea.vmem %s4789_s1, %s3013_s26 }
  0x13   : > { %s3659_s20 = scalar_lea.vmem %s4813_s2, %s3014_s17  ;;  %853 = vmatprep.subr.bf16.mxu1 %v3714_v14  ;;  %4814 = vst [vmem:[#allocation2_spill] sm:$0xff] %v3767_v30  ;;  %v3822_v62 = vld [vmem:[%s4796_s8] ss:$8 sps:$4 sm:$0xff]   ;;  %s3556_s23 = smov 64  }
  0x14   : > { %v630_v3 = vld [vmem:[%s3659_s20] sm:$0xff]  ;;  %v631_v4 = vld [vmem:[%s3659_s20 + $0x8] sm:$0xff]  ;;  %3279 = vmatpush3.bf16.msra.mxu0 %v3674_v6  ;;  %v2954_v10 = vld [vmem:[%s3659_s20 + $0x10] sm:$0xff]  ;;  %s3015_s25 = sshll.u32 %s4829_s29, 4 }
  0x15   : > { %649 = vperm.xlu1 %3403, %v630_v3   ;;  %634 = vperm.xlu0 %3402, %v630_v3   ;;  %v2955_v11 = vld [vmem:[%s3659_s20 + $0x18] sm:$0xff]  ;;  %v2961_v16 = vld [vmem:[%s3659_s20 + $0x28] sm:$0xff]  ;;  %v2960_v17 = vld [vmem:[%s3659_s20 + $0x20] sm:$0xff]  ;;  %s604_s2 = scalar_lea.vmem %s4791_s3, %s3015_s25 }
  0x16   : > { %3280 = vmatprep.subr.bf16.mxu0 %v3553_v5  ;;  %854 = vmatpush1.bf16.msra.mxu1 %v3721_v15  ;;  %v2967_v18 = vld [vmem:[%s3659_s20 + $0x38] sm:$0xff]  ;;  %v2966_v19 = vld [vmem:[%s3659_s20 + $0x30] sm:$0xff]  ;;  %v2973_v20 = vld [vmem:[%s3659_s20 + $0x48] sm:$0xff] }
  0x17   : > { %v2972_v21 = vld [vmem:[%s3659_s20 + $0x40] sm:$0xff]  ;;  %v2979_v22 = vld [vmem:[%s3659_s20 + $0x58] sm:$0xff]  ;;  %v2978_v23 = vld [vmem:[%s3659_s20 + $0x50] sm:$0xff]  ;;  %855 = vmatprep.subr.bf16.mxu1 %v3805_v59 }
  0x18   : > { %3281 = vmatpush3.bf16.msra.mxu0 %v3681_v7  ;;  %v2985_v24 = vld [vmem:[%s3659_s20 + $0x68] sm:$0xff]  ;;  %v2984_v25 = vld [vmem:[%s3659_s20 + $0x60] sm:$0xff]  ;;  %v3754_v26 = vld [vmem:[%s3659_s20 + $0x78] sm:$0xff] }
  0x19   : > { %653 = vperm.xlu1 %3403, %v631_v4   ;;  %639 = vperm.xlu0 %3402, %v631_v4   ;;  %v2990_v27 = vld [vmem:[%s3659_s20 + $0x70] sm:$0xff]  ;;  %v624_v32 = vld [vmem:[%s4815_s4] sm:$0x7]  ;;  %s3012_s20 = sshll.u32 %s4829_s29, 3  ;;  %s3016_s4 = sshll.u32 %s4829_s29, 5 }
  0x1a   : > { %3282 = vmatprep.subr.bf16.mxu0 %v3553_v5  ;;  %v3776_v36 = vrot.slane %v624_v32, %v3767_v30  ;;  %v3779_v37 = vrot.slane %v624_v32, %v3769_v31  ;;  %v3781_v40 = vrot.slane %v624_v32, %v674_v35  ;;  %856 = vmatpush1.bf16.msra.mxu1 %v3810_v60  ;;  %s574_s17 = scalar_lea.vmem %s4788_s0, %s3012_s20  ;;  %v3890_v29 = vld [vmem:[%s4798_s10 + $0x60] sm:$0xff]   ;;  %s615_s18 = scalar_lea.vmem %s4802_s14, %s3016_s4 }
  0x1b   : > { %857 = vmatprep.subr.bf16.mxu1 %v3817_v61 }
  0x1c   : > { %3283 = vmatpush3.bf16.msra.mxu0 %v3689_v9 }
  0x1d   : > { %3405 = vset.pattern.permute.xlu1 %v3554_v8  ;;  %3404 = vset.pattern.permute.xlu0 %v3554_v8 }
  0x1e   : > { %669 = vperm.xlu1 %3405, %v631_v4   ;;  %665 = vperm.xlu0 %3404, %v630_v3   ;;  %v3840_v3 = vld [vmem:[%s4798_s10 + $0x78] sm:$0xff]  }
  0x1f   : > { %858 = vmatpush1.bf16.msra.mxu1 %v3822_v62  ;;  %v3845_v4 = vld [vmem:[%s4798_s10 + $0x38] sm:$0xff]   ;;  %3065 = vmatprep.subr.bf16.mxu0 %v3840_v3 }
  0x20   : > { %3288 = vmatprep.subr.bf16.mxu1 %v3553_v5 }
  0x22   : > { %3406 = vset.pattern.permute.xlu1 %v3552_v1  ;;  %3407 = vset.pattern.permute.xlu0 %v3552_v1 }
  0x23   : > { %1102 = vperm.xlu1 %3406, %v2954_v10   ;;  %1107 = vperm.xlu0 %3407, %v2955_v11  }
  0x27   : > { %3408 = vset.pattern.permute.xlu1 %v3551_v0  ;;  %3409 = vset.pattern.permute.xlu0 %v3554_v8 }
  0x28   : > { %1113 = vperm.xlu1 %3408, %v2954_v10   ;;  %1125 = vperm.xlu0 %3409, %v2954_v10   ;;  %v3018_v10 = vld [vmem:[%s574_s17] sm:$0xff]  }
  0x2c   : > { %1117 = vperm.xlu1 %3408, %v2955_v11   ;;  %3412 = vset.pattern.permute.xlu0 %v3552_v1 }
  0x2d   : > { %1322 = vperm.xlu0 %3412, %v2961_v16  }
  0x30   : > { %3410 = vset.pattern.permute.xlu1 %v3554_v8 }
  0x31   : > { %1129 = vperm.xlu1 %3410, %v2955_v11   ;;  %3414 = vset.pattern.permute.xlu0 %v3554_v8  ;;  %v3853_v11 = vld [vmem:[%s3835_s21] sm:$0xff]  }
  0x32   : > { %1340 = vperm.xlu0 %3414, %v2960_v17  }
  0x35   : > { %3411 = vset.pattern.permute.xlu1 %v3552_v1 }
  0x36   : > { %1317 = vperm.xlu1 %3411, %v2960_v17   ;;  %3417 = vset.pattern.permute.xlu0 %v3552_v1 }
  0x37   : > { %1537 = vperm.xlu0 %3417, %v2967_v18  }
  0x3a   : > { %3413 = vset.pattern.permute.xlu1 %v3551_v0 }
  0x3b   : > { %1328 = vperm.xlu1 %3413, %v2960_v17   ;;  %3419 = vset.pattern.permute.xlu0 %v3554_v8  ;;  %v3865_v17 = vld [vmem:[%s4795_s7] ss:$0 sm:$0xff] }
  0x3c   : > { %1555 = vperm.xlu0 %3419, %v2966_v19  }
  0x3f   : > { %1332 = vperm.xlu1 %3413, %v2961_v16  }
  0x40   : > { %3422 = vset.pattern.permute.xlu0 %v3552_v1 }
  0x41   : > { %1752 = vperm.xlu0 %3422, %v2973_v20  }
  0x43   : > { %3415 = vset.pattern.permute.xlu1 %v3554_v8 }
  0x44   : > { %1344 = vperm.xlu1 %3415, %v2961_v16   ;;  %v3860_v16 = vld [vmem:[%s4798_s10 + $0x30] sm:$0xff]  }
  0x45   : > { %3424 = vset.pattern.permute.xlu0 %v3554_v8 }
  0x46   : > { %1770 = vperm.xlu0 %3424, %v2972_v21  }
  0x48   : > { %3416 = vset.pattern.permute.xlu1 %v3552_v1 }
  0x49   : > { %1532 = vperm.xlu1 %3416, %v2966_v19  }
  0x4a   : > { %3427 = vset.pattern.permute.xlu0 %v3552_v1 }
  0x4b   : > { %1967 = vperm.xlu0 %3427, %v2979_v22  }
  0x4d   : > { %3418 = vset.pattern.permute.xlu1 %v3551_v0 }
  0x4e   : > { %1543 = vperm.xlu1 %3418, %v2966_v19  }
  0x4f   : > { %3429 = vset.pattern.permute.xlu0 %v3554_v8 }
  0x50   : > { %1985 = vperm.xlu0 %3429, %v2978_v23  }
  0x52   : > { %1547 = vperm.xlu1 %3418, %v2967_v18  }
  0x54   : > { %3432 = vset.pattern.permute.xlu0 %v3552_v1 }
  0x55   : > { %2182 = vperm.xlu0 %3432, %v2985_v24  }
  0x56   : > { %3420 = vset.pattern.permute.xlu1 %v3554_v8 }
  0x57   : > { %1559 = vperm.xlu1 %3420, %v2967_v18   ;;  %v3871_v18 = vld [vmem:[%s4798_s10 + $0x68] sm:$0xff]  }
  0x59   : > { %3434 = vset.pattern.permute.xlu0 %v3554_v8 }
  0x5a   : > { %2200 = vperm.xlu0 %3434, %v2984_v25  }
  0x5b   : > { %3421 = vset.pattern.permute.xlu1 %v3552_v1 }
  0x5c   : > { %1747 = vperm.xlu1 %3421, %v2972_v21  }
  0x5e   : > { %3437 = vset.pattern.permute.xlu0 %v3552_v1 }
  0x5f   : > { %2397 = vperm.xlu0 %3437, %v3754_v26  }
  0x60   : > { %3423 = vset.pattern.permute.xlu1 %v3551_v0 }
  0x61   : > { %1758 = vperm.xlu1 %3423, %v2972_v21   ;;  %v3023_v21 = vunpack.c.l.bf16 %v3853_v11 }
  0x63   : > { %3439 = vset.pattern.permute.xlu0 %v3554_v8 }
  0x64   : > { %2415 = vperm.xlu0 %3439, %v2990_v27  }
  0x65   : > { %1762 = vperm.xlu1 %3423, %v2973_v20  }
  0x69   : > { %3425 = vset.pattern.permute.xlu1 %v3554_v8 }
  0x6a   : > { %1774 = vperm.xlu1 %3425, %v2973_v20   ;;  %v3873_v20 = vunpack.c.l.bf16 %v3018_v10 }
  0x6c   : > { %v775_v32 = vsub.f32 %v3873_v20, %v3023_v21 }
  0x6e   : > { %3426 = vset.pattern.permute.xlu1 %v3552_v1 }
  0x6f   : > { %1962 = vperm.xlu1 %3426, %v2978_v23  }
  0x73   : > { %3428 = vset.pattern.permute.xlu1 %v3551_v0 }
  0x74   : > { %1973 = vperm.xlu1 %3428, %v2978_v23   ;;  %v4807_v23 = vunpack.c.h.bf16 %v3853_v11 }
  0x78   : > { %1977 = vperm.xlu1 %3428, %v2979_v22  }
  0x7c   : > { %3430 = vset.pattern.permute.xlu1 %v3554_v8 }
  0x7d   : > { %1989 = vperm.xlu1 %3430, %v2979_v22   ;;  %v3876_v22 = vunpack.c.h.bf16 %v3018_v10 }
  0x81   : > { %3431 = vset.pattern.permute.xlu1 %v3552_v1 }
  0x82   : > { %2177 = vperm.xlu1 %3431, %v2984_v25  }
  0x86   : > { %3433 = vset.pattern.permute.xlu1 %v3551_v0 }
  0x87   : > { %2188 = vperm.xlu1 %3433, %v2984_v25  }
  0x8b   : > { %2192 = vperm.xlu1 %3433, %v2985_v24  }
  0x8f   : > { %3435 = vset.pattern.permute.xlu1 %v3554_v8 }
  0x90   : > { %v650_v33 = vpop.permute.xlu1 %649  ;;  %v635_v34 = vpop.permute.xlu0 %634  ;;  %2204 = vperm.xlu1 %3435, %v2985_v24  }
  0x91   : > { %v660_v41 = vmul.f32 %v3776_v36, %v650_v33  ;;  %v646_v42 = vmul.f32 %v3779_v37, %v635_v34  ;;  %v776_v33 = vsub.f32 %v3876_v22, %v4807_v23 }
  0x93   : > { %v662_v47 = vadd.f32 %v660_v41, %v646_v42 }
  0x94   : > { %v654_v38 = vpop.permute.xlu1 %653  ;;  %v640_v39 = vpop.permute.xlu0 %639  ;;  %3436 = vset.pattern.permute.xlu1 %v3552_v1 }
  0x95   : > { %v661_v43 = vmul.f32 %v3776_v36, %v654_v38  ;;  %v647_v44 = vmul.f32 %v3779_v37, %v640_v39  ;;  %2392 = vperm.xlu1 %3436, %v2990_v27  }
  0x97   : > { %v663_v48 = vadd.f32 %v661_v43, %v647_v44  ;;  %v3908_v44 = vld [vmem:[%s4798_s10 + $0x20] sm:$0xff]  }
  0x99   : > { %v670_v45 = vpop.permute.xlu1 %669  ;;  %v666_v46 = vpop.permute.xlu0 %665  ;;  %3438 = vset.pattern.permute.xlu1 %v3551_v0 }
  0x9a   : > { %v677_v49 = vmul.f32 %v3781_v40, %v670_v45  ;;  %v676_v50 = vmul.f32 %v3781_v40, %v666_v46  ;;  %2403 = vperm.xlu1 %3438, %v2990_v27   ;;  %v3884_v27 = vld [vmem:[%s4798_s10 + $0x28] sm:$0xff]  }
  0x9c   : > { %v679_v52 = vadd.f32 %v677_v49, %v663_v48  ;;  %v678_v53 = vadd.f32 %v676_v50, %v662_v47  ;;  %v3914_v47 = vld [vmem:[%s4798_s10 + $0x58] sm:$0xff]  }
  0x9e   : > { %v687_v54 = vadd.f32 %v3793_v51, %v679_v52  ;;  %v686_v55 = vadd.f32 %v3793_v51, %v678_v53  ;;  %2407 = vperm.xlu1 %3438, %v3754_v26   ;;  %v1103_v63 = vpop.permute.xlu1 %1102  ;;  %v1108_v24 = vpop.permute.xlu0 %1107 }
  0x9f   : > { %v1110_v34 = vmul.f32 %v1103_v63, %v3779_v37  ;;  %v1111_v41 = vmul.f32 %v1108_v24, %v3779_v37 }
  0xa0   : > { %v689_v56 = vmax.f32 %v687_v54, 0.0  ;;  %v688_v57 = vmax.f32 %v686_v55, 0.0 }
  0xa2   : > { %v698_v58 = vpack.c.bf16 %v689_v56, %v688_v57  ;;  %3440 = vset.pattern.permute.xlu1 %v3554_v8  ;;  %v3850_v8 = vld [vmem:[%s4798_s10 + $0x70] sm:$0xff]   ;;  %v3923_v56 = vld [vmem:[%s4798_s10 + $0x18] sm:$0xff]  }
  0xa3   : > { %2419 = vperm.xlu1 %3440, %v3754_v26   ;;  %v1114_v0 = vpop.permute.xlu1 %1113  ;;  %v1126_v45 = vpop.permute.xlu0 %1125 }
  0xa4   : > { %3285 = vmatmul.mubr.msk.bf16.vlgmr.msra.gmra.mxu0 %vm730_vm1, %v698_v58  ;;  %v1120_v35 = vmul.f32 %v1114_v0, %v3776_v36  ;;  %v1132_v54 = vmul.f32 %v1126_v45, %v3781_v40 }
  0xa5   : > { %3066 = vmatpush3.bf16.msra.mxu0 %v3845_v4 }
  0xa6   : > { %3067 = vmatprep.subr.bf16.mxu0 %v3850_v8  ;;  %v1122_v50 = vadd.f32 %v1120_v35, %v1110_v34  ;;  %v3982_v34 = vld [vmem:[%s4798_s10] sm:$0xff]  }
  0xa7   : > { %v1118_v19 = vpop.permute.xlu1 %1117  ;;  %v788_v35 = vld [vmem:[%s4797_s9] sm:$0x3] }
  0xa8   : > { %v1121_v39 = vmul.f32 %v1118_v19, %v3776_v36  ;;  %v1134_v58 = vadd.f32 %v1132_v54, %v1122_v50 }
  0xa9   : > { %3068 = vmatpush3.bf16.msra.mxu0 %v3860_v16 }
  0xaa   : > { %3069 = vmatprep.subr.bf16.mxu0 %v3871_v18  ;;  %v1123_v52 = vadd.f32 %v1121_v39, %v1111_v41  ;;  %v1136_v0 = vadd.f32 %v3793_v51, %v1134_v58  ;;  %v3991_v39 = vrot.slane %v788_v35, %v3767_v30  ;;  %v3994_v41 = vrot.slane %v788_v35, %v3769_v31 }
  0xac   : > { %v1130_v42 = vpop.permute.xlu1 %1129  ;;  %v1138_v19 = vmax.f32 %v1136_v0, 0.0 }
  0xad   : > { %3070 = vmatpush3.bf16.msra.mxu0 %v3884_v27  ;;  %v1133_v53 = vmul.f32 %v1130_v42, %v3781_v40 }
  0xae   : > { %3071 = vmatprep.subr.bf16.mxu0 %v3890_v29 }
  0xaf   : > { %v1135_v57 = vadd.f32 %v1133_v53, %v1123_v52 }
  0xb1   : > { %3072 = vmatpush3.bf16.msra.mxu0 %v3908_v44  ;;  %v1137_v63 = vadd.f32 %v3793_v51, %v1135_v57 }
  0xb2   : > { %3073 = vmatprep.subr.bf16.mxu0 %v3914_v47 }
  0xb3   : > { %v1139_v10 = vmax.f32 %v1137_v63, 0.0 }
  0xb5   : > { %3074 = vmatpush3.bf16.msra.mxu0 %v3923_v56  ;;  %v1140_v24 = vpack.c.bf16 %v1139_v10, %v1138_v19  ;;  %v4001_v10 = vld [vmem:[%s3835_s21 + $0x8] sm:$0xff]  }
  0xb6   : > { %v4804_v19 = vunpack.c.l.bf16 %v4001_v10 }
 0x164   : > { %v768_v25 = vpop.f32.mrf.mxu0 }
 0x165   : > { %v769_v26 = vadd.f32 %v3865_v17, %v768_v25  ;;  %v3953_v25 = vld [vmem:[%s4798_s10 + $0x50] sm:$0xff]  }
 0x166   : > { %v3286_v28 = vpop.f32.mrf.mxu0  ;;  %3075 = vmatprep.subr.bf16.mxu0 %v3953_v25 }
 0x167   : > { %1070 = vrot.lane.b32.xlu1 %v769_v26, %s3556_s23  ;;  %v777_v48 = vadd.f32 %v775_v32, %v769_v26  ;;  %v3958_v26 = vld [vmem:[%s4798_s10 + $0x10] sm:$0xff]   ;;  %v3965_v28 = vld [vmem:[%s4798_s10 + $0x48] sm:$0xff]  }
 0x168   : > { %v771_v38 = vpop.f32.mrf.mxu0  ;;  %3076 = vmatpush3.bf16.msra.mxu0 %v3958_v26  ;;  %v3970_v32 = vld [vmem:[%s4798_s10 + $0x8] sm:$0xff]  }
 0x169   : > { %v772_v43 = vadd.f32 %v3865_v17, %v771_v38  ;;  %3077 = vmatprep.subr.bf16.mxu0 %v3965_v28 }
 0x16a   : > { %v3287_v46 = vpop.f32.mrf.mxu0 }
 0x16b   : > { %v778_v49 = vadd.f32 %v776_v33, %v772_v43  ;;  %1072 = vrot.lane.b32.xlu0 %v772_v43, %s3556_s23  ;;  %v3977_v33 = vld [vmem:[%s4798_s10 + $0x40] sm:$0xff]  }
 0x16c   : > { %3078 = vmatpush3.bf16.msra.mxu0 %v3970_v32 }
 0x16d   : > { %v787_v55 = vpack.c.bf16 %v778_v49, %v777_v48  ;;  %3079 = vmatprep.subr.bf16.mxu0 %v3977_v33  ;;  %v1318_v48 = vpop.permute.xlu1 %1317 }
 0x16f   : > { %2934 = vmatmul.mubr.msk.bf16.vlgmr.msra.gmra.mxu1 %vm730_vm1, %v787_v55 }
 0x170   : > { %3289 = vmatpush3.bf16.msra.mxu1 %v3664_v2  ;;  %3296 = vmatprep.mubr.msk.bf16.mxu1 %vm3555_vm0, %v3553_v5 }
 0x171   : > { %3290 = vmatprep.subr.bf16.mxu1 %v3553_v5  ;;  %3080 = vmatpush3.bf16.msra.mxu0 %v3982_v34  ;;  %v1329_v63 = vpop.permute.xlu1 %1328 }
 0x172   : > { %3092 = vmatprep.subr.bf16.mxu0 %v3840_v3 }
 0x174   : > { %3291 = vmatpush3.bf16.msra.mxu1 %v3674_v6 }
 0x175   : > { %3292 = vmatprep.subr.bf16.mxu1 %v3553_v5 }
 0x178   : > { %3293 = vmatpush3.bf16.msra.mxu1 %v3681_v7 }
 0x179   : > { %3294 = vmatprep.subr.bf16.mxu1 %v3553_v5 }
 0x17c   : > { %3295 = vmatpush3.bf16.msra.mxu1 %v3689_v9 }
 0x17d   : > { %1201 = vmatprep.subr.bf16.mxu1 %v3702_v12 }
 0x17f   : > { %3297 = vmatmul.mubr.msk.bf16.vlgmr.msra.gmra.mxu1 %vm730_vm1, %v1140_v24  ;;  %v4803_v24 = vunpack.c.h.bf16 %v4001_v10 }
 0x180   : > { %1202 = vmatpush1.bf16.msra.mxu1 %v3709_v13  ;;  %1225 = vmatprep.mubr.bf16.mxu1 %v3552_v1 }
 0x181   : > { %1203 = vmatprep.subr.bf16.mxu1 %v3714_v14 }
 0x184   : > { %1204 = vmatpush1.bf16.msra.mxu1 %v3721_v15 }
 0x185   : > { %1205 = vmatprep.subr.bf16.mxu1 %v3805_v59 }
 0x188   : > { %1206 = vmatpush1.bf16.msra.mxu1 %v3810_v60 }
 0x189   : > { %1207 = vmatprep.subr.bf16.mxu1 %v3817_v61 }
 0x18c   : > { %1208 = vmatpush1.bf16.msra.mxu1 %v3822_v62 }
 0x18d   : > { %3300 = vmatprep.subr.bf16.mxu1 %v3553_v5 }
 0x22f   : > { %v877_v38 = vpop.f32.mrf.mxu1 }
 0x230   : > { %v878_v49 = vadd.f32 %v877_v38, %v3994_v41  ;;  %v1323_v38 = vpop.permute.xlu0 %1322 }
 0x231   : > { %v879_v42 = vpop.f32.mrf.mxu1 }
 0x232   : > { %v880_v45 = vadd.f32 %v879_v42, %v3991_v39  ;;  %v886_v57 = vmax.f32 %v878_v49, 0.0  ;;  %v1186_v49 = vsub.f32 %v3876_v22, %v4803_v24 }
 0x233   : > { %v881_v43 = vpop.f32.mrf.mxu1 }
 0x234   : > { %v882_v46 = vadd.f32 %v881_v43, %v3994_v41  ;;  %v887_v54 = vmax.f32 %v880_v45, 0.0  ;;  %v1333_v43 = vpop.permute.xlu1 %1332  ;;  %v1341_v24 = vpop.permute.xlu0 %1340 }
 0x235   : > { %v883_v50 = vpop.f32.mrf.mxu1 }
 0x236   : > { %v884_v52 = vadd.f32 %v883_v50, %v3991_v39  ;;  %v888_v53 = vmax.f32 %v882_v46, 0.0  ;;  %v1185_v46 = vsub.f32 %v3873_v20, %v4804_v19  ;;  %v1325_v50 = vmul.f32 %v1318_v48, %v3779_v37 }
 0x238   : > { %v889_v55 = vmax.f32 %v884_v52, 0.0  ;;  %v922_v0 = vpack.c.bf16 %v888_v53, %v886_v57  ;;  %v1335_v52 = vmul.f32 %v1329_v63, %v3776_v36  ;;  %v1345_v48 = vpop.permute.xlu1 %1344 }
 0x239   : > { %v1348_v63 = vmul.f32 %v1345_v48, %v3781_v40 }
 0x23a   : > { %v923_v58 = vpack.c.bf16 %v889_v55, %v887_v54  ;;  %v1336_v54 = vmul.f32 %v1333_v43, %v3776_v36  ;;  %v1326_v55 = vmul.f32 %v1323_v38, %v3779_v37  ;;  %v1347_v43 = vmul.f32 %v1341_v24, %v3781_v40 }
 0x23c   : > { %1059 = vmatprep.mubr.bf16.mxu0 %v923_v58  ;;  %v1338_v19 = vadd.f32 %v1336_v54, %v1326_v55 }
 0x23d   : > { %1060 = vmatmul.mubr.bf16.vlgmr.msra.gmra.mxu0 %v922_v0 }
 0x23e   : > { %3093 = vmatpush3.bf16.msra.mxu0 %v3845_v4 }
 0x23f   : > { %v1178_v35 = vpop.f32.mrf.mxu1  ;;  %3094 = vmatprep.subr.bf16.mxu0 %v3850_v8 }
 0x240   : > { %v1179_v42 = vadd.f32 %v3865_v17, %v1178_v35 }
 0x241   : > { %v3298_v45 = vpop.f32.mrf.mxu1 }
 0x242   : > { %1285 = vrot.lane.b32.xlu1 %v1179_v42, %s3556_s23  ;;  %3095 = vmatpush3.bf16.msra.mxu0 %v3860_v16  ;;  %v1187_v0 = vadd.f32 %v1185_v46, %v1179_v42  ;;  %v1337_v45 = vadd.f32 %v1335_v52, %v1325_v50  ;;  %v1350_v42 = vadd.f32 %v1348_v63, %v1338_v19 }
 0x243   : > { %v1181_v53 = vpop.f32.mrf.mxu1  ;;  %3096 = vmatprep.subr.bf16.mxu0 %v3871_v18 }
 0x244   : > { %v1182_v57 = vadd.f32 %v3865_v17, %v1181_v53  ;;  %v1349_v46 = vadd.f32 %v1347_v43, %v1337_v45  ;;  %v1352_v24 = vadd.f32 %v3793_v51, %v1350_v42 }
 0x245   : > { %v3299_v58 = vpop.f32.mrf.mxu1 }
 0x246   : > { %v1188_v35 = vadd.f32 %v1186_v49, %v1182_v57  ;;  %1287 = vrot.lane.b32.xlu0 %v1182_v57, %s3556_s23  ;;  %3097 = vmatpush3.bf16.msra.mxu0 %v3884_v27  ;;  %v1351_v49 = vadd.f32 %v3793_v51, %v1349_v46  ;;  %v1354_v19 = vmax.f32 %v1352_v24, 0.0 }
 0x247   : > { %3098 = vmatprep.subr.bf16.mxu0 %v3890_v29 }
 0x248   : > { %v1189_v38 = vpack.c.bf16 %v1188_v35, %v1187_v0  ;;  %v1353_v50 = vmax.f32 %v1351_v49, 0.0  ;;  %v1533_v0 = vpop.permute.xlu1 %1532 }
 0x24a   : > { %2957 = vmatmul.mubr.msk.bf16.vlgmr.msra.gmra.mxu1 %vm730_vm1, %v1189_v38  ;;  %3099 = vmatpush3.bf16.msra.mxu0 %v3908_v44  ;;  %v1355_v52 = vpack.c.bf16 %v1354_v19, %v1353_v50  ;;  %v4065_v19 = vld [vmem:[%s3835_s21 + $0x10] sm:$0xff]  }
 0x24b   : > { %3301 = vmatpush3.bf16.msra.mxu1 %v3664_v2  ;;  %3308 = vmatprep.mubr.msk.bf16.mxu1 %vm3555_vm0, %v3553_v5  ;;  %v4805_v50 = vunpack.c.l.bf16 %v4065_v19 }
 0x24c   : > { %3302 = vmatprep.subr.bf16.mxu1 %v3553_v5  ;;  %3100 = vmatprep.subr.bf16.mxu0 %v3914_v47  ;;  %v1544_v24 = vpop.permute.xlu1 %1543 }
 0x24e   : > { %3101 = vmatpush3.bf16.msra.mxu0 %v3923_v56 }
 0x24f   : > { %3303 = vmatpush3.bf16.msra.mxu1 %v3674_v6  ;;  %3102 = vmatprep.subr.bf16.mxu0 %v3953_v25 }
 0x250   : > { %3304 = vmatprep.subr.bf16.mxu1 %v3553_v5 }
 0x252   : > { %3103 = vmatpush3.bf16.msra.mxu0 %v3958_v26 }
 0x253   : > { %3305 = vmatpush3.bf16.msra.mxu1 %v3681_v7  ;;  %3104 = vmatprep.subr.bf16.mxu0 %v3965_v28 }
 0x254   : > { %3306 = vmatprep.subr.bf16.mxu1 %v3553_v5 }
 0x256   : > { %3105 = vmatpush3.bf16.msra.mxu0 %v3970_v32 }
 0x257   : > { %3307 = vmatpush3.bf16.msra.mxu1 %v3689_v9  ;;  %3106 = vmatprep.subr.bf16.mxu0 %v3977_v33 }
 0x258   : > { %1416 = vmatprep.subr.bf16.mxu1 %v3702_v12 }
 0x25a   : > { %3309 = vmatmul.mubr.msk.bf16.vlgmr.msra.gmra.mxu1 %vm730_vm1, %v1355_v52  ;;  %3107 = vmatpush3.bf16.msra.mxu0 %v3982_v34  ;;  %v4806_v52 = vunpack.c.h.bf16 %v4065_v19 }
 0x25b   : > { %1417 = vmatpush1.bf16.msra.mxu1 %v3709_v13  ;;  %1440 = vmatprep.mubr.bf16.mxu1 %v3552_v1 }
 0x25c   : > { %1418 = vmatprep.subr.bf16.mxu1 %v3714_v14  ;;  %3119 = vmatprep.subr.bf16.mxu0 %v3840_v3 }
 0x25f   : > { %1419 = vmatpush1.bf16.msra.mxu1 %v3721_v15 }
 0x260   : > { %1420 = vmatprep.subr.bf16.mxu1 %v3805_v59 }
 0x263   : > { %1421 = vmatpush1.bf16.msra.mxu1 %v3810_v60 }
 0x264   : > { %1422 = vmatprep.subr.bf16.mxu1 %v3817_v61 }
 0x267   : > { %1423 = vmatpush1.bf16.msra.mxu1 %v3822_v62 }
 0x268   : > { %3312 = vmatprep.subr.bf16.mxu1 %v3553_v5 }
 0x30a   : > { %v1227_v53 = vpop.f32.mrf.mxu1 }
 0x30b   : > { %v1228_v35 = vadd.f32 %v1227_v53, %v3994_v41 }
 0x30c   : > { %v1229_v54 = vpop.f32.mrf.mxu1 }
 0x30d   : > { %v1230_v57 = vadd.f32 %v1229_v54, %v3991_v39  ;;  %v1236_v42 = vmax.f32 %v1228_v35, 0.0  ;;  %v1538_v54 = vpop.permute.xlu0 %1537  ;;  %v1400_v35 = vsub.f32 %v3873_v20, %v4805_v50 }
 0x30e   : > { %v1231_v55 = vpop.f32.mrf.mxu1 }
 0x30f   : > { %v1232_v58 = vadd.f32 %v1231_v55, %v3994_v41  ;;  %v1237_v43 = vmax.f32 %v1230_v57, 0.0  ;;  %v1548_v57 = vpop.permute.xlu1 %1547 }
 0x310   : > { %v1233_v45 = vpop.f32.mrf.mxu1 }
 0x311   : > { %v1234_v48 = vadd.f32 %v1233_v45, %v3991_v39  ;;  %v1238_v63 = vmax.f32 %v1232_v58, 0.0  ;;  %v1401_v45 = vsub.f32 %v3876_v22, %v4806_v52 }
 0x313   : > { %v1239_v38 = vmax.f32 %v1234_v48, 0.0  ;;  %v1240_v49 = vpack.c.bf16 %v1238_v63, %v1236_v42  ;;  %v1541_v48 = vmul.f32 %v1538_v54, %v3779_v37  ;;  %v1551_v42 = vmul.f32 %v1548_v57, %v3776_v36  ;;  %v1560_v54 = vpop.permute.xlu1 %1559 }
 0x315   : > { %v1241_v46 = vpack.c.bf16 %v1239_v38, %v1237_v43  ;;  %v1540_v43 = vmul.f32 %v1533_v0, %v3779_v37  ;;  %v1550_v38 = vmul.f32 %v1544_v24, %v3776_v36  ;;  %v1563_v24 = vmul.f32 %v1560_v54, %v3781_v40 }
 0x316   : > { %v1553_v23 = vadd.f32 %v1551_v42, %v1541_v48 }
 0x317   : > { %1274 = vmatprep.mubr.bf16.mxu0 %v1241_v46  ;;  %v1552_v0 = vadd.f32 %v1550_v38, %v1540_v43  ;;  %v1748_v43 = vpop.permute.xlu1 %1747 }
 0x318   : > { %1275 = vmatmul.mubr.bf16.vlgmr.msra.gmra.mxu0 %v1240_v49 }
 0x319   : > { %3120 = vmatpush3.bf16.msra.mxu0 %v3845_v4 }
 0x31a   : > { %v1393_v53 = vpop.f32.mrf.mxu1  ;;  %3121 = vmatprep.subr.bf16.mxu0 %v3850_v8 }
 0x31b   : > { %v1394_v55 = vadd.f32 %v3865_v17, %v1393_v53  ;;  %v1556_v53 = vpop.permute.xlu0 %1555 }
 0x31c   : > { %v3310_v58 = vpop.f32.mrf.mxu1  ;;  %v1562_v52 = vmul.f32 %v1556_v53, %v3781_v40 }
 0x31d   : > { %1500 = vrot.lane.b32.xlu1 %v1394_v55, %s3556_s23  ;;  %3122 = vmatpush3.bf16.msra.mxu0 %v3860_v16  ;;  %v1402_v58 = vadd.f32 %v1400_v35, %v1394_v55  ;;  %v1565_v55 = vadd.f32 %v1563_v24, %v1553_v23  ;;  %v1759_v24 = vpop.permute.xlu1 %1758 }
 0x31e   : > { %v1396_v63 = vpop.f32.mrf.mxu1  ;;  %3123 = vmatprep.subr.bf16.mxu0 %v3871_v18  ;;  %v1564_v35 = vadd.f32 %v1562_v52, %v1552_v0 }
 0x31f   : > { %v1397_v46 = vadd.f32 %v3865_v17, %v1396_v63 }
 0x320   : > { %v3311_v49 = vpop.f32.mrf.mxu1 }
 0x321   : > { %v1403_v50 = vadd.f32 %v1401_v45, %v1397_v46  ;;  %1502 = vrot.lane.b32.xlu0 %v1397_v46, %s3556_s23  ;;  %3124 = vmatpush3.bf16.msra.mxu0 %v3884_v27  ;;  %v1566_v45 = vadd.f32 %v3793_v51, %v1564_v35 }
 0x322   : > { %3125 = vmatprep.subr.bf16.mxu0 %v3890_v29 }
 0x323   : > { %v1404_v57 = vpack.c.bf16 %v1403_v50, %v1402_v58  ;;  %v1567_v50 = vadd.f32 %v3793_v51, %v1565_v55  ;;  %v1568_v23 = vmax.f32 %v1566_v45, 0.0  ;;  %v4129_v55 = vld [vmem:[%s3835_s21 + $0x18] sm:$0xff]  }
 0x324   : > { %v3035_v35 = vunpack.c.l.bf16 %v4129_v55 }
 0x325   : > { %2963 = vmatmul.mubr.msk.bf16.vlgmr.msra.gmra.mxu1 %vm730_vm1, %v1404_v57  ;;  %3126 = vmatpush3.bf16.msra.mxu0 %v3908_v44 }
 0x326   : > { %3313 = vmatpush3.bf16.msra.mxu1 %v3664_v2  ;;  %3320 = vmatprep.mubr.msk.bf16.mxu1 %vm3555_vm0, %v3553_v5  ;;  %v1569_v2 = vmax.f32 %v1567_v50, 0.0  ;;  %v3036_v50 = vunpack.c.h.bf16 %v4129_v55 }
 0x327   : > { %3314 = vmatprep.subr.bf16.mxu1 %v3553_v5  ;;  %3127 = vmatprep.subr.bf16.mxu0 %v3914_v47 }
 0x329   : > { %3128 = vmatpush3.bf16.msra.mxu0 %v3923_v56 }
 0x32a   : > { %3315 = vmatpush3.bf16.msra.mxu1 %v3674_v6  ;;  %3129 = vmatprep.subr.bf16.mxu0 %v3953_v25  ;;  %v1570_v6 = vpack.c.bf16 %v1569_v2, %v1568_v23  ;;  %v1753_v2 = vpop.permute.xlu0 %1752 }
 0x32b   : > { %3316 = vmatprep.subr.bf16.mxu1 %v3553_v5 }
 0x32d   : > { %3130 = vmatpush3.bf16.msra.mxu0 %v3958_v26 }
 0x32e   : > { %3317 = vmatpush3.bf16.msra.mxu1 %v3681_v7  ;;  %3131 = vmatprep.subr.bf16.mxu0 %v3965_v28 }
 0x32f   : > { %3318 = vmatprep.subr.bf16.mxu1 %v3553_v5 }
 0x331   : > { %3132 = vmatpush3.bf16.msra.mxu0 %v3970_v32 }
 0x332   : > { %3319 = vmatpush3.bf16.msra.mxu1 %v3689_v9  ;;  %3133 = vmatprep.subr.bf16.mxu0 %v3977_v33 }
 0x333   : > { %1631 = vmatprep.subr.bf16.mxu1 %v3702_v12 }
 0x335   : > { %3321 = vmatmul.mubr.msk.bf16.vlgmr.msra.gmra.mxu1 %vm730_vm1, %v1570_v6  ;;  %3134 = vmatpush3.bf16.msra.mxu0 %v3982_v34  ;;  %v1763_v6 = vpop.permute.xlu1 %1762 }
 0x336   : > { %1632 = vmatpush1.bf16.msra.mxu1 %v3709_v13  ;;  %1655 = vmatprep.mubr.bf16.mxu1 %v3552_v1 }
 0x337   : > { %1633 = vmatprep.subr.bf16.mxu1 %v3714_v14  ;;  %3146 = vmatprep.subr.bf16.mxu0 %v3840_v3 }
 0x33a   : > { %1634 = vmatpush1.bf16.msra.mxu1 %v3721_v15 }
 0x33b   : > { %1635 = vmatprep.subr.bf16.mxu1 %v3805_v59 }
 0x33e   : > { %1636 = vmatpush1.bf16.msra.mxu1 %v3810_v60 }
 0x33f   : > { %1637 = vmatprep.subr.bf16.mxu1 %v3817_v61 }
 0x342   : > { %1638 = vmatpush1.bf16.msra.mxu1 %v3822_v62 }
 0x343   : > { %3324 = vmatprep.subr.bf16.mxu1 %v3553_v5 }
 0x3e5   : > { %v1442_v7 = vpop.f32.mrf.mxu1 }
 0x3e6   : > { %v1443_v38 = vadd.f32 %v1442_v7, %v3994_v41 }
 0x3e7   : > { %v1444_v9 = vpop.f32.mrf.mxu1 }
 0x3e8   : > { %v1445_v48 = vadd.f32 %v1444_v9, %v3991_v39  ;;  %v1451_v54 = vmax.f32 %v1443_v38, 0.0  ;;  %v1615_v9 = vsub.f32 %v3873_v20, %v3035_v35  ;;  %v1755_v38 = vmul.f32 %v1748_v43, %v3779_v37 }
 0x3e9   : > { %v1446_v52 = vpop.f32.mrf.mxu1 }
 0x3ea   : > { %v1447_v63 = vadd.f32 %v1446_v52, %v3994_v41  ;;  %v1452_v53 = vmax.f32 %v1445_v48, 0.0  ;;  %v1616_v52 = vsub.f32 %v3876_v22, %v3036_v50  ;;  %v1756_v48 = vmul.f32 %v1753_v2, %v3779_v37 }
 0x3eb   : > { %v1448_v42 = vpop.f32.mrf.mxu1 }
 0x3ec   : > { %v1449_v46 = vadd.f32 %v1448_v42, %v3991_v39  ;;  %v1453_v49 = vmax.f32 %v1447_v63, 0.0  ;;  %v1765_v42 = vmul.f32 %v1759_v24, %v3776_v36 }
 0x3ee   : > { %v1454_v58 = vmax.f32 %v1449_v46, 0.0  ;;  %v1455_v57 = vpack.c.bf16 %v1453_v49, %v1451_v54  ;;  %v1766_v46 = vmul.f32 %v1763_v6, %v3776_v36  ;;  %v1767_v43 = vadd.f32 %v1765_v42, %v1755_v38  ;;  %v4182_v38 = vld [vmem:[%s4794_s6 + $0x8] sm:$0xff]  }
 0x3f0   : > { %v1456_v0 = vpack.c.bf16 %v1454_v58, %v1452_v53  ;;  %v1771_v58 = vpop.permute.xlu0 %1770  ;;  %v1768_v2 = vadd.f32 %v1766_v46, %v1756_v48 }
 0x3f2   : > { %1489 = vmatprep.mubr.bf16.mxu0 %v1456_v0 }
 0x3f3   : > { %1490 = vmatmul.mubr.bf16.vlgmr.msra.gmra.mxu0 %v1455_v57  ;;  %v1775_v57 = vpop.permute.xlu1 %1774 }
 0x3f4   : > { %3147 = vmatpush3.bf16.msra.mxu0 %v3845_v4  ;;  %v1778_v24 = vmul.f32 %v1775_v57, %v3781_v40 }
 0x3f5   : > { %v1608_v45 = vpop.f32.mrf.mxu1  ;;  %3148 = vmatprep.subr.bf16.mxu0 %v3850_v8 }
 0x3f6   : > { %v1609_v23 = vadd.f32 %v3865_v17, %v1608_v45  ;;  %v1777_v45 = vmul.f32 %v1771_v58, %v3781_v40 }
 0x3f7   : > { %v3322_v7 = vpop.f32.mrf.mxu1 }
 0x3f8   : > { %1715 = vrot.lane.b32.xlu1 %v1609_v23, %s3556_s23  ;;  %3149 = vmatpush3.bf16.msra.mxu0 %v3860_v16  ;;  %v1617_v54 = vadd.f32 %v1615_v9, %v1609_v23  ;;  %v4160_v23 = vld [vmem:[%s4794_s6 + $0x18] sm:$0xff]   ;;  %v1780_v7 = vadd.f32 %v1778_v24, %v1768_v2  ;;  %v1779_v9 = vadd.f32 %v1777_v45, %v1767_v43 }
 0x3f9   : > { %v1611_v63 = vpop.f32.mrf.mxu1  ;;  %3150 = vmatprep.subr.bf16.mxu0 %v3871_v18 }
 0x3fa   : > { %v1612_v49 = vadd.f32 %v3865_v17, %v1611_v63  ;;  %v1782_v48 = vadd.f32 %v3793_v51, %v1780_v7  ;;  %v1781_v63 = vadd.f32 %v3793_v51, %v1779_v9 }
 0x3fb   : > { %v3323_v53 = vpop.f32.mrf.mxu1 }
 0x3fc   : > { %v1618_v0 = vadd.f32 %v1616_v52, %v1612_v49  ;;  %1717 = vrot.lane.b32.xlu0 %v1612_v49, %s3556_s23  ;;  %3151 = vmatpush3.bf16.msra.mxu0 %v3884_v27  ;;  %v4171_v52 = vld [vmem:[%s4794_s6 + $0x10] sm:$0xff]   ;;  %v1784_v42 = vmax.f32 %v1782_v48, 0.0  ;;  %v1783_v46 = vmax.f32 %v1781_v63, 0.0  ;;  %v4191_v49 = vld [vmem:[%s4794_s6] sm:$0xff]  }
 0x3fd   : > { %3152 = vmatprep.subr.bf16.mxu0 %v3890_v29  ;;  %v4213_v63 = vld [vmem:[%s3835_s21 + $0x20] sm:$0xff]  }
 0x3fe   : > { %v1619_v6 = vpack.c.bf16 %v1618_v0, %v1617_v54  ;;  %v1785_v53 = vpack.c.bf16 %v1784_v42, %v1783_v46  ;;  %v1963_v0 = vpop.permute.xlu1 %1962  ;;  %v4809_v42 = vunpack.c.l.bf16 %v4213_v63  ;;  %v4808_v46 = vunpack.c.h.bf16 %v4213_v63 }
 0x3ff   : > { %v4822_v55 = vunpack.c.h.bf16 %v4213_v63 }
 0x400   : > { %2969 = vmatmul.mubr.msk.bf16.vlgmr.msra.gmra.mxu1 %vm730_vm1, %v1619_v6  ;;  %3153 = vmatpush3.bf16.msra.mxu0 %v3908_v44 }
 0x401   : > { %3325 = vmatpush3.bf16.msra.mxu1 %v4160_v23  ;;  %3332 = vmatprep.mubr.msk.bf16.mxu1 %vm3555_vm0, %v3553_v5 }
 0x402   : > { %3326 = vmatprep.subr.bf16.mxu1 %v3553_v5  ;;  %3154 = vmatprep.subr.bf16.mxu0 %v3914_v47  ;;  %v1974_v9 = vpop.permute.xlu1 %1973 }
 0x404   : > { %3155 = vmatpush3.bf16.msra.mxu0 %v3923_v56 }
 0x405   : > { %3327 = vmatpush3.bf16.msra.mxu1 %v4171_v52  ;;  %3156 = vmatprep.subr.bf16.mxu0 %v3953_v25 }
 0x406   : > { %3328 = vmatprep.subr.bf16.mxu1 %v3553_v5 }
 0x408   : > { %3157 = vmatpush3.bf16.msra.mxu0 %v3958_v26 }
 0x409   : > { %3329 = vmatpush3.bf16.msra.mxu1 %v4182_v38  ;;  %3158 = vmatprep.subr.bf16.mxu0 %v3965_v28 }
 0x40a   : > { %3330 = vmatprep.subr.bf16.mxu1 %v3553_v5 }
 0x40c   : > { %3159 = vmatpush3.bf16.msra.mxu0 %v3970_v32 }
 0x40d   : > { %3331 = vmatpush3.bf16.msra.mxu1 %v4191_v49  ;;  %3160 = vmatprep.subr.bf16.mxu0 %v3977_v33 }
 0x40e   : > { %1846 = vmatprep.subr.bf16.mxu1 %v3702_v12 }
 0x410   : > { %3333 = vmatmul.mubr.msk.bf16.vlgmr.msra.gmra.mxu1 %vm730_vm1, %v1785_v53  ;;  %3161 = vmatpush3.bf16.msra.mxu0 %v3982_v34 }
 0x411   : > { %1847 = vmatpush1.bf16.msra.mxu1 %v3709_v13  ;;  %1870 = vmatprep.mubr.bf16.mxu1 %v3552_v1 }
 0x412   : > { %1848 = vmatprep.subr.bf16.mxu1 %v3714_v14  ;;  %3173 = vmatprep.subr.bf16.mxu0 %v3840_v3 }
 0x415   : > { %1849 = vmatpush1.bf16.msra.mxu1 %v3721_v15 }
 0x416   : > { %1850 = vmatprep.subr.bf16.mxu1 %v3805_v59 }
 0x419   : > { %1851 = vmatpush1.bf16.msra.mxu1 %v3810_v60 }
 0x41a   : > { %1852 = vmatprep.subr.bf16.mxu1 %v3817_v61 }
 0x41d   : > { %1853 = vmatpush1.bf16.msra.mxu1 %v3822_v62 }
 0x41e   : > { %3336 = vmatprep.subr.bf16.mxu1 %v3553_v5 }
 0x4c0   : > { %v1657_v12 = vpop.f32.mrf.mxu1 }
 0x4c1   : > { %v1658_v15 = vadd.f32 %v1657_v12, %v3994_v41  ;;  %v1968_v12 = vpop.permute.xlu0 %1967 }
 0x4c2   : > { %v1659_v13 = vpop.f32.mrf.mxu1 }
 0x4c3   : > { %v1660_v14 = vadd.f32 %v1659_v13, %v3991_v39  ;;  %v1666_v6 = vmax.f32 %v1658_v15, 0.0  ;;  %v1831_v15 = vsub.f32 %v3876_v22, %v4808_v46 }
 0x4c4   : > { %v1661_v58 = vpop.f32.mrf.mxu1 }
 0x4c5   : > { %v1662_v54 = vadd.f32 %v1661_v58, %v3994_v41  ;;  %v1667_v24 = vmax.f32 %v1660_v14, 0.0  ;;  %v1978_v58 = vpop.permute.xlu1 %1977 }
 0x4c6   : > { %v1663_v57 = vpop.f32.mrf.mxu1 }
 0x4c7   : > { %v1664_v45 = vadd.f32 %v1663_v57, %v3991_v39  ;;  %v1668_v43 = vmax.f32 %v1662_v54, 0.0  ;;  %v1830_v54 = vsub.f32 %v3873_v20, %v4809_v42  ;;  %v1971_v57 = vmul.f32 %v1968_v12, %v3779_v37 }
 0x4c9   : > { %v1669_v2 = vmax.f32 %v1664_v45, 0.0  ;;  %v1670_v48 = vpack.c.bf16 %v1668_v43, %v1666_v6  ;;  %v1970_v43 = vmul.f32 %v1963_v0, %v3779_v37  ;;  %v1990_v12 = vpop.permute.xlu1 %1989 }
 0x4cb   : > { %v1671_v7 = vpack.c.bf16 %v1669_v2, %v1667_v24  ;;  %v1980_v24 = vmul.f32 %v1974_v9, %v3776_v36  ;;  %v1981_v2 = vmul.f32 %v1978_v58, %v3776_v36  ;;  %v1993_v9 = vmul.f32 %v1990_v12, %v3781_v40 }
 0x4cd   : > { %1704 = vmatprep.mubr.bf16.mxu0 %v1671_v7  ;;  %v1982_v0 = vadd.f32 %v1980_v24, %v1970_v43  ;;  %v1983_v42 = vadd.f32 %v1981_v2, %v1971_v57  ;;  %v4270_v43 = vld [vmem:[%s4796_s8 + $0x30] ss:$8 sps:$4 sm:$0xff]   ;;  %v4277_v24 = vld [vmem:[%s4796_s8 + $0x24] ss:$8 sps:$4 sm:$0xff]   ;;  %v4284_v2 = vld [vmem:[%s4796_s8 + $0x20] ss:$8 sps:$4 sm:$0xff]  }
 0x4ce   : > { %1705 = vmatmul.mubr.bf16.vlgmr.msra.gmra.mxu0 %v1670_v48  ;;  %v1986_v48 = vpop.permute.xlu0 %1985 }
 0x4cf   : > { %3174 = vmatpush3.bf16.msra.mxu0 %v3845_v4  ;;  %v1992_v46 = vmul.f32 %v1986_v48, %v3781_v40 }
 0x4d0   : > { %v1823_v53 = vpop.f32.mrf.mxu1  ;;  %3175 = vmatprep.subr.bf16.mxu0 %v3850_v8 }
 0x4d1   : > { %v1824_v13 = vadd.f32 %v3865_v17, %v1823_v53 }
 0x4d2   : > { %v3334_v14 = vpop.f32.mrf.mxu1 }
 0x4d3   : > { %1930 = vrot.lane.b32.xlu1 %v1824_v13, %s3556_s23  ;;  %3176 = vmatpush3.bf16.msra.mxu0 %v3860_v16  ;;  %v1832_v53 = vadd.f32 %v1830_v54, %v1824_v13  ;;  %v1995_v13 = vadd.f32 %v1993_v9, %v1983_v42  ;;  %v1994_v54 = vadd.f32 %v1992_v46, %v1982_v0 }
 0x4d4   : > { %v1826_v45 = vpop.f32.mrf.mxu1  ;;  %3177 = vmatprep.subr.bf16.mxu0 %v3871_v18 }
 0x4d5   : > { %v1827_v6 = vadd.f32 %v3865_v17, %v1826_v45  ;;  %v1996_v57 = vadd.f32 %v3793_v51, %v1994_v54 }
 0x4d6   : > { %v3335_v7 = vpop.f32.mrf.mxu1 }
 0x4d7   : > { %v1833_v14 = vadd.f32 %v1831_v15, %v1827_v6  ;;  %1932 = vrot.lane.b32.xlu0 %v1827_v6, %s3556_s23  ;;  %3178 = vmatpush3.bf16.msra.mxu0 %v3884_v27  ;;  %v1997_v15 = vadd.f32 %v3793_v51, %v1995_v13  ;;  %v1998_v46 = vmax.f32 %v1996_v57, 0.0  ;;  %v4262_v51 = vld [vmem:[%s4796_s8 + $0x34] ss:$8 sps:$4 sm:$0xff]  }
 0x4d8   : > { %3179 = vmatprep.subr.bf16.mxu0 %v3890_v29 }
 0x4d9   : > { %v1834_v58 = vpack.c.bf16 %v1833_v14, %v1832_v53  ;;  %v1999_v42 = vmax.f32 %v1997_v15, 0.0  ;;  %v2178_v14 = vpop.permute.xlu1 %2177  ;;  %v4297_v15 = vld [vmem:[%s3835_s21 + $0x28] sm:$0xff]  }
 0x4da   : > { %v3043_v57 = vunpack.c.l.bf16 %v4297_v15 }
 0x4db   : > { %2975 = vmatmul.mubr.msk.bf16.vlgmr.msra.gmra.mxu1 %vm730_vm1, %v1834_v58  ;;  %3180 = vmatpush3.bf16.msra.mxu0 %v3908_v44  ;;  %v2000_v45 = vpack.c.bf16 %v1999_v42, %v1998_v46  ;;  %v3044_v42 = vunpack.c.h.bf16 %v4297_v15  ;;  %v3473_v15 = vld [vmem:[%s4800_s12 + $0x70] ss:$8 sps:$4 sm:$0xff]  }
 0x4dc   : > { %3337 = vmatpush3.bf16.msra.mxu1 %v4160_v23  ;;  %3344 = vmatprep.mubr.msk.bf16.mxu1 %vm3555_vm0, %v3553_v5 }
 0x4dd   : > { %3338 = vmatprep.subr.bf16.mxu1 %v3553_v5  ;;  %3181 = vmatprep.subr.bf16.mxu0 %v3914_v47  ;;  %v2189_v13 = vpop.permute.xlu1 %2188 }
 0x4df   : > { %3182 = vmatpush3.bf16.msra.mxu0 %v3923_v56 }
 0x4e0   : > { %3339 = vmatpush3.bf16.msra.mxu1 %v4171_v52  ;;  %3183 = vmatprep.subr.bf16.mxu0 %v3953_v25 }
 0x4e1   : > { %3340 = vmatprep.subr.bf16.mxu1 %v3553_v5 }
 0x4e3   : > { %3184 = vmatpush3.bf16.msra.mxu0 %v3958_v26 }
 0x4e4   : > { %3341 = vmatpush3.bf16.msra.mxu1 %v4182_v38  ;;  %3185 = vmatprep.subr.bf16.mxu0 %v3965_v28 }
 0x4e5   : > { %3342 = vmatprep.subr.bf16.mxu1 %v3553_v5 }
 0x4e7   : > { %3186 = vmatpush3.bf16.msra.mxu0 %v3970_v32 }
 0x4e8   : > { %3343 = vmatpush3.bf16.msra.mxu1 %v4191_v49  ;;  %3187 = vmatprep.subr.bf16.mxu0 %v3977_v33 }
 0x4e9   : > { %2061 = vmatprep.subr.bf16.mxu1 %v4262_v51 }
 0x4eb   : > { %3345 = vmatmul.mubr.msk.bf16.vlgmr.msra.gmra.mxu1 %vm730_vm1, %v2000_v45  ;;  %3188 = vmatpush3.bf16.msra.mxu0 %v3982_v34  ;;  %v2183_v45 = vpop.permute.xlu0 %2182 }
 0x4ec   : > { %2062 = vmatpush1.bf16.msra.mxu1 %v4270_v43  ;;  %2085 = vmatprep.mubr.bf16.mxu1 %v3552_v1 }
 0x4ed   : > { %2063 = vmatprep.subr.bf16.mxu1 %v4277_v24  ;;  %3200 = vmatprep.subr.bf16.mxu0 %v3840_v3 }
 0x4f0   : > { %2064 = vmatpush1.bf16.msra.mxu1 %v4284_v2 }
 0x4f1   : > { %2065 = vmatprep.subr.bf16.mxu1 %v3805_v59 }
 0x4f4   : > { %2066 = vmatpush1.bf16.msra.mxu1 %v3810_v60 }
 0x4f5   : > { %2067 = vmatprep.subr.bf16.mxu1 %v3817_v61 }
 0x4f8   : > { %2068 = vmatpush1.bf16.msra.mxu1 %v3822_v62 }
 0x4f9   : > { %3348 = vmatprep.subr.bf16.mxu1 %v3553_v5 }
 0x59b   : > { %v1872_v6 = vpop.f32.mrf.mxu1 }
 0x59c   : > { %v1873_v12 = vadd.f32 %v1872_v6, %v3994_v41 }
 0x59d   : > { %v1874_v3 = vpop.f32.mrf.mxu1 }
 0x59e   : > { %v1875_v48 = vadd.f32 %v1874_v3, %v3991_v39  ;;  %v1881_v62 = vmax.f32 %v1873_v12, 0.0  ;;  %v2193_v3 = vpop.permute.xlu1 %2192  ;;  %v2185_v12 = vmul.f32 %v2178_v14, %v3779_v37 }
 0x59f   : > { %v1876_v7 = vpop.f32.mrf.mxu1 }
 0x5a0   : > { %v1877_v53 = vadd.f32 %v1876_v7, %v3994_v41  ;;  %v1882_v61 = vmax.f32 %v1875_v48, 0.0  ;;  %v2045_v48 = vsub.f32 %v3873_v20, %v3043_v57 }
 0x5a1   : > { %v1878_v59 = vpop.f32.mrf.mxu1 }
 0x5a2   : > { %v1879_v60 = vadd.f32 %v1878_v59, %v3991_v39  ;;  %v1883_v0 = vmax.f32 %v1877_v53, 0.0  ;;  %v2046_v53 = vsub.f32 %v3876_v22, %v3044_v42  ;;  %v2195_v59 = vmul.f32 %v2189_v13, %v3776_v36 }
 0x5a4   : > { %v1884_v9 = vmax.f32 %v1879_v60, 0.0  ;;  %v1885_v54 = vpack.c.bf16 %v1883_v0, %v1881_v62  ;;  %v2196_v60 = vmul.f32 %v2193_v3, %v3776_v36 }
 0x5a6   : > { %v1886_v58 = vpack.c.bf16 %v1884_v9, %v1882_v61  ;;  %v2201_v9 = vpop.permute.xlu0 %2200 }
 0x5a8   : > { %1919 = vmatprep.mubr.bf16.mxu0 %v1886_v58 }
 0x5a9   : > { %1920 = vmatmul.mubr.bf16.vlgmr.msra.gmra.mxu0 %v1885_v54  ;;  %v2207_v54 = vmul.f32 %v2201_v9, %v3781_v40 }
 0x5aa   : > { %3201 = vmatpush3.bf16.msra.mxu0 %v3845_v4  ;;  %v2186_v4 = vmul.f32 %v2183_v45, %v3779_v37 }
 0x5ab   : > { %v2038_v46 = vpop.f32.mrf.mxu1  ;;  %3202 = vmatprep.subr.bf16.mxu0 %v3850_v8 }
 0x5ac   : > { %v2039_v6 = vadd.f32 %v3865_v17, %v2038_v46  ;;  %v2198_v13 = vadd.f32 %v2196_v60, %v2186_v4 }
 0x5ad   : > { %v3346_v7 = vpop.f32.mrf.mxu1 }
 0x5ae   : > { %2145 = vrot.lane.b32.xlu1 %v2039_v6, %s3556_s23  ;;  %3203 = vmatpush3.bf16.msra.mxu0 %v3860_v16  ;;  %v2047_v62 = vadd.f32 %v2045_v48, %v2039_v6  ;;  %v2205_v16 = vpop.permute.xlu1 %2204 }
 0x5af   : > { %v2041_v8 = vpop.f32.mrf.mxu1  ;;  %3204 = vmatprep.subr.bf16.mxu0 %v3871_v18  ;;  %v2197_v18 = vadd.f32 %v2195_v59, %v2185_v12  ;;  %v2208_v14 = vmul.f32 %v2205_v16, %v3781_v40 }
 0x5b0   : > { %v2042_v0 = vadd.f32 %v3865_v17, %v2041_v8 }
 0x5b1   : > { %v3347_v61 = vpop.f32.mrf.mxu1  ;;  %v2210_v17 = vadd.f32 %v2208_v14, %v2198_v13  ;;  %v4398_v13 = vld [vmem:[%s4798_s10 + $0x38] sm:$0xff]  }
 0x5b2   : > { %v2048_v58 = vadd.f32 %v2046_v53, %v2042_v0  ;;  %2147 = vrot.lane.b32.xlu0 %v2042_v0, %s3556_s23  ;;  %3205 = vmatpush3.bf16.msra.mxu0 %v3884_v27  ;;  %v2209_v27 = vadd.f32 %v2207_v54, %v2197_v18  ;;  %v2393_v4 = vpop.permute.xlu1 %2392  ;;  %v4391_v54 = vld [vmem:[%s3835_s21 + $0x30] sm:$0xff]  }
 0x5b3   : > { %3206 = vmatprep.subr.bf16.mxu0 %v3890_v29  ;;  %v4336_v29 = vld [vmem:[%s4793_s5] ss:$0 sm:$0xff]  ;;  %v3047_v18 = vunpack.c.l.bf16 %v4391_v54  ;;  %v3048_v14 = vunpack.c.h.bf16 %v4391_v54 }
 0x5b4   : > { %v2049_v46 = vpack.c.bf16 %v2048_v58, %v2047_v62  ;;  %v2211_v45 = vadd.f32 %v4336_v29, %v2209_v27  ;;  %v2398_v27 = vpop.permute.xlu0 %2397  ;;  %v3476_v54 = vld [vmem:[%s4800_s12 + $0x60] ss:$8 sps:$4 sm:$0xff]  }
 0x5b6   : > { %2981 = vmatmul.mubr.msk.bf16.vlgmr.msra.gmra.mxu1 %vm730_vm1, %v2049_v46  ;;  %3207 = vmatpush3.bf16.msra.mxu0 %v3908_v44  ;;  %v2212_v44 = vadd.f32 %v4336_v29, %v2210_v17  ;;  %v2404_v58 = vpop.permute.xlu1 %2403  ;;  %v4404_v17 = vld [vmem:[%s4798_s10 + $0x70] sm:$0xff]  }
 0x5b7   : > { %3349 = vmatpush3.bf16.msra.mxu1 %v4160_v23  ;;  %3356 = vmatprep.mubr.msk.bf16.mxu1 %vm3555_vm0, %v3553_v5 }
 0x5b8   : > { %3350 = vmatprep.subr.bf16.mxu1 %v3553_v5  ;;  %3208 = vmatprep.subr.bf16.mxu0 %v3914_v47  ;;  %v2214_v47 = vmax.f32 %v2212_v44, 0.0  ;;  %v4410_v44 = vld [vmem:[%s4795_s7] ss:$0 sm:$0xff] }
 0x5ba   : > { %3209 = vmatpush3.bf16.msra.mxu0 %v3923_v56  ;;  %v2213_v56 = vmax.f32 %v2211_v45, 0.0 }
 0x5bb   : > { %3351 = vmatpush3.bf16.msra.mxu1 %v4171_v52  ;;  %3210 = vmatprep.subr.bf16.mxu0 %v3953_v25 }
 0x5bc   : > { %3352 = vmatprep.subr.bf16.mxu1 %v3553_v5  ;;  %v2215_v25 = vpack.c.bf16 %v2214_v47, %v2213_v56  ;;  %v2408_v47 = vpop.permute.xlu1 %2407 }
 0x5be   : > { %3211 = vmatpush3.bf16.msra.mxu0 %v3958_v26  ;;  %v4357_v26 = vld [vmem:[%s4798_s10 + $0x78] sm:$0xff]  }
 0x5bf   : > { %3353 = vmatpush3.bf16.msra.mxu1 %v4182_v38  ;;  %3212 = vmatprep.subr.bf16.mxu0 %v3965_v28  ;;  %v4364_v28 = vld [vmem:[%s4796_s8 + $0x14] ss:$8 sps:$4 sm:$0xff]  }
 0x5c0   : > { %3354 = vmatprep.subr.bf16.mxu1 %v3553_v5 }
 0x5c2   : > { %3213 = vmatpush3.bf16.msra.mxu0 %v3970_v32  ;;  %v4370_v32 = vld [vmem:[%s4796_s8 + $0x10] ss:$8 sps:$4 sm:$0xff]  }
 0x5c3   : > { %3355 = vmatpush3.bf16.msra.mxu1 %v4191_v49  ;;  %3214 = vmatprep.subr.bf16.mxu0 %v3977_v33  ;;  %v4376_v33 = vld [vmem:[%s4796_s8 + $0x4] ss:$8 sps:$4 sm:$0xff]  }
 0x5c4   : > { %2276 = vmatprep.subr.bf16.mxu1 %v4262_v51 }
 0x5c6   : > { %3357 = vmatmul.mubr.msk.bf16.vlgmr.msra.gmra.mxu1 %vm730_vm1, %v2215_v25  ;;  %3215 = vmatpush3.bf16.msra.mxu0 %v3982_v34  ;;  %v4382_v34 = vld [vmem:[%s4796_s8] ss:$8 sps:$4 sm:$0xff]   ;;  %v2260_v25 = vsub.f32 %v3873_v20, %v3047_v18 }
 0x5c7   : > { %2277 = vmatpush1.bf16.msra.mxu1 %v4270_v43  ;;  %2300 = vmatprep.mubr.bf16.mxu1 %v3552_v1 }
 0x5c8   : > { %2278 = vmatprep.subr.bf16.mxu1 %v4277_v24  ;;  %3227 = vmatprep.subr.bf16.mxu0 %v4357_v26 }
 0x5cb   : > { %2279 = vmatpush1.bf16.msra.mxu1 %v4284_v2 }
 0x5cc   : > { %2280 = vmatprep.subr.bf16.mxu1 %v4364_v28 }
 0x5cf   : > { %2281 = vmatpush1.bf16.msra.mxu1 %v4370_v32 }
 0x5d0   : > { %2282 = vmatprep.subr.bf16.mxu1 %v4376_v33 }
 0x5d3   : > { %2283 = vmatpush1.bf16.msra.mxu1 %v4382_v34 }
 0x5d4   : > { %3360 = vmatprep.subr.bf16.mxu1 %v3553_v5 }
 0x676   : > { %v2087_v6 = vpop.f32.mrf.mxu1 }
 0x677   : > { %v2088_v8 = vadd.f32 %v2087_v6, %v3994_v41  ;;  %v2261_v6 = vsub.f32 %v3876_v22, %v3048_v14 }
 0x678   : > { %v2089_v3 = vpop.f32.mrf.mxu1 }
 0x679   : > { %v2090_v48 = vadd.f32 %v2089_v3, %v3991_v39  ;;  %v2096_v9 = vmax.f32 %v2088_v8, 0.0  ;;  %v4423_v3 = vld [vmem:[%s4798_s10 + $0x30] sm:$0xff]   ;;  %v4431_v8 = vld [vmem:[%s4798_s10 + $0x68] sm:$0xff]  }
 0x67a   : > { %v2091_v7 = vpop.f32.mrf.mxu1 }
 0x67b   : > { %v2092_v53 = vadd.f32 %v2091_v7, %v3994_v41  ;;  %v2097_v0 = vmax.f32 %v2090_v48, 0.0  ;;  %v2400_v7 = vmul.f32 %v2393_v4, %v3779_v37  ;;  %v2410_v48 = vmul.f32 %v2404_v58, %v3776_v36  ;;  %v4441_v4 = vld [vmem:[%s4798_s10 + $0x28] sm:$0xff]   ;;  %v2420_v58 = vpop.permute.xlu1 %2419 }
 0x67c   : > { %v2093_v12 = vpop.f32.mrf.mxu1 }
 0x67d   : > { %v2094_v59 = vadd.f32 %v2093_v12, %v3991_v39  ;;  %v2098_v60 = vmax.f32 %v2092_v53, 0.0  ;;  %v2411_v12 = vmul.f32 %v2408_v47, %v3776_v36  ;;  %v4447_v36 = vld [vmem:[%s4798_s10 + $0x60] sm:$0xff]  }
 0x67e   : > { %v4456_v47 = vld [vmem:[%s4798_s10 + $0x20] sm:$0xff]  }
 0x67f   : > { %v2099_v61 = vmax.f32 %v2094_v59, 0.0  ;;  %v2100_v16 = vpack.c.bf16 %v2098_v60, %v2096_v9  ;;  %v2401_v59 = vmul.f32 %v2398_v27, %v3779_v37  ;;  %v2423_v37 = vmul.f32 %v2420_v58, %v3781_v40 }
 0x681   : > { %v2101_v62 = vpack.c.bf16 %v2099_v61, %v2097_v0 }
 0x683   : > { %2134 = vmatprep.mubr.bf16.mxu0 %v2101_v62  ;;  %v2412_v62 = vadd.f32 %v2410_v48, %v2400_v7 }
 0x684   : > { %2135 = vmatmul.mubr.bf16.vlgmr.msra.gmra.mxu0 %v2100_v16  ;;  %v2416_v16 = vpop.permute.xlu0 %2415 }
 0x685   : > { %3228 = vmatpush3.bf16.msra.mxu0 %v4398_v13  ;;  %v2422_v27 = vmul.f32 %v2416_v16, %v3781_v40  ;;  %v4466_v40 = vld [vmem:[%s4798_s10 + $0x58] sm:$0xff]  }
 0x686   : > { %v2253_v46 = vpop.f32.mrf.mxu1  ;;  %3229 = vmatprep.subr.bf16.mxu0 %v4404_v17  ;;  %v4534_v16 = vld [vmem:[%s3835_s21 + $0x38] sm:$0xff]  }
 0x687   : > { %v2254_v45 = vadd.f32 %v4410_v44, %v2253_v46  ;;  %v2413_v46 = vadd.f32 %v2411_v12, %v2401_v59  ;;  %v4502_v59 = vld [vmem:[%s4798_s10 + $0x8] sm:$0xff]  }
 0x688   : > { %v3358_v56 = vpop.f32.mrf.mxu1 }
 0x689   : > { %2360 = vrot.lane.b32.xlu1 %v2254_v45, %s3556_s23  ;;  %3230 = vmatpush3.bf16.msra.mxu0 %v4423_v3  ;;  %v2262_v61 = vadd.f32 %v2260_v25, %v2254_v45  ;;  %v2425_v56 = vadd.f32 %v2423_v37, %v2413_v46  ;;  %v2424_v25 = vadd.f32 %v2422_v27, %v2412_v62  ;;  %v3052_v37 = vunpack.c.h.bf16 %v4534_v16 }
 0x68a   : > { %v2256_v53 = vpop.f32.mrf.mxu1  ;;  %3231 = vmatprep.subr.bf16.mxu0 %v4431_v8 }
 0x68b   : > { %v2257_v60 = vadd.f32 %v4410_v44, %v2256_v53  ;;  %v2427_v7 = vadd.f32 %v4336_v29, %v2425_v56  ;;  %v2426_v48 = vadd.f32 %v4336_v29, %v2424_v25  ;;  %v4488_v53 = vld [vmem:[%s4798_s10 + $0x10] sm:$0xff]  }
 0x68c   : > { %v3359_v0 = vpop.f32.mrf.mxu1 }
 0x68d   : > { %v2263_v9 = vadd.f32 %v2261_v6, %v2257_v60  ;;  %2362 = vrot.lane.b32.xlu0 %v2257_v60, %s3556_s23  ;;  %3232 = vmatpush3.bf16.msra.mxu0 %v4441_v4  ;;  %v4472_v6 = vld [vmem:[%s4798_s10 + $0x18] sm:$0xff]   ;;  %v2429_v12 = vmax.f32 %v2427_v7, 0.0  ;;  %v2428_v29 = vmax.f32 %v2426_v48, 0.0  ;;  %v2476_v7 = vsub.f32 %v3876_v22, %v3052_v37  ;;  %v1073_v48 = vpop.permute.xlu0 %1072 }
 0x68e   : > { %3233 = vmatprep.subr.bf16.mxu0 %v4447_v36  ;;  %v4816_v22 = vunpack.c.h.bf16 %v3853_v11  ;;  %v4818_v11 = vunpack.c.h.bf16 %v4001_v10 }
 0x68f   : > { %v2264_v45 = vpack.c.bf16 %v2263_v9, %v2262_v61  ;;  %v2430_v60 = vpack.c.bf16 %v2429_v12, %v2428_v29 }
 0x691   : > { %2987 = vmatmul.mubr.msk.bf16.vlgmr.msra.gmra.mxu1 %vm730_vm1, %v2264_v45  ;;  %3234 = vmatpush3.bf16.msra.mxu0 %v4456_v47  ;;  %v1071_v45 = vpop.permute.xlu1 %1070 }
 0x692   : > { %3361 = vmatpush3.bf16.msra.mxu1 %v4160_v23  ;;  %3368 = vmatprep.mubr.msk.bf16.mxu1 %vm3555_vm0, %v3553_v5  ;;  %v4479_v23 = vld [vmem:[%s4798_s10 + $0x50] sm:$0xff]  }
 0x693   : > { %3362 = vmatprep.subr.bf16.mxu1 %v3553_v5  ;;  %3235 = vmatprep.subr.bf16.mxu0 %v4466_v40 }
 0x695   : > { %3236 = vmatpush3.bf16.msra.mxu0 %v4472_v6  ;;  %v1286_v29 = vpop.permute.xlu1 %1285 }
 0x696   : > { %3363 = vmatpush3.bf16.msra.mxu1 %v4171_v52  ;;  %3237 = vmatprep.subr.bf16.mxu0 %v4479_v23  ;;  %v4495_v52 = vld [vmem:[%s4798_s10 + $0x48] sm:$0xff]  }
 0x697   : > { %3364 = vmatprep.subr.bf16.mxu1 %v3553_v5 }
 0x699   : > { %3238 = vmatpush3.bf16.msra.mxu0 %v4488_v53 }
 0x69a   : > { %3365 = vmatpush3.bf16.msra.mxu1 %v4182_v38  ;;  %3239 = vmatprep.subr.bf16.mxu0 %v4495_v52  ;;  %v4509_v38 = vld [vmem:[%s4798_s10 + $0x40] sm:$0xff]  }
 0x69b   : > { %3366 = vmatprep.subr.bf16.mxu1 %v3553_v5  ;;  %v4517_v5 = vld [vmem:[%s4798_s10] sm:$0xff]  }
 0x69d   : > { %3240 = vmatpush3.bf16.msra.mxu0 %v4502_v59 }
 0x69e   : > { %3367 = vmatpush3.bf16.msra.mxu1 %v4191_v49  ;;  %3241 = vmatprep.subr.bf16.mxu0 %v4509_v38 }
 0x69f   : > { %2491 = vmatprep.subr.bf16.mxu1 %v4262_v51 }
 0x6a1   : > { %3369 = vmatmul.mubr.msk.bf16.vlgmr.msra.gmra.mxu1 %vm730_vm1, %v2430_v60  ;;  %3242 = vmatpush3.bf16.msra.mxu0 %v4517_v5 }
 0x6a2   : > { %2492 = vmatpush1.bf16.msra.mxu1 %v4270_v43  ;;  %2515 = vmatprep.mubr.bf16.mxu1 %v3552_v1 }
 0x6a3   : > { %2493 = vmatprep.subr.bf16.mxu1 %v4277_v24  ;;  %3254 = vmatprep.subr.bf16.mxu0 %v4357_v26 }
 0x6a6   : > { %2494 = vmatpush1.bf16.msra.mxu1 %v4284_v2 }
 0x6a7   : > { %2495 = vmatprep.subr.bf16.mxu1 %v4364_v28 }
 0x6aa   : > { %2496 = vmatpush1.bf16.msra.mxu1 %v4370_v32 }
 0x6ab   : > { %2497 = vmatprep.subr.bf16.mxu1 %v4376_v33 }
 0x6ae   : > { %2498 = vmatpush1.bf16.msra.mxu1 %v4382_v34  ;;  %v3051_v34 = vunpack.c.l.bf16 %v4534_v16 }
 0x6b0   : > { %v2475_v25 = vsub.f32 %v3873_v20, %v3051_v34 }
 0x751   : > { %v2302_v49 = vpop.f32.mrf.mxu1 }
 0x752   : > { %v2303_v26 = vadd.f32 %v2302_v49, %v3994_v41 }
 0x753   : > { %v2304_v51 = vpop.f32.mrf.mxu1 }
 0x754   : > { %v2305_v0 = vadd.f32 %v2304_v51, %v3991_v39  ;;  %v2311_v62 = vmax.f32 %v2303_v26, 0.0  ;;  %v1288_v51 = vpop.permute.xlu0 %1287 }
 0x755   : > { %v2306_v43 = vpop.f32.mrf.mxu1 }
 0x756   : > { %v2307_v24 = vadd.f32 %v2306_v43, %v3994_v41  ;;  %v2312_v9 = vmax.f32 %v2305_v0, 0.0  ;;  %v1501_v43 = vpop.permute.xlu1 %1500  ;;  %v4819_v0 = vunpack.c.l.bf16 %v4065_v19 }
 0x757   : > { %v2308_v61 = vpop.f32.mrf.mxu1 }
 0x758   : > { %v2309_v2 = vadd.f32 %v2308_v61, %v3991_v39  ;;  %v2313_v28 = vmax.f32 %v2307_v24, 0.0  ;;  %v4580_v24 = vadd.f32 %v4819_v0, %v1501_v43  ;;  %v3494_v43 = vld [vmem:[%s4800_s12] ss:$8 sps:$4 sm:$0xff]  }
 0x75a   : > { %v2314_v32 = vmax.f32 %v2309_v2, 0.0  ;;  %v2315_v58 = vpack.c.bf16 %v2313_v28, %v2311_v62  ;;  %v1716_v26 = vpop.permute.xlu1 %1715  ;;  %v3484_v62 = vld [vmem:[%s4800_s12 + $0x44] ss:$8 sps:$4 sm:$0xff]  }
 0x75b   : > { %v4595_v61 = vadd.f32 %v3035_v35, %v1716_v26 }
 0x75c   : > { %v2316_v33 = vpack.c.bf16 %v2314_v32, %v2312_v9  ;;  %v3479_v32 = vld [vmem:[%s4800_s12 + $0x50] ss:$8 sps:$4 sm:$0xff]  }
 0x75e   : > { %2349 = vmatprep.mubr.bf16.mxu0 %v2316_v33 }
 0x75f   : > { %2350 = vmatmul.mubr.bf16.vlgmr.msra.gmra.mxu0 %v2315_v58 }
 0x760   : > { %3255 = vmatpush3.bf16.msra.mxu0 %v4398_v13 }
 0x761   : > { %v2468_v46 = vpop.f32.mrf.mxu1  ;;  %3256 = vmatprep.subr.bf16.mxu0 %v4404_v17  ;;  %v4552_v17 = vadd.f32 %v3023_v21, %v1071_v45  ;;  %v4817_v21 = vunpack.c.l.bf16 %v4001_v10  ;;  %v4820_v10 = vunpack.c.h.bf16 %v4065_v19 }
 0x762   : > { %v2469_v27 = vadd.f32 %v4410_v44, %v2468_v46 }
 0x763   : > { %v3370_v56 = vpop.f32.mrf.mxu1 }
 0x764   : > { %2575 = vrot.lane.b32.xlu1 %v2469_v27, %s3556_s23  ;;  %3257 = vmatpush3.bf16.msra.mxu0 %v4423_v3  ;;  %v2477_v60 = vadd.f32 %v2475_v25, %v2469_v27  ;;  %v4561_v3 = vadd.f32 %v4816_v22, %v1073_v48  ;;  %v3485_v22 = vld [vmem:[%s4800_s12 + $0x30] ss:$8 sps:$4 sm:$0xff]  }
 0x765   : > { %v2471_v13 = vpop.f32.mrf.mxu1  ;;  %3258 = vmatprep.subr.bf16.mxu0 %v4431_v8  ;;  %v4565_v8 = vadd.f32 %v4817_v21, %v1286_v29  ;;  %v3493_v21 = vld [vmem:[%s4800_s12 + $0x14] ss:$8 sps:$4 sm:$0xff]  }
 0x766   : > { %v2472_v12 = vadd.f32 %v4410_v44, %v2471_v13 }
 0x767   : > { %v3371_v20 = vpop.f32.mrf.mxu1 }
 0x768   : > { %v2478_v49 = vadd.f32 %v2476_v7, %v2472_v12  ;;  %1080 = vrot.lane.b32.xlu1 %v4552_v17, %s3556_s23  ;;  %2577 = vrot.lane.b32.xlu0 %v2472_v12, %s3556_s23 }
 0x769   : > { %3259 = vmatpush3.bf16.msra.mxu0 %v4441_v4  ;;  %v4576_v4 = vadd.f32 %v4818_v11, %v1288_v51  ;;  %v3496_v51 = vld [vmem:[%s4800_s12 + $0x4] ss:$8 sps:$4 sm:$0xff]   ;;  %v3081_v11 = vpop.f32.mrf.mxu0 }
 0x76a   : > { %v2479_v44 = vpack.c.bf16 %v2478_v49, %v2477_v60  ;;  %3260 = vmatprep.subr.bf16.mxu0 %v4447_v36  ;;  %v1503_v36 = vpop.permute.xlu0 %1502  ;;  %v3487_v49 = vld [vmem:[%s4800_s12 + $0x34] ss:$8 sps:$4 sm:$0xff]  }
 0x76b   : > { %v3082_v0 = vpop.f32.mrf.mxu0 }
 0x76c   : > { %1295 = vrot.lane.b32.xlu1 %v4565_v8, %s3556_s23  ;;  %1082 = vrot.lane.b32.xlu0 %v4561_v3, %s3556_s23 }
 0x76d   : > { %2993 = vmatmul.mubr.msk.bf16.vlgmr.msra.gmra.mxu1 %vm730_vm1, %v2479_v44  ;;  %3261 = vmatpush3.bf16.msra.mxu0 %v4456_v47  ;;  %v4591_v47 = vadd.f32 %v4820_v10, %v1503_v36  ;;  %v3491_v44 = vld [vmem:[%s4800_s12 + $0x10] ss:$8 sps:$4 sm:$0xff]   ;;  %v3084_v36 = vpop.f32.mrf.mxu0 }
 0x76e   : > { %3262 = vmatprep.subr.bf16.mxu0 %v4466_v40  ;;  %2738 = vmatprep.mubr.bf16.mxu1 %v3552_v1  ;;  %v1718_v1 = vpop.permute.xlu0 %1717  ;;  %v1931_v40 = vpop.permute.xlu1 %1930 }
 0x76f   : > { %v4605_v19 = vadd.f32 %v3036_v50, %v1718_v1  ;;  %v3085_v26 = vpop.f32.mrf.mxu0 }
 0x770   : > { %1510 = vrot.lane.b32.xlu1 %v4580_v24, %s3556_s23  ;;  %1297 = vrot.lane.b32.xlu0 %v4576_v4, %s3556_s23 }
 0x771   : > { %3263 = vmatpush3.bf16.msra.mxu0 %v4472_v6  ;;  %v4821_v6 = vunpack.c.l.bf16 %v4213_v63  ;;  %v3108_v10 = vpop.f32.mrf.mxu0 }
 0x772   : > { %3264 = vmatprep.subr.bf16.mxu0 %v4479_v23  ;;  %v1933_v23 = vpop.permute.xlu0 %1932  ;;  %v2146_v2 = vpop.permute.xlu1 %2145 }
 0x773   : > { %v4609_v35 = vadd.f32 %v4821_v6, %v1931_v40  ;;  %v4619_v50 = vadd.f32 %v4822_v55, %v1933_v23  ;;  %v3109_v1 = vpop.f32.mrf.mxu0 }
 0x774   : > { %1725 = vrot.lane.b32.xlu1 %v4595_v61, %s3556_s23  ;;  %1512 = vrot.lane.b32.xlu0 %v4591_v47, %s3556_s23 }
 0x775   : > { %3265 = vmatpush3.bf16.msra.mxu0 %v4488_v53  ;;  %v4623_v53 = vadd.f32 %v3043_v57, %v2146_v2  ;;  %v3111_v40 = vpop.f32.mrf.mxu0 }
 0x776   : > { %3266 = vmatprep.subr.bf16.mxu0 %v4495_v52  ;;  %v2148_v52 = vpop.permute.xlu0 %2147  ;;  %v2361_v28 = vpop.permute.xlu1 %2360 }
 0x777   : > { %v4633_v63 = vadd.f32 %v3044_v42, %v2148_v52  ;;  %v4637_v57 = vadd.f32 %v3047_v18, %v2361_v28  ;;  %v3475_v42 = vld [vmem:[%s4800_s12 + $0x74] ss:$8 sps:$4 sm:$0xff]   ;;  %v3478_v18 = vld [vmem:[%s4800_s12 + $0x64] ss:$8 sps:$4 sm:$0xff]   ;;  %v3112_v6 = vpop.f32.mrf.mxu0 }
 0x778   : > { %1940 = vrot.lane.b32.xlu1 %v4609_v35, %s3556_s23  ;;  %1727 = vrot.lane.b32.xlu0 %v4605_v19, %s3556_s23 }
 0x779   : > { %3267 = vmatpush3.bf16.msra.mxu0 %v4502_v59  ;;  %2706 = vmatprep.subr.bf16.mxu1 %v3475_v42  ;;  %v3135_v23 = vpop.f32.mrf.mxu0 }
 0x77a   : > { %3268 = vmatprep.subr.bf16.mxu0 %v4509_v38  ;;  %v2363_v59 = vpop.permute.xlu0 %2362  ;;  %2707 = vmatpush1.bf16.msra.mxu1 %v3473_v15 }
 0x77b   : > { %v4645_v38 = vadd.f32 %v3048_v14, %v2363_v59  ;;  %2708 = vmatprep.subr.bf16.mxu1 %v3478_v18  ;;  %v3481_v14 = vld [vmem:[%s4800_s12 + $0x54] ss:$8 sps:$4 sm:$0xff]   ;;  %v3136_v2 = vpop.f32.mrf.mxu0 }
 0x77c   : > { %2155 = vrot.lane.b32.xlu1 %v4623_v53, %s3556_s23  ;;  %1942 = vrot.lane.b32.xlu0 %v4619_v50, %s3556_s23 }
 0x77d   : > { %3269 = vmatpush3.bf16.msra.mxu0 %v4517_v5  ;;  %v3138_v55 = vpop.f32.mrf.mxu0 }
 0x77e   : > { %2709 = vmatpush1.bf16.msra.mxu1 %v3476_v54 }
 0x77f   : > { %2710 = vmatprep.subr.bf16.mxu1 %v3481_v14  ;;  %v3139_v52 = vpop.f32.mrf.mxu0 }
 0x780   : > { %2370 = vrot.lane.b32.xlu1 %v4637_v57, %s3556_s23  ;;  %2157 = vrot.lane.b32.xlu0 %v4633_v63, %s3556_s23 }
 0x781   : > { %v3162_v28 = vpop.f32.mrf.mxu0 }
 0x782   : > { %2711 = vmatpush1.bf16.msra.mxu1 %v3479_v32 }
 0x783   : > { %2712 = vmatprep.subr.bf16.mxu1 %v3484_v62  ;;  %v3163_v59 = vpop.f32.mrf.mxu0 }
 0x784   : > { %2372 = vrot.lane.b32.xlu0 %v4645_v38, %s3556_s23 }
 0x785   : > { %v3165_v15 = vpop.f32.mrf.mxu0 }
 0x787   : > { %v3166_v42 = vpop.f32.mrf.mxu0 }
 0x788   : > { %v3167_v30 = vadd.f32 %v3166_v42, %v3165_v15 }
 0x789   : > { %v3189_v18 = vpop.f32.mrf.mxu0 }
 0x78b   : > { %v3190_v54 = vpop.f32.mrf.mxu0 }
 0x78d   : > { %v3192_v14 = vpop.f32.mrf.mxu0 }
 0x78f   : > { %v3193_v62 = vpop.f32.mrf.mxu0 }
 0x790   : > { %v3194_v15 = vadd.f32 %v3193_v62, %v3192_v14 }
 0x7d6   : > { %v2576_v5 = vpop.permute.xlu1 %2575 }
 0x7d7   : > { %v4666_v9 = vadd.f32 %v3051_v34, %v2576_v5  ;;  %v3482_v34 = vld [vmem:[%s4800_s12 + $0x40] ss:$8 sps:$4 sm:$0xff]  }
 0x7d8   : > { %2713 = vmatpush1.bf16.msra.mxu1 %v3482_v34 }
 0x7d9   : > { %2585 = vrot.lane.b32.xlu1 %v4666_v9, %s3556_s23  ;;  %2714 = vmatprep.subr.bf16.mxu1 %v3487_v49  ;;  %v3113_v49 = vadd.f32 %v3112_v6, %v3111_v40  ;;  %v3191_v6 = vadd.f32 %v3190_v54, %v3189_v18 }
 0x7da   : > { %v2578_v33 = vpop.permute.xlu0 %2577  ;;  %v1081_v5 = vpop.permute.xlu1 %1080 }
 0x7db   : > { %v4678_v58 = vadd.f32 %v3052_v37, %v2578_v33  ;;  %v3216_v33 = vpop.f32.mrf.mxu0 }
 0x7dc   : > { %2715 = vmatpush1.bf16.msra.mxu1 %v3485_v22  ;;  %v3137_v22 = vadd.f32 %v3136_v2, %v3135_v23  ;;  %v1086_v23 = vsel %vm730_vm1, %v1081_v5, %v4552_v17 }
 0x7dd   : > { %2587 = vrot.lane.b32.xlu0 %v4678_v58, %s3556_s23 }
 0x7de   : > { %v1083_v32 = vpop.permute.xlu0 %1082  ;;  %v1296_v34 = vpop.permute.xlu1 %1295 }
 0x82d   : > { %v2517_v46 = vpop.f32.mrf.mxu1 }
 0x82e   : > { %v2518_v16 = vadd.f32 %v2517_v46, %v3994_v41  ;;  %v1298_v46 = vpop.permute.xlu0 %1297 }
 0x82f   : > { %v2519_v27 = vpop.f32.mrf.mxu1 }
 0x830   : > { %v2520_v56 = vadd.f32 %v2519_v27, %v3991_v39  ;;  %v2526_v29 = vmax.f32 %v2518_v16, 0.0  ;;  %v3217_v27 = vpop.f32.mrf.mxu0 }
 0x831   : > { %v2521_v45 = vpop.f32.mrf.mxu1  ;;  %v3218_v42 = vadd.f32 %v3217_v27, %v3216_v33 }
 0x832   : > { %v2522_v25 = vadd.f32 %v2521_v45, %v3994_v41  ;;  %v2527_v48 = vmax.f32 %v2520_v56, 0.0  ;;  %v3488_v41 = vld [vmem:[%s4800_s12 + $0x20] ss:$8 sps:$4 sm:$0xff]   ;;  %v1511_v45 = vpop.permute.xlu1 %1510  ;;  %v3219_v56 = vpop.f32.mrf.mxu0 }
 0x833   : > { %v2523_v37 = vpop.f32.mrf.mxu1  ;;  %v1516_v2 = vsel %vm730_vm1, %v1511_v45, %v4580_v24 }
 0x834   : > { %v2524_v7 = vadd.f32 %v2523_v37, %v3991_v39  ;;  %v2528_v13 = vmax.f32 %v2522_v25, 0.0  ;;  %v3490_v39 = vld [vmem:[%s4800_s12 + $0x24] ss:$8 sps:$4 sm:$0xff]   ;;  %v1513_v25 = vpop.permute.xlu0 %1512  ;;  %v3220_v16 = vpop.f32.mrf.mxu0 }
 0x835   : > { %2716 = vmatprep.subr.bf16.mxu1 %v3490_v39  ;;  %v3221_v17 = vadd.f32 %v3220_v16, %v3219_v56 }
 0x836   : > { %v2529_v12 = vmax.f32 %v2524_v7, 0.0  ;;  %v2530_v60 = vpack.c.bf16 %v2528_v13, %v2526_v29  ;;  %2717 = vmatpush1.bf16.msra.mxu1 %v3488_v41  ;;  %v1726_v37 = vpop.permute.xlu1 %1725  ;;  %v3243_v7 = vpop.f32.mrf.mxu0  ;;  %v3140_v41 = vadd.f32 %v3139_v52, %v3138_v55  ;;  %v1087_v52 = vsel %vm730_vm1, %v1083_v32, %v4561_v3 }
 0x837   : > { %2718 = vmatprep.subr.bf16.mxu1 %v3493_v21  ;;  %v3164_v21 = vadd.f32 %v3163_v59, %v3162_v28  ;;  %v1517_v28 = vsel %vm730_vm1, %v1513_v25, %v4591_v47  ;;  %v1731_v24 = vsel %vm730_vm1, %v1726_v37, %v4595_v61 }
 0x838   : > { %v2531_v20 = vpack.c.bf16 %v2529_v12, %v2527_v48  ;;  %v1728_v13 = vpop.permute.xlu0 %1727  ;;  %v3083_v48 = vadd.f32 %v3082_v0, %v3081_v11  ;;  %v3086_v12 = vadd.f32 %v3085_v26, %v3084_v36  ;;  %v3244_v29 = vpop.f32.mrf.mxu0  ;;  %v1301_v11 = vsel %vm730_vm1, %v1296_v34, %v4565_v8 }
 0x839   : > { %v1732_v47 = vsel %vm730_vm1, %v1728_v13, %v4605_v19  ;;  %v3245_v14 = vadd.f32 %v3244_v29, %v3243_v7 }
 0x83a   : > { %2564 = vmatprep.mubr.bf16.mxu0 %v2531_v20  ;;  %2719 = vmatpush1.bf16.msra.mxu1 %v3491_v44  ;;  %v4716_v20 = vld [vmem:[%s4799_s11] ss:$0 sm:$0xff]  ;;  %v1941_v39 = vpop.permute.xlu1 %1940  ;;  %v3246_v0 = vpop.f32.mrf.mxu0 }
 0x83b   : > { %2565 = vmatmul.mubr.bf16.vlgmr.msra.gmra.mxu0 %v2530_v60  ;;  %2720 = vmatprep.subr.bf16.mxu1 %v3496_v51  ;;  %v3110_v60 = vadd.f32 %v3109_v1, %v3108_v10  ;;  %v1062_v51 = vadd.f32 %v3083_v48, %v4716_v20  ;;  %v1280_v26 = vadd.f32 %v3113_v49, %v4716_v20 }
 0x83c   : > { %v1943_v44 = vpop.permute.xlu0 %1942  ;;  %v1492_v10 = vadd.f32 %v3137_v22, %v4716_v20  ;;  %v1302_v1 = vsel %vm730_vm1, %v1298_v46, %v4576_v4  ;;  %v1495_v40 = vadd.f32 %v3140_v41, %v4716_v20  ;;  %v1707_v8 = vadd.f32 %v3164_v21, %v4716_v20  ;;  %v3247_v54 = vpop.f32.mrf.mxu0 }
 0x83d   : > { %v1277_v36 = vadd.f32 %v3110_v60, %v4716_v20  ;;  %v1710_v4 = vadd.f32 %v3167_v30, %v4716_v20  ;;  %v1304_v18 = vmul.f32 %v1302_v1, %v1280_v26  ;;  %v1088_v5 = vmul.f32 %v1086_v23, %v1062_v51 }
 0x83e   : > { %2721 = vmatpush1.bf16.msra.mxu1 %v3494_v43  ;;  %v1065_v43 = vadd.f32 %v3086_v12, %v4716_v20  ;;  %v2156_v59 = vpop.permute.xlu1 %2155  ;;  %v1518_v34 = vmul.f32 %v1516_v2, %v1492_v10  ;;  %v1922_v45 = vadd.f32 %v3191_v6, %v4716_v20  ;;  %v1519_v32 = vmul.f32 %v1517_v28, %v1495_v40 }
 0x83f   : > { %v1303_v55 = vmul.f32 %v1301_v11, %v1277_v36  ;;  %v1946_v30 = vsel %vm730_vm1, %v1941_v39, %v4609_v35  ;;  %v3248_v62 = vadd.f32 %v3247_v54, %v3246_v0  ;;  %v1925_v33 = vadd.f32 %v3194_v15, %v4716_v20 }
 0x840   : > { %v2158_v46 = vpop.permute.xlu0 %2157  ;;  %v1089_v3 = vmul.f32 %v1087_v52, %v1065_v43  ;;  %v1733_v56 = vmul.f32 %v1731_v24, %v1707_v8  ;;  %v1947_v61 = vsel %vm730_vm1, %v1943_v44, %v4619_v50  ;;  %v2137_v37 = vadd.f32 %v3218_v42, %v4716_v20 }
 0x841   : > { %v1305_v25 = vadd.f32 %v1303_v55, %v1088_v5  ;;  %v2140_v48 = vadd.f32 %v3221_v17, %v4716_v20  ;;  %v1734_v19 = vmul.f32 %v1732_v47, %v1710_v4  ;;  %v1948_v49 = vmul.f32 %v1946_v30, %v1922_v45  ;;  %v623_v47 = vld [vmem:[%s604_s2 + $0x8] sm:$0xff] }
 0x842   : > { %v1306_v27 = vadd.f32 %v1304_v18, %v1089_v3  ;;  %v2371_v13 = vpop.permute.xlu1 %2370  ;;  %v2161_v35 = vsel %vm730_vm1, %v2156_v59, %v4623_v53  ;;  %v2162_v7 = vsel %vm730_vm1, %v2158_v46, %v4633_v63  ;;  %v1949_v22 = vmul.f32 %v1947_v61, %v1925_v33 }
 0x843   : > { %v1520_v12 = vadd.f32 %v1518_v34, %v1305_v25  ;;  %v2352_v50 = vadd.f32 %v3245_v14, %v4716_v20  ;;  %v2355_v41 = vadd.f32 %v3248_v62, %v4716_v20  ;;  %v2163_v11 = vmul.f32 %v2161_v35, %v2137_v37  ;;  %v622_v34 = vld [vmem:[%s604_s2] sm:$0xff] }
 0x844   : > { %v1521_v60 = vadd.f32 %v1519_v32, %v1306_v27  ;;  %v2373_v39 = vpop.permute.xlu0 %2372  ;;  %v2164_v0 = vmul.f32 %v2162_v7, %v2140_v48  ;;  %v2376_v63 = vsel %vm730_vm1, %v2371_v13, %v4637_v57 }
 0x845   : > { %v1735_v44 = vadd.f32 %v1733_v56, %v1520_v12  ;;  %v2377_v10 = vsel %vm730_vm1, %v2373_v39, %v4645_v38  ;;  %v2378_v6 = vmul.f32 %v2376_v63, %v2352_v50 }
 0x846   : > { %v1736_v43 = vadd.f32 %v1734_v19, %v1521_v60  ;;  %v2379_v23 = vmul.f32 %v2377_v10, %v2355_v41 }
 0x847   : > { %v1950_v53 = vadd.f32 %v1948_v49, %v1735_v44 }
 0x848   : > { %v1951_v40 = vadd.f32 %v1949_v22, %v1736_v43 }
 0x849   : > { %v2165_v52 = vadd.f32 %v2163_v11, %v1950_v53 }
 0x84a   : > { %v2166_v28 = vadd.f32 %v2164_v0, %v1951_v40 }
 0x84b   : > { %v2586_v36 = vpop.permute.xlu1 %2585  ;;  %v2380_v38 = vadd.f32 %v2378_v6, %v2165_v52 }
 0x84c   : > { %v2591_v55 = vsel %vm730_vm1, %v2586_v36, %v4666_v9  ;;  %v2381_v15 = vadd.f32 %v2379_v23, %v2166_v28  ;;  %v2614_v9 = vld [vmem:[%s4801_s13] sm:$0x3] }
 0x84f   : > { %v2588_v2 = vpop.permute.xlu0 %2587 }
 0x850   : > { %v2592_v57 = vsel %vm730_vm1, %v2588_v2, %v4678_v58  ;;  %v4823_v58 = vld [vmem:[#allocation2_spill] sm:$0xff] }
 0x851   : > { %v2623_v5 = vrot.slane %v2614_v9, %v4823_v58 }
 0x8fb   : > { %v3270_v16 = vpop.f32.mrf.mxu0 }
 0x8fd   : > { %v3271_v29 = vpop.f32.mrf.mxu0 }
 0x8fe   : > { %v3272_v21 = vadd.f32 %v3271_v29, %v3270_v16 }
 0x8ff   : > { %v3273_v51 = vpop.f32.mrf.mxu0 }
 0x900   : > { %v2567_v26 = vadd.f32 %v3272_v21, %v4716_v20 }
 0x901   : > { %v3274_v1 = vpop.f32.mrf.mxu0 }
 0x902   : > { %v3275_v8 = vadd.f32 %v3274_v1, %v3273_v51  ;;  %v2593_v59 = vmul.f32 %v2591_v55, %v2567_v26 }
 0x904   : > { %v2570_v4 = vadd.f32 %v3275_v8, %v4716_v20  ;;  %v2595_v18 = vadd.f32 %v2593_v59, %v2380_v38  ;;  %v2619_v20 = vrot.slane %v2614_v9, %v3769_v31 }
 0x906   : > { %v2594_v42 = vmul.f32 %v2592_v57, %v2570_v4 }
 0x908   : > { %v2596_v54 = vadd.f32 %v2594_v42, %v2381_v15 }
 0x90a   : > { %v2613_v17 = vpack.c.bf16 %v2596_v54, %v2595_v18 }
 0x90c   : > { %2739 = vmatmul.mubr.bf16.vlgmr.msra.gmra.mxu1 %v2613_v17 }
 0x9cc   : > { %v2740_v24 = vpop.f32.mrf.mxu1 }
 0x9cd   : > { %v2741_v46 = vadd.f32 %v2740_v24, %v2619_v20 }
 0x9ce   : > { %v2742_v45 = vpop.f32.mrf.mxu1 }
 0x9cf   : > { %v2749_v3 = vadd.f32 %v2741_v46, %v622_v34  ;;  %v2743_v32 = vadd.f32 %v2742_v45, %v2623_v5 }
 0x9d0   : > { %v2744_v25 = vpop.f32.mrf.mxu1 }
 0x9d1   : > { %2753 = vst [vmem:[%s615_s18] sm:$0xff] %v2749_v3  ;;  %v2750_v30 = vadd.f32 %v2743_v32, %v622_v34  ;;  %v2745_v14 = vadd.f32 %v2744_v25, %v2619_v20 }
 0x9d2   : > { %v2746_v62 = vpop.f32.mrf.mxu1 }
 0x9d3   : > { %2754 = vst [vmem:[%s615_s18 + $0x8] sm:$0xff] %v2750_v30  ;;  %v2751_v31 = vadd.f32 %v2745_v14, %v623_v47  ;;  %v2747_v33 = vadd.f32 %v2746_v62, %v2623_v5 }
 0x9d5   : > { %2755 = vst [vmem:[%s615_s18 + $0x10] sm:$0xff] %v2751_v31  ;;  %v2752_v27 = vadd.f32 %v2747_v33, %v623_v47 }
 0x9d7   : > { %2756 = vst [vmem:[%s615_s18 + $0x18] sm:$0xff] %v2752_v27 }
 0x9d8 PF: > { %s24_s15 = sadd.s32 1, %s3549_s15   ;;  %s4824_s29 = smov %s3545_s30 }
 0x9d9   : > { %p21_p5 = scmp.ge.s32.totalorder %s24_s15, 4   ;;  %s4825_s30 = smov %s4827_s16 }
 0x9db   :  { %23 = sbr.rel (!%p21_p5) target bundleno = 3 (0x3), region = 129 }

// kernel: seed_generator_forward.7
= control target key start
LH: loop header
LB: loop body
LE: loop exit
PB: predicated region body
PF: predicated region fallthrough
CT: control target
= control target key end

     0   :  { %s2930_s0 = inlined_call_operand.vmem [shape: f32[2,32,128], index: 0, kind: input, shape index: {}]   ;;  %s2931_s1 = inlined_call_operand.vmem [shape: bf16[128,256], index: 1, kind: input, shape index: {}]   ;;  %s2932_s2 = inlined_call_operand.vmem [shape: f32[2,1,256], index: 2, kind: input, shape index: {}]   ;;  %s2933_s3 = inlined_call_operand.vmem [shape: bf16[128,128], index: 3, kind: input, shape index: {}]   ;;  %s2934_s4 = inlined_call_operand.vmem [shape: f32[1,1,128], index: 4, kind: input, shape index: {}]   ;;  %s2935_s5 = inlined_call_operand.vmem [shape: bf16[128,192], index: 5, kind: input, shape index: {}]   ;;  %s2936_s6 = inlined_call_operand.vmem [shape: f32[1,1,192], index: 6, kind: input, shape index: {}]   ;;  %s2937_s7 = inlined_call_operand.vmem [shape: bf16[64,128], index: 7, kind: input, shape index: {}]   ;;  %s2938_s8 = inlined_call_operand.vmem [shape: f32[1,1,128], index: 8, kind: input, shape index: {}]   ;;  %s2939_s9 = inlined_call_operand.vmem [shape: bf16[128,256], index: 9, kind: input, shape index: {}]   ;;  %s2940_s10 = inlined_call_operand.vmem [shape: f32[2,1,256], index: 10, kind: input, shape index: {}]   ;;  %s2941_s11 = inlined_call_operand.vmem [shape: bf16[128,128], index: 11, kind: input, shape index: {}]   ;;  %s2942_s12 = inlined_call_operand.vmem [shape: f32[1,1,128], index: 12, kind: input, shape index: {}]   ;;  %s2943_s13 = inlined_call_operand.vmem [shape: bf16[128,64], index: 13, kind: input, shape index: {}]   ;;  %s2944_s14 = inlined_call_operand.vmem [shape: f32[1,1,64], index: 14, kind: input, shape index: {}]   ;;  %s2945_s15 = inlined_call_operand.vmem [shape: bf16[64,3], index: 15, kind: input, shape index: {}]   ;;  %s2946_s16 = inlined_call_operand.vmem [shape: f32[1,1,3], index: 16, kind: input, shape index: {}]   ;;  %s2947_s17 = inlined_call_operand.hbm [shape: f32[2,32,128], index: 17, kind: output, shape index: {0}]   ;;  %s2948_s18 = inlined_call_operand.vmem [shape: f32[2,32,3], index: 18, kind: output, shape index: {1}]  }
   0x1   :  { %2956 = sst [smem:[#allocation10_spill]] %s2930_s0 }
   0x2   :  { %2957 = sst [smem:[#allocation11_spill]] %s2931_s1 }
   0x3   :  { %2958 = sst [smem:[#allocation12_spill]] %s2932_s2 }
   0x4   :  { %2959 = sst [smem:[#allocation13_spill]] %s2933_s3 }
   0x5   :  { %2960 = sst [smem:[#allocation14_spill]] %s2934_s4 }
   0x6   :  { %2961 = sst [smem:[#allocation15_spill]] %s2946_s16 }
   0x7   :  { %2962 = sst [smem:[#allocation16_spill]] %s2947_s17 }
   0x8   :  { %2963 = sst [smem:[#allocation17_spill]] %s2948_s18 }
   0x9   :  { %24 = vsyncpa [#allocation3], 0 }
   0xa   :  { %26 = vsyncpa [#allocation3 + $0x1], 0  ;;  %s2496_s27 = smov 0   ;;  %s2498_s28 = smov 0  }
   0xb   :  { %s2500_s29 = smov 0   ;;  %s2502_s30 = smov 0  }
   0xc   :  { %s2504_s0 = smov 0   ;;  %s2506_s19 = smov 0  }
   0xd LB: > { %2964 = sst [smem:[#allocation5_spill]] %s2375_s27  ;;  %s1922_s1 = sadd.s32 4294967295, %s2395_s19   ;;  %s2395_s19 = sphi %s2506_s19, %s32_s19   ;;  %s2391_s0 = sphi %s2504_s0, %s2985_s0   ;;  %s2387_s30 = sphi %s2502_s30, %s2984_s30   ;;  %s2383_s29 = sphi %s2500_s29, %s2983_s29   ;;  %s2379_s28 = sphi %s2498_s28, %s2987_s28   ;;  %s2375_s27 = sphi %s2496_s27, %s2986_s27  }
   0xe   : > { %2965 = sst [smem:[#allocation6_spill]] %s2383_s29  ;;  %s1923_s20 = sadd.s32 4294967294, %s2395_s19  }
   0xf   : > { %2966 = sst [smem:[#allocation7_spill]] %s2391_s0  ;;  %s44_s21 = sadd.s32 1, %s2391_s0 }
  0x10   : > { %s427_s22 = sadd.s32 1, %s2383_s29  ;;  %p46_p0 = scmp.ge.s32.totalorder %s44_s21, 2 }
  0x11   : > { %p437_p1 = scmp.ne.s32.totalorder %s2383_s29, %s2379_s28  ;;  %p438_p2 = scmp.eq.s32.totalorder %s1922_s1, 1 }
  0x12   : > { %p443_p3 = scmp.ne.s32.totalorder %s2379_s28, %s2375_s27  ;;  %s2989_s21 = smov (%p46_p0, %s44_s21), 0 }
  0x13   : > { %2967 = sst [smem:[#allocation8_spill]] %s2989_s21  ;;  %p2536_p4 = por %p438_p2, %p437_p1 }
  0x14   : > { %p444_p5 = scmp.eq.s32.totalorder %s1923_s20, 1  ;;  %s422_s23 = ssub.s32 %s2391_s0, %s2989_s21 }
  0x15   : > { %p1926_p6 = scmp.ge.s32.totalorder %s2395_s19, 1  ;;  %p425_p7 = scmp.eq.s32.totalorder %s422_s23, 0 }
  0x16   : > { %p2543_p8 = por %p444_p5, %p443_p3  ;;  %p559_p9 = scmp.lt.s32.totalorder %s2395_s19, 3 }
  0x17   : > { %s2549_s25 = scalar_select %p425_p7, %s2383_s29, %s427_s22  }
  0x18   : > { %p560_p10 = pnand %p1926_p6, %p559_p9 }
  0x19   : > { %2970 = sst [smem:[#allocation9_spill]] %s2549_s25  ;;  %p635_p11 = scmp.lt.s32.totalorder (!%p560_p10), %s2387_s30, 1 }
  0x1a   : > { %563 = sbr.rel (%p560_p10) target bundleno = 1728 (0x6c0), region = 88  ;;  %s2971_s27 = sld [smem:[#allocation11_spill]] (!%p560_p10) }
  0x1b   : > { %s2973_s3 = sld [smem:[#allocation13_spill]] (!%p560_p10) }
  0x1c   : > { %s2974_s25 = sld [smem:[#allocation10_spill]] (!%p560_p10) }
  0x1d   : > { %s2975_s22 = sld [smem:[#allocation12_spill]] (!%p560_p10) }
  0x1e   : > { %s2976_s4 = sld [smem:[#allocation14_spill]] (!%p560_p10) }
  0x1f   : > { %v2397_v2 = vmov 0   ;;  %s2593_s0 = scalar_select %p635_p11, %s2387_s30, 1  ;;  %v2247_v31 = vld [vmem:[%s2935_s5 + $0x70] ss:$8 sps:$4 sm:$0xff]   ;;  %v2249_v32 = vld [vmem:[%s2935_s5 + $0x74] ss:$8 sps:$4 sm:$0xff]   ;;  %v705_v41 = vlaneseq }
  0x20   : > { %s2972_s18 = smov %s2971_s27  ;;  %v2215_v0 = vld [vmem:[%s2971_s27 + $0x74] ss:$8 sps:$4 sm:$0xff]   ;;  %827 = vmatprep.mubr.bf16.mxu0 %v2397_v2  ;;  %v2252_v33 = vld [vmem:[%s2935_s5 + $0x64] ss:$8 sps:$4 sm:$0xff]   ;;  %v2250_v34 = vld [vmem:[%s2935_s5 + $0x60] ss:$8 sps:$4 sm:$0xff]  }
  0x21   : > { %v2217_v1 = vld [vmem:[%s2972_s18 + $0x70] ss:$8 sps:$4 sm:$0xff]   ;;  %795 = vmatprep.subr.bf16.mxu0 %v2215_v0  ;;  %v2218_v3 = vld [vmem:[%s2972_s18 + $0x64] ss:$8 sps:$4 sm:$0xff]   ;;  %v2220_v4 = vld [vmem:[%s2972_s18 + $0x60] ss:$8 sps:$4 sm:$0xff]  }
  0x22   : > { %796 = vmatpush1.bf16.msra.mxu0 %v2217_v1  ;;  %v2221_v5 = vld [vmem:[%s2972_s18 + $0x54] ss:$8 sps:$4 sm:$0xff]   ;;  %v2223_v6 = vld [vmem:[%s2972_s18 + $0x50] ss:$8 sps:$4 sm:$0xff]   ;;  %v2224_v7 = vld [vmem:[%s2972_s18 + $0x44] ss:$8 sps:$4 sm:$0xff]  }
  0x23   : > { %797 = vmatprep.subr.bf16.mxu0 %v2218_v3  ;;  %v2226_v8 = vld [vmem:[%s2972_s18 + $0x40] ss:$8 sps:$4 sm:$0xff]   ;;  %v2227_v9 = vld [vmem:[%s2972_s18 + $0x34] ss:$8 sps:$4 sm:$0xff]   ;;  %v2229_v11 = vld [vmem:[%s2972_s18 + $0x30] ss:$8 sps:$4 sm:$0xff]  }
  0x24   : > { %v2239_v10 = vld [vmem:[%s2973_s3 + $0x38] sm:$0xff]   ;;  %v2240_v12 = vld [vmem:[%s2973_s3 + $0x30] sm:$0xff]   ;;  %v2230_v13 = vld [vmem:[%s2972_s18 + $0x24] ss:$8 sps:$4 sm:$0xff]   ;;  %s2955_s20 = sshll.u32 %s2593_s0, 5  ;;  %v706_v42 = vshrl.u32 %v705_v41, 7 }
  0x25   : > { %2073 = vmatprep.subr.bf16.mxu1 %v2239_v10  ;;  %v2241_v14 = vld [vmem:[%s2973_s3 + $0x28] sm:$0xff]   ;;  %v2233_v16 = vld [vmem:[%s2972_s18 + $0x14] ss:$8 sps:$4 sm:$0xff]   ;;  %v2235_v17 = vld [vmem:[%s2972_s18 + $0x10] ss:$8 sps:$4 sm:$0xff]   ;;  %s642_s29 = scalar_lea.vmem %s2974_s25, %s2955_s20  ;;  %s1930_s25 = sshll.u32 %s2593_s0, 1 }
  0x26   : > { %798 = vmatpush1.bf16.msra.mxu0 %v2220_v4  ;;  %2074 = vmatpush3.bf16.msra.mxu1 %v2239_v10  ;;  %v2232_v15 = vld [vmem:[%s2972_s18 + $0x20] ss:$8 sps:$4 sm:$0xff]   ;;  %v2236_v18 = vld [vmem:[%s2972_s18 + $0x4] ss:$8 sps:$4 sm:$0xff]   ;;  %v666_v23 = vld [vmem:[%s642_s29 + $0x10] sm:$0xff]  ;;  %v2672_v43 = vsub.s32 1, %v706_v42  ;;  %s651_s23 = scalar_lea.vmem %s2940_s10, %s1930_s25 }
  0x27   : > { %799 = vmatprep.subr.bf16.mxu0 %v2221_v5  ;;  %2075 = vmatprep.subr.bf16.mxu1 %v2240_v12  ;;  %v2238_v19 = vld [vmem:[%s2972_s18] ss:$8 sps:$4 sm:$0xff]   ;;  %v667_v24 = vld [vmem:[%s642_s29 + $0x18] sm:$0xff]  ;;  %v2244_v28 = vld [vmem:[%s2973_s3 + $0x10] sm:$0xff]   ;;  %vm1169_vm0 = vcmask 523264   ;;  %s620_s20 = sand.u32 1, %s2379_s28  }
  0x28   : > { %v664_v20 = vld [vmem:[%s642_s29] sm:$0xff]  ;;  %v665_v21 = vld [vmem:[%s642_s29 + $0x8] sm:$0xff]  ;;  %v703_v25 = vpack.c.bf16 %v667_v24, %v666_v23  ;;  %v2243_v27 = vld [vmem:[%s2973_s3 + $0x18] sm:$0xff]   ;;  %s647_s29 = scalar_lea.vmem %s2975_s22, %s1930_s25  ;;  %s1927_s25 = sshll.u32 %s620_s20, 5 }
  0x29   : > { %v702_v22 = vpack.c.bf16 %v665_v21, %v664_v20  ;;  %v2242_v26 = vld [vmem:[%s2973_s3 + $0x20] sm:$0xff]   ;;  %v2245_v29 = vld [vmem:[%s2973_s3 + $0x8] sm:$0xff]   ;;  %v2255_v35 = vld [vmem:[%s2935_s5 + $0x54] ss:$8 sps:$4 sm:$0xff]   ;;  %s2846_s21 = scalar_lea.vmem [#allocation2], %s1927_s25  ;;  %s2030_s22 = sshll.u32 %s2387_s30, 9 }
  0x2a   : > { %800 = vmatpush1.bf16.msra.mxu0 %v2223_v6  ;;  %2076 = vmatpush3.bf16.msra.mxu1 %v2240_v12  ;;  %v2246_v30 = vld [vmem:[%s2973_s3] sm:$0xff]   ;;  %v2253_v36 = vld [vmem:[%s2935_s5 + $0x50] ss:$8 sps:$4 sm:$0xff]   ;;  %v2261_v39 = vld [vmem:[%s2935_s5 + $0x34] ss:$8 sps:$4 sm:$0xff]   ;;  %s1778_s25 = sshll.u32 %s2846_s21, 4  ;;  %s2867_s25 = int_to_ptr.vmem [resolvable:$true] %s1778_s25 }
  0x2b   : > { %801 = vmatprep.subr.bf16.mxu0 %v2224_v7  ;;  %2077 = vmatprep.subr.bf16.mxu1 %v2241_v14  ;;  %v2258_v37 = vld [vmem:[%s2935_s5 + $0x44] ss:$8 sps:$4 sm:$0xff]   ;;  %v2256_v38 = vld [vmem:[%s2935_s5 + $0x40] ss:$8 sps:$4 sm:$0xff]   ;;  %v2259_v40 = vld [vmem:[%s2935_s5 + $0x30] ss:$8 sps:$4 sm:$0xff]  }
  0x2c   : > { %v684_v44 = vld [vmem:[%s647_s29] sm:$0x3]  ;;  %v2264_v0 = vld [vmem:[%s2935_s5 + $0x24] ss:$8 sps:$4 sm:$0xff]   ;;  %v2267_v3 = vld [vmem:[%s2935_s5 + $0x14] ss:$8 sps:$4 sm:$0xff]  }
  0x2d   : > { %v712_v46 = vrot.slane %v684_v44, %v2672_v43  ;;  %v2262_v1 = vld [vmem:[%s2935_s5 + $0x20] ss:$8 sps:$4 sm:$0xff]   ;;  %v2265_v4 = vld [vmem:[%s2935_s5 + $0x10] ss:$8 sps:$4 sm:$0xff]   ;;  %v2270_v5 = vld [vmem:[%s2935_s5 + $0x4] ss:$8 sps:$4 sm:$0xff]  }
  0x2e   : > { %802 = vmatpush1.bf16.msra.mxu0 %v2226_v8  ;;  %2078 = vmatpush3.bf16.msra.mxu1 %v2241_v14  ;;  %v2268_v6 = vld [vmem:[%s2935_s5] ss:$8 sps:$4 sm:$0xff]   ;;  %v2693_v7 = vsub.s32 0, %v706_v42  ;;  %s2977_s26 = sld [smem:[#allocation16_spill]]  ;;  %s2877_s17 = scalar_lea.sflag [#allocation3], %s620_s20 }
  0x2f   : > { %803 = vmatprep.subr.bf16.mxu0 %v2227_v9  ;;  %2079 = vmatprep.subr.bf16.mxu1 %v2242_v26  ;;  %v1950_v9 = vld [vmem:[%s2976_s4] ss:$0 sm:$0xff]  ;;  %s2319_s1 = scalar_lea.vmem %s2867_s25, 512 }
  0x30   : > { %v708_v10 = vrot.slane %v684_v44, %v2693_v7  ;;  %p2320_p12 = scmp.ne.s32.totalorder %s2867_s25, %s2319_s1 }
  0x32   : > { %804 = vmatpush1.bf16.msra.mxu0 %v2229_v11  ;;  %2080 = vmatpush3.bf16.msra.mxu1 %v2242_v26  ;;  %p2321_p13 = pnand %p2320_p12, %p2536_p4 }
  0x33   : > { %805 = vmatprep.subr.bf16.mxu0 %v2230_v13  ;;  %2081 = vmatprep.subr.bf16.mxu1 %v2243_v27 }
  0x34   : > { %s2873_s16 = scalar_lea.hbm %s2977_s26, %s2030_s22  ;;  %p2322_p0 = pneg %p2321_p13 }
  0x36   : > { %806 = vmatpush1.bf16.msra.mxu0 %v2232_v15  ;;  %2082 = vmatpush3.bf16.msra.mxu1 %v2243_v27 }
  0x37   : > { %807 = vmatprep.subr.bf16.mxu0 %v2233_v16  ;;  %2083 = vmatprep.subr.bf16.mxu1 %v2244_v28 }
  0x3a   : > { %808 = vmatpush1.bf16.msra.mxu0 %v2235_v17  ;;  %2084 = vmatpush3.bf16.msra.mxu1 %v2244_v28  ;;  %v2271_v28 = vld [vmem:[%s2937_s7 + $0x18] sm:$0xff]  }
  0x3b   : > { %809 = vmatprep.subr.bf16.mxu0 %v2236_v18  ;;  %2085 = vmatprep.subr.bf16.mxu1 %v2245_v29 }
  0x3e   : > { %810 = vmatpush1.bf16.msra.mxu0 %v2238_v19  ;;  %2086 = vmatpush3.bf16.msra.mxu1 %v2245_v29  ;;  %v2272_v29 = vld [vmem:[%s2937_s7 + $0x10] sm:$0xff]  }
  0x3f   : > { %2087 = vmatprep.subr.bf16.mxu1 %v2246_v30  ;;  %1080 = vmatprep.subr.bf16.mxu0 %v2249_v32  ;;  %v2277_v32 = vld [vmem:[%s2939_s9 + $0x74] ss:$8 sps:$4 sm:$0xff]  }
  0x41   : > { %828 = vmatmul.mubr.bf16.vlgmr.msra.gmra.mxu0 %v702_v22 }
  0x42   : > { %837 = vmatprep.mubr.bf16.mxu0 %v2397_v2  ;;  %2088 = vmatpush3.bf16.msra.mxu1 %v2246_v30  ;;  %v2273_v30 = vld [vmem:[%s2937_s7 + $0x8] sm:$0xff]  }
  0x43   : > { %1081 = vmatpush1.bf16.msra.mxu0 %v2247_v31  ;;  %2093 = vmatprep.subr.bf16.mxu1 %v2271_v28  ;;  %v2274_v31 = vld [vmem:[%s2937_s7] sm:$0xff]  }
  0x44   : > { %1082 = vmatprep.subr.bf16.mxu0 %v2252_v33  ;;  %v2718_v33 = vld [vmem:[%s2936_s6] sm:$0x3] }
  0x47   : > { %1083 = vmatpush1.bf16.msra.mxu0 %v2250_v34 }
  0x48   : > { %1084 = vmatprep.subr.bf16.mxu0 %v2255_v35  ;;  %v997_v35 = vrot.slane %v2718_v33, %v2672_v43 }
  0x49   : > { %838 = vmatmul.mubr.bf16.gmra.mxu0 %v703_v25 }
  0x4a   : > { %1112 = vmatprep.mubr.bf16.mxu0 %v2397_v2 }
  0x4b   : > { %1085 = vmatpush1.bf16.msra.mxu0 %v2253_v36 }
  0x4c   : > { %1086 = vmatprep.subr.bf16.mxu0 %v2258_v37 }
  0x4f   : > { %1087 = vmatpush1.bf16.msra.mxu0 %v2256_v38 }
  0x50   : > { %1088 = vmatprep.subr.bf16.mxu0 %v2261_v39 }
  0x53   : > { %1089 = vmatpush1.bf16.msra.mxu0 %v2259_v40 }
  0x54   : > { %1090 = vmatprep.subr.bf16.mxu0 %v2264_v0  ;;  %v2290_v0 = vld [vmem:[%s2939_s9 + $0x20] ss:$8 sps:$4 sm:$0xff]  }
  0x57   : > { %1091 = vmatpush1.bf16.msra.mxu0 %v2262_v1  ;;  %v2295_v1 = vld [vmem:[%s2939_s9 + $0x14] ss:$8 sps:$4 sm:$0xff]  }
  0x58   : > { %1092 = vmatprep.subr.bf16.mxu0 %v2267_v3  ;;  %v2293_v3 = vld [vmem:[%s2939_s9 + $0x10] ss:$8 sps:$4 sm:$0xff]  }
  0x5b   : > { %1093 = vmatpush1.bf16.msra.mxu0 %v2265_v4  ;;  %v2298_v4 = vld [vmem:[%s2939_s9 + $0x4] ss:$8 sps:$4 sm:$0xff]  }
  0x5c   : > { %1094 = vmatprep.subr.bf16.mxu0 %v2270_v5  ;;  %v2296_v5 = vld [vmem:[%s2939_s9] ss:$8 sps:$4 sm:$0xff]  }
  0x5f   : > { %1095 = vmatpush1.bf16.msra.mxu0 %v2268_v6  ;;  %v2299_v6 = vld [vmem:[%s2941_s11 + $0x38] sm:$0xff]  }
  0x60   : > { %2105 = vmatprep.subr.bf16.mxu0 %v2299_v6 }
 0x101   : > { %v829_v45 = vpop.f32.mrf.mxu0 }
 0x102   : > { %v830_v18 = vadd.f32 %v829_v45, %v708_v10 }
 0x103   : > { %v831_v47 = vpop.f32.mrf.mxu0 }
 0x104   : > { %v832_v49 = vadd.f32 %v831_v47, %v712_v46 }
 0x105   : > { %v833_v48 = vpop.f32.mrf.mxu0 }
 0x106   : > { %v848_v53 = vmax.f32 %v832_v49, 0.0  ;;  %v834_v20 = vadd.f32 %v833_v48, %v708_v10 }
 0x107   : > { %v835_v50 = vpop.f32.mrf.mxu0 }
 0x108   : > { %v836_v51 = vadd.f32 %v835_v50, %v712_v46 }
 0x109   : > { %v839_v52 = vpop.f32.mrf.mxu0 }
 0x10a   : > { %v849_v54 = vmax.f32 %v836_v51, 0.0  ;;  %v840_v14 = vadd.f32 %v839_v52, %v708_v10 }
 0x10b   : > { %v841_v55 = vpop.f32.mrf.mxu0 }
 0x10c   : > { %v852_v56 = vpack.c.bf16 %v849_v54, %v848_v53  ;;  %v842_v58 = vadd.f32 %v841_v55, %v712_v46  ;;  %v2275_v53 = vld [vmem:[%s2939_s9 + $0x70] ss:$8 sps:$4 sm:$0xff]   ;;  %v2280_v55 = vld [vmem:[%s2939_s9 + $0x64] ss:$8 sps:$4 sm:$0xff]  }
 0x10d   : > { %v843_v57 = vpop.f32.mrf.mxu0 }
 0x10e   : > { %2089 = vmatprep.mubr.bf16.mxu1 %v852_v56  ;;  %v850_v61 = vmax.f32 %v842_v58, 0.0  ;;  %v844_v15 = vadd.f32 %v843_v57, %v708_v10  ;;  %v2278_v56 = vld [vmem:[%s2939_s9 + $0x60] ss:$8 sps:$4 sm:$0xff]   ;;  %v2283_v57 = vld [vmem:[%s2939_s9 + $0x54] ss:$8 sps:$4 sm:$0xff]  }
 0x10f   : > { %v845_v59 = vpop.f32.mrf.mxu0  ;;  %v2281_v58 = vld [vmem:[%s2939_s9 + $0x50] ss:$8 sps:$4 sm:$0xff]  }
 0x110   : > { %v846_v60 = vadd.f32 %v845_v59, %v712_v46  ;;  %v2286_v59 = vld [vmem:[%s2939_s9 + $0x44] ss:$8 sps:$4 sm:$0xff]  }
 0x112   : > { %v851_v62 = vmax.f32 %v846_v60, 0.0  ;;  %v2284_v60 = vld [vmem:[%s2939_s9 + $0x40] ss:$8 sps:$4 sm:$0xff]  }
 0x114   : > { %v853_v63 = vpack.c.bf16 %v851_v62, %v850_v61  ;;  %v2289_v61 = vld [vmem:[%s2939_s9 + $0x34] ss:$8 sps:$4 sm:$0xff]   ;;  %v2287_v62 = vld [vmem:[%s2939_s9 + $0x30] ss:$8 sps:$4 sm:$0xff]  }
 0x116   : > { %2090 = vmatmul.mubr.bf16.vlgmr.msra.gmra.mxu1 %v853_v63  ;;  %v2292_v63 = vld [vmem:[%s2939_s9 + $0x24] ss:$8 sps:$4 sm:$0xff]  }
 0x117   : > { %2094 = vmatpush3.bf16.msra.mxu1 %v2271_v28 }
 0x118   : > { %2095 = vmatprep.subr.bf16.mxu1 %v2272_v29 }
 0x11b   : > { %2096 = vmatpush3.bf16.msra.mxu1 %v2272_v29 }
 0x11c   : > { %2097 = vmatprep.subr.bf16.mxu1 %v2273_v30 }
 0x11f   : > { %2098 = vmatpush3.bf16.msra.mxu1 %v2273_v30  ;;  %v2302_v30 = vld [vmem:[%s2941_s11 + $0x20] sm:$0xff]  }
 0x120   : > { %2099 = vmatprep.subr.bf16.mxu1 %v2274_v31 }
 0x123   : > { %2100 = vmatpush3.bf16.msra.mxu1 %v2274_v31  ;;  %v2303_v31 = vld [vmem:[%s2941_s11 + $0x18] sm:$0xff]  }
 0x124   : > { %1356 = vmatprep.subr.bf16.mxu1 %v2277_v32  ;;  %v2304_v32 = vld [vmem:[%s2941_s11 + $0x10] sm:$0xff]  }
 0x1d6   : > { %v2091_v8 = vpop.f32.mrf.mxu1 }
 0x1d7   : > { %v951_v12 = vadd.f32 %v2091_v8, %v1950_v9  ;;  %v2300_v8 = vld [vmem:[%s2941_s11 + $0x30] sm:$0xff]  }
 0x1d8   : > { %v942_v11 = vpop.f32.mrf.mxu1 }
 0x1d9   : > { %v943_v16 = vadd.f32 %v1950_v9, %v942_v11  ;;  %v959_v21 = vadd.f32 %v951_v12, %v840_v14  ;;  %v1975_v11 = vld [vmem:[%s2938_s8] ss:$0 sm:$0xff]  ;;  %v993_v12 = vrot.slane %v2718_v33, %v2693_v7 }
 0x1da   : > { %v2092_v13 = vpop.f32.mrf.mxu1  ;;  %v2306_v33 = vld [vmem:[%s2941_s11] sm:$0xff]  }
 0x1db   : > { %v954_v17 = vadd.f32 %v2092_v13, %v1950_v9  ;;  %v957_v24 = vadd.f32 %v943_v16, %v830_v18 }
 0x1dc   : > { %v945_v19 = vpop.f32.mrf.mxu1 }
 0x1dd   : > { %v960_v22 = vadd.f32 %v954_v17, %v844_v15  ;;  %v946_v23 = vadd.f32 %v1950_v9, %v945_v19  ;;  %v2301_v9 = vld [vmem:[%s2941_s11 + $0x28] sm:$0xff]  }
 0x1df   : > { %v958_v25 = vadd.f32 %v946_v23, %v834_v20  ;;  %v988_v26 = vpack.c.bf16 %v960_v22, %v959_v21 }
 0x1e1   : > { %v987_v27 = vpack.c.bf16 %v958_v25, %v957_v24 }
 0x1e3   : > { %1113 = vmatmul.mubr.bf16.vlgmr.msra.gmra.mxu0 %v987_v27 }
 0x1e4   : > { %1122 = vmatprep.mubr.bf16.mxu0 %v2397_v2  ;;  %2106 = vmatpush3.bf16.msra.mxu0 %v2299_v6 }
 0x1e5   : > { %2107 = vmatprep.subr.bf16.mxu0 %v2300_v8 }
 0x1e8   : > { %2108 = vmatpush3.bf16.msra.mxu0 %v2300_v8 }
 0x1e9   : > { %2109 = vmatprep.subr.bf16.mxu0 %v2301_v9 }
 0x1eb   : > { %1123 = vmatmul.mubr.bf16.gmra.mxu0 %v988_v26 }
 0x1ec   : > { %2110 = vmatpush3.bf16.msra.mxu0 %v2301_v9 }
 0x1ed   : > { %2111 = vmatprep.subr.bf16.mxu0 %v2302_v30 }
 0x1f0   : > { %2112 = vmatpush3.bf16.msra.mxu0 %v2302_v30 }
 0x1f1   : > { %2113 = vmatprep.subr.bf16.mxu0 %v2303_v31 }
 0x1f4   : > { %2114 = vmatpush3.bf16.msra.mxu0 %v2303_v31 }
 0x1f5   : > { %2115 = vmatprep.subr.bf16.mxu0 %v2304_v32 }
 0x1f8   : > { %2116 = vmatpush3.bf16.msra.mxu0 %v2304_v32 }
 0x2a3   : > { %v2720_v34 = vpop.f32.mrf.mxu0 }
 0x2a4   : > { %v1115_v20 = vadd.f32 %v2720_v34, %v993_v12  ;;  %v2307_v34 = vld [vmem:[%s2943_s13 + $0x38] sm:$0xff]  }
 0x2a5   : > { %v1116_v36 = vpop.f32.mrf.mxu0 }
 0x2a6   : > { %v1117_v38 = vadd.f32 %v1116_v36, %v997_v35  ;;  %v2309_v36 = vld [vmem:[%s2943_s13 + $0x28] sm:$0xff]  }
 0x2a7   : > { %v2724_v37 = vpop.f32.mrf.mxu0 }
 0x2a8   : > { %v1133_v42 = vmax.f32 %v1117_v38, 0.0  ;;  %v1119_v22 = vadd.f32 %v2724_v37, %v993_v12  ;;  %v2310_v37 = vld [vmem:[%s2943_s13 + $0x20] sm:$0xff]   ;;  %v2311_v38 = vld [vmem:[%s2943_s13 + $0x18] sm:$0xff]  }
 0x2a9   : > { %v1120_v39 = vpop.f32.mrf.mxu0 }
 0x2aa   : > { %v1121_v40 = vadd.f32 %v1120_v39, %v997_v35  ;;  %v1245_v39 = vld [vmem:[%s651_s23] sm:$0x3] }
 0x2ab   : > { %v1124_v41 = vpop.f32.mrf.mxu0 }
 0x2ac   : > { %v1134_v44 = vmax.f32 %v1121_v40, 0.0  ;;  %v1125_v16 = vadd.f32 %v1124_v41, %v993_v12  ;;  %v1273_v41 = vrot.slane %v1245_v39, %v2672_v43  ;;  %v2312_v43 = vld [vmem:[%s2943_s13 + $0x10] sm:$0xff]  }
 0x2ad   : > { %v1126_v45 = vpop.f32.mrf.mxu0 }
 0x2ae   : > { %v1137_v46 = vpack.c.bf16 %v1134_v44, %v1133_v42  ;;  %v1127_v48 = vadd.f32 %v1126_v45, %v997_v35 }
 0x2af   : > { %v1128_v47 = vpop.f32.mrf.mxu0 }
 0x2b0   : > { %2101 = vmatprep.mubr.msk.bf16.mxu1 %vm1169_vm0, %v1137_v46  ;;  %v1135_v51 = vmax.f32 %v1127_v48, 0.0  ;;  %v1129_v17 = vadd.f32 %v1128_v47, %v993_v12 }
 0x2b1   : > { %v1130_v49 = vpop.f32.mrf.mxu0 }
 0x2b2   : > { %v1131_v50 = vadd.f32 %v1130_v49, %v997_v35  ;;  %v2308_v35 = vld [vmem:[%s2943_s13 + $0x30] sm:$0xff]  }
 0x2b4   : > { %v1136_v52 = vmax.f32 %v1131_v50, 0.0 }
 0x2b6   : > { %v1138_v54 = vpack.c.bf16 %v1136_v52, %v1135_v51 }
 0x2b8   : > { %2102 = vmatmul.mubr.msk.bf16.vlgmr.msra.gmra.mxu1 %vm1169_vm0, %v1138_v54 }
 0x2b9   : > { %1357 = vmatpush1.bf16.msra.mxu1 %v2275_v53  ;;  %1388 = vmatprep.mubr.bf16.mxu1 %v2397_v2 }
 0x2ba   : > { %1358 = vmatprep.subr.bf16.mxu1 %v2280_v55 }
 0x2bd   : > { %1359 = vmatpush1.bf16.msra.mxu1 %v2278_v56 }
 0x2be   : > { %1360 = vmatprep.subr.bf16.mxu1 %v2283_v57 }
 0x2c1   : > { %1361 = vmatpush1.bf16.msra.mxu1 %v2281_v58 }
 0x2c2   : > { %1362 = vmatprep.subr.bf16.mxu1 %v2286_v59 }
 0x2c5   : > { %1363 = vmatpush1.bf16.msra.mxu1 %v2284_v60  ;;  %v2313_v60 = vld [vmem:[%s2943_s13 + $0x8] sm:$0xff]  }
 0x2c6   : > { %1364 = vmatprep.subr.bf16.mxu1 %v2289_v61  ;;  %v2314_v61 = vld [vmem:[%s2943_s13] sm:$0xff]  }
 0x2c9   : > { %1365 = vmatpush1.bf16.msra.mxu1 %v2287_v62  ;;  %v2315_v62 = vld [vmem:[%s2945_s15 + $0x18] sm:$0xff]  }
 0x2ca   : > { %1366 = vmatprep.subr.bf16.mxu1 %v2292_v63  ;;  %v1998_v63 = vld [vmem:[%s2942_s12] ss:$0 sm:$0xff] }
 0x2cd   : > { %1367 = vmatpush1.bf16.msra.mxu1 %v2290_v0  ;;  %v1269_v0 = vrot.slane %v1245_v39, %v2693_v7 }
 0x2ce   : > { %1368 = vmatprep.subr.bf16.mxu1 %v2295_v1 }
 0x2d1   : > { %1369 = vmatpush1.bf16.msra.mxu1 %v2293_v3 }
 0x2d2   : > { %1370 = vmatprep.subr.bf16.mxu1 %v2298_v4 }
 0x2d5   : > { %1371 = vmatpush1.bf16.msra.mxu1 %v2296_v5 }
 0x2d6   : > { %2125 = vmatprep.subr.bf16.mxu1 %v2307_v34 }
 0x378   : > { %v2103_v10 = vpop.f32.mrf.mxu1 }
 0x379   : > { %v1219_v14 = vadd.f32 %v2103_v10, %v1975_v11 }
 0x37a   : > { %v1210_v13 = vpop.f32.mrf.mxu1 }
 0x37b   : > { %v1211_v18 = vadd.f32 %v1975_v11, %v1210_v13  ;;  %v1227_v23 = vadd.f32 %v1219_v14, %v1125_v16 }
 0x37c   : > { %v2104_v15 = vpop.f32.mrf.mxu1 }
 0x37d   : > { %v1222_v19 = vadd.f32 %v2104_v15, %v1975_v11  ;;  %v1225_v26 = vadd.f32 %v1211_v18, %v1115_v20  ;;  %v2316_v20 = vld [vmem:[%s2945_s15 + $0x10] sm:$0xff]  }
 0x37e   : > { %v1213_v21 = vpop.f32.mrf.mxu1 }
 0x37f   : > { %v1228_v24 = vadd.f32 %v1222_v19, %v1129_v17  ;;  %v1214_v25 = vadd.f32 %v1975_v11, %v1213_v21  ;;  %v2317_v21 = vld [vmem:[%s2945_s15 + $0x8] sm:$0xff]  }
 0x381   : > { %v1226_v27 = vadd.f32 %v1214_v25, %v1119_v22  ;;  %v1264_v28 = vpack.c.bf16 %v1228_v24, %v1227_v23  ;;  %v2318_v22 = vld [vmem:[%s2945_s15] sm:$0xff]  }
 0x382   : > { %v2007_v25 = vld [vmem:[%s2944_s14] ss:$0 sm:$0xff] }
 0x383   : > { %v1263_v29 = vpack.c.bf16 %v1226_v27, %v1225_v26 }
 0x385   : > { %1389 = vmatmul.mubr.bf16.vlgmr.msra.gmra.mxu1 %v1263_v29 }
 0x386   : > { %1398 = vmatprep.mubr.bf16.mxu1 %v2397_v2  ;;  %v2305_v2 = vld [vmem:[%s2941_s11 + $0x8] sm:$0xff]   ;;  %2126 = vmatpush3.bf16.msra.mxu1 %v2307_v34 }
 0x387   : > { %2117 = vmatprep.subr.bf16.mxu0 %v2305_v2  ;;  %2127 = vmatprep.subr.bf16.mxu1 %v2308_v35 }
 0x388   : > { %2118 = vmatpush3.bf16.msra.mxu0 %v2305_v2 }
 0x389   : > { %2119 = vmatprep.subr.bf16.mxu0 %v2306_v33 }
 0x38a   : > { %2128 = vmatpush3.bf16.msra.mxu1 %v2308_v35 }
 0x38b   : > { %2129 = vmatprep.subr.bf16.mxu1 %v2309_v36 }
 0x38c   : > { %2120 = vmatpush3.bf16.msra.mxu0 %v2306_v33 }
 0x38d   : > { %1399 = vmatmul.mubr.bf16.gmra.mxu1 %v1264_v28  ;;  %2145 = vmatprep.subr.bf16.mxu0 %v2315_v62 }
 0x38e   : > { %2130 = vmatpush3.bf16.msra.mxu1 %v2309_v36 }
 0x38f   : > { %2131 = vmatprep.subr.bf16.mxu1 %v2310_v37 }
 0x392   : > { %2132 = vmatpush3.bf16.msra.mxu1 %v2310_v37 }
 0x393   : > { %2133 = vmatprep.subr.bf16.mxu1 %v2311_v38 }
 0x396   : > { %2134 = vmatpush3.bf16.msra.mxu1 %v2311_v38 }
 0x397   : > { %2135 = vmatprep.subr.bf16.mxu1 %v2312_v43 }
 0x39a   : > { %2136 = vmatpush3.bf16.msra.mxu1 %v2312_v43 }
 0x39b   : > { %2137 = vmatprep.subr.bf16.mxu1 %v2313_v60 }
 0x39e   : > { %2138 = vmatpush3.bf16.msra.mxu1 %v2313_v60 }
 0x39f   : > { %2139 = vmatprep.subr.bf16.mxu1 %v2314_v61 }
 0x3a2   : > { %2140 = vmatpush3.bf16.msra.mxu1 %v2314_v61 }
 0x445   : > { %v1390_v40 = vpop.f32.mrf.mxu1 }
 0x446   : > { %v1391_v6 = vadd.f32 %v1390_v40, %v1269_v0 }
 0x447   : > { %v1392_v42 = vpop.f32.mrf.mxu1 }
 0x448   : > { %v1393_v45 = vadd.f32 %v1392_v42, %v1273_v41 }
 0x449   : > { %v1394_v44 = vpop.f32.mrf.mxu1 }
 0x44a   : > { %v1409_v49 = vmax.f32 %v1393_v45, 0.0  ;;  %v1395_v14 = vadd.f32 %v1394_v44, %v1269_v0 }
 0x44b   : > { %v1396_v46 = vpop.f32.mrf.mxu1 }
 0x44c   : > { %v1397_v47 = vadd.f32 %v1396_v46, %v1273_v41 }
 0x44d   : > { %v1400_v48 = vpop.f32.mrf.mxu1 }
 0x44e   : > { %v1410_v50 = vmax.f32 %v1397_v47, 0.0  ;;  %v1401_v3 = vadd.f32 %v1400_v48, %v1269_v0 }
 0x44f   : > { %v1402_v51 = vpop.f32.mrf.mxu1 }
 0x450   : > { %v1413_v52 = vpack.c.bf16 %v1410_v50, %v1409_v49  ;;  %v1403_v54 = vadd.f32 %v1402_v51, %v1273_v41 }
 0x451   : > { %v1404_v53 = vpop.f32.mrf.mxu1 }
 0x452   : > { %2121 = vmatprep.mubr.bf16.mxu0 %v1413_v52  ;;  %v1411_v57 = vmax.f32 %v1403_v54, 0.0  ;;  %v1405_v11 = vadd.f32 %v1404_v53, %v1269_v0 }
 0x453   : > { %v1406_v55 = vpop.f32.mrf.mxu1 }
 0x454   : > { %v1407_v56 = vadd.f32 %v1406_v55, %v1273_v41 }
 0x456   : > { %v1412_v58 = vmax.f32 %v1407_v56, 0.0 }
 0x458   : > { %v1414_v59 = vpack.c.bf16 %v1412_v58, %v1411_v57 }
 0x45a   : > { %2122 = vmatmul.mubr.bf16.vlgmr.msra.gmra.mxu0 %v1414_v59 }
 0x45b   : > { %2146 = vmatpush3.bf16.msra.mxu0 %v2315_v62 }
 0x45c   : > { %2147 = vmatprep.subr.bf16.mxu0 %v2316_v20 }
 0x45f   : > { %2148 = vmatpush3.bf16.msra.mxu0 %v2316_v20 }
 0x460   : > { %2149 = vmatprep.subr.bf16.mxu0 %v2317_v21 }
 0x463   : > { %2150 = vmatpush3.bf16.msra.mxu0 %v2317_v21 }
 0x464   : > { %2151 = vmatprep.subr.bf16.mxu0 %v2318_v22 }
 0x467   : > { %2152 = vmatpush3.bf16.msra.mxu0 %v2318_v22 }
 0x51a   : > { %v2123_v1 = vpop.f32.mrf.mxu0 }
 0x51b   : > { %v1512_v4 = vadd.f32 %v2123_v1, %v1998_v63 }
 0x51c   : > { %v1503_v5 = vpop.f32.mrf.mxu0 }
 0x51d   : > { %v1520_v8 = vadd.f32 %v1512_v4, %v1401_v3  ;;  %v1504_v9 = vadd.f32 %v1998_v63, %v1503_v5 }
 0x51e   : > { %v2124_v10 = vpop.f32.mrf.mxu0 }
 0x51f   : > { %1746 = vst [vmem:[%s2846_s21 + $0x10] sm:$0xff] %v1520_v8  ;;  %v1518_v12 = vadd.f32 %v1504_v9, %v1391_v6  ;;  %v1515_v7 = vadd.f32 %v2124_v10, %v1998_v63 }
 0x520   : > { %v1506_v13 = vpop.f32.mrf.mxu0 }
 0x521   : > { %1744 = vst [vmem:[%s2846_s21] sm:$0xff] %v1518_v12  ;;  %v1521_v15 = vadd.f32 %v1515_v7, %v1405_v11  ;;  %v1507_v16 = vadd.f32 %v1998_v63, %v1506_v13 }
 0x523   : > { %v1539_v17 = vpack.c.bf16 %v1521_v15, %v1520_v8  ;;  %1747 = vst [vmem:[%s2846_s21 + $0x18] sm:$0xff] %v1521_v15  ;;  %v1519_v18 = vadd.f32 %v1507_v16, %v1395_v14 }
 0x525   : > { %1745 = vst [vmem:[%s2846_s21 + $0x8] sm:$0xff] %v1519_v18  ;;  %v1538_v19 = vpack.c.bf16 %v1519_v18, %v1518_v12  ;;  %s2398_s21 = smov [#allocation2]  }
 0x526   : > { %s2323_s23 = sshll.u32 %s2398_s21, 4  ;;  %s2324_s23 = int_to_ptr.vmem [resolvable:$false] %s2323_s23 }
 0x527   : > { %2141 = vmatprep.mubr.bf16.mxu1 %v1538_v19  ;;  %s2325_s3 = scalar_lea.vmem %s2324_s23, 1024  ;;  %p2326_p1 = scmp.lt.s32.totalorder %s2867_s25, %s2324_s23 }
 0x528   : > { %2142 = vmatmul.mubr.bf16.vlgmr.msra.gmra.mxu1 %v1539_v17  ;;  %p2327_p2 = scmp.lt.s32.totalorder %s2325_s3, %s2319_s1 }
 0x52a   : > { %p2328_p3 = por %p2327_p2, %p2326_p1 }
 0x52c   : > { %p2329_p5 = pnand %p2328_p3, %p2322_p0 }
 0x5e8   : > { %v2143_v23 = vpop.f32.mrf.mxu1 }
 0x5e9   : > { %v1638_v29 = vadd.f32 %v2143_v23, %v2007_v25 }
 0x5ea   : > { %v1629_v24 = vpop.f32.mrf.mxu1 }
 0x5eb   : > { %v1630_v27 = vadd.f32 %v2007_v25, %v1629_v24  ;;  %v1646_v34 = vmax.f32 %v1638_v29, 0.0 }
 0x5ec   : > { %v2144_v26 = vpop.f32.mrf.mxu1 }
 0x5ed   : > { %v1641_v28 = vadd.f32 %v2144_v26, %v2007_v25  ;;  %v1644_v2 = vmax.f32 %v1630_v27, 0.0 }
 0x5ee   : > { %v1632_v30 = vpop.f32.mrf.mxu1 }
 0x5ef   : > { %v1633_v31 = vadd.f32 %v2007_v25, %v1632_v30  ;;  %v1647_v32 = vmax.f32 %v1641_v28, 0.0 }
 0x5f1   : > { %v1645_v33 = vmax.f32 %v1633_v31, 0.0  ;;  %v1657_v36 = vpack.c.bf16 %v1647_v32, %v1646_v34 }
 0x5f3   : > { %v1656_v35 = vpack.c.bf16 %v1645_v33, %v1644_v2 }
 0x5f5   : > { %2153 = vmatprep.mubr.msk.bf16.mxu0 %vm1169_vm0, %v1656_v35 }
 0x5f6   : > { %2154 = vmatmul.mubr.msk.bf16.vlgmr.msra.gmra.mxu0 %vm1169_vm0, %v1657_v36 }
 0x5f7   : > { %2332 = shalt.err (!%p2329_p5)
}
 0x5f8   : > { %s2333_s30 = scalar_lea.hbm %s2873_s16, 512  ;;  %s2337_s29 = scalar_lea.hbm %s2977_s26, 1024 }
 0x5f9   : > { %p2334_p6 = scmp.ne.s32.totalorder %s2873_s16, %s2333_s30  ;;  %p2338_p10 = scmp.lt.s32.totalorder %s2873_s16, %s2977_s26 }
 0x5fa   : > { %p2339_p11 = scmp.lt.s32.totalorder %s2337_s29, %s2333_s30 }
 0x5fb   : > { %p2335_p7 = pnand %p2334_p6, %p2536_p4 }
 0x5fc   : > { %p2340_p12 = por %p2339_p11, %p2338_p10 }
 0x5fd   : > { %p2336_p9 = pneg %p2335_p7 }
 0x5ff   : > { %p2341_p13 = pnand %p2340_p12, %p2336_p9 }
 0x601   : > { %2344 = shalt.err (!%p2341_p13)
}
 0x602   : > { %s2399_s3 = smov 128   ;;  %s2400_s1 = smov 8   ;;  %vm1748_vm1 = vcmask 23552  }
 0x603   : > { %2157 = dma.vmem_to_hbm [thread:$0]  (%p2536_p4), %s2867_s25, 512, %s2873_s16, %s2877_s17, %s2399_s3, %s2399_s3, %s2400_s1  }
 0x604   : > { %s2978_s22 = sld [smem:[#allocation15_spill]]  ;;  %s2979_s4 = sshll.u32 %s2593_s0, 5 }
 0x605   : > { %s2980_s30 = sld [smem:[#allocation17_spill]] }
 0x60a   : > { %v2016_v37 = vld [vmem:[%s2978_s22] ss:$0 sm:$0xff] }
 0x60b   : > { %s661_s29 = scalar_lea.vmem %s2980_s30, %s2979_s4 }
 0x6b6   : > { %v2155_v38 = vpop.f32.mrf.mxu0 }
 0x6b7   : > { %v1738_v39 = vadd.f32 %v2155_v38, %v2016_v37 }
 0x6b8   : > { %v1729_v40 = vpop.f32.mrf.mxu0 }
 0x6b9   : > { %1751 = vst.msk [vmem:[%s661_s29 + $0x10] sm:$0xff] %vm1748_vm1, %v1738_v39  ;;  %v1730_v41 = vadd.f32 %v2016_v37, %v1729_v40 }
 0x6ba   : > { %v2156_v42 = vpop.f32.mrf.mxu0 }
 0x6bb   : > { %1749 = vst.msk [vmem:[%s661_s29] sm:$0xff] %vm1748_vm1, %v1730_v41  ;;  %v1741_v44 = vadd.f32 %v2156_v42, %v2016_v37 }
 0x6bc   : > { %v1732_v45 = vpop.f32.mrf.mxu0 }
 0x6bd   : > { %1752 = vst.msk [vmem:[%s661_s29 + $0x18] sm:$0xff] %vm1748_vm1, %v1741_v44  ;;  %v1733_v46 = vadd.f32 %v2016_v37, %v1732_v45 }
 0x6bf   : > { %1750 = vst.msk [vmem:[%s661_s29 + $0x8] sm:$0xff] %vm1748_vm1, %v1733_v46 }
 0x6c0 PF: > { %s2981_s2 = sld [smem:[#allocation5_spill]]  ;;  %p2163_p4 = scmp.ge.s32.totalorder %s2395_s19, 2 }
 0x6c2   : > { %p2160_p0 = pnand %p2163_p4, %p2543_p8 }
 0x6c4   : > { %p2161_p1 = pneg %p2160_p0 }
 0x6c6   : > { %s1797_s0 = sand.u32 1, %s2981_s2  }
 0x6c7   : > { %s1798_s4 = scalar_lea.sflag [#allocation3], %s1797_s0 }
 0x6c8   : > { %2370 = dma.done.wait (%p2161_p1), %s1798_s4, 512  }
 0x6c9   : > { %2372 = vsyncadd (%p2161_p1), %s1798_s4, 4294966784  ;;  %s32_s19 = sadd.s32 1, %s2395_s19   ;;  %s2982_s25 = sld [smem:[#allocation6_spill]] }
 0x6ca   : > { %p29_p2 = scmp.ge.s32.totalorder %s32_s19, 4   ;;  %s2983_s29 = sld [smem:[#allocation9_spill]] }
 0x6cb   : > { %s2984_s30 = sld [smem:[#allocation7_spill]]  ;;  %s2986_s27 = smov %s2379_s28 }
 0x6cc   : > { %s2985_s0 = sld [smem:[#allocation8_spill]]  ;;  %31 = sbr.rel (!%p29_p2) target bundleno = 13 (0xd), region = 141 }
 0x6cf   : > { %s2987_s28 = smov %s2982_s25 }
 0x6d1   :  { %1815 = vsyncpa [#allocation3], 1 }
 0x6d2   :  { %1817 = vsyncpa [#allocation3 + $0x1], 1 }

</bundles_post_ra>
